<compile_context>
chip_gen: v7x
topology: tpu7x:2x2x1
jax: 0.10.0
libtpu: 0.0.40
codegen_flags: <defaults>
</compile_context>

<pallas_src>
import jax
import jax.numpy as jnp
from jax.experimental import pallas as pl
from jax.experimental.pallas import tpu as pltpu

# ------------------------------ configuration ------------------------------
B = 2
IN_C = 3
IMG = 16
PATCH = 4
EMBED = 64
DEPTH = 2
HEADS = 4
MLP_RATIO = 4.0
NUM_CLASSES = 10

GRID = IMG // PATCH                      # 4
NUM_PATCHES = GRID * GRID                # 16
N_TOK = NUM_PATCHES + 1                  # 17 (patches + cls)
N_PAD = 24                               # token rows padded to multiple of 8
BN = B * N_PAD                           # 48 rows total
CLS_ROW = NUM_PATCHES                    # cls token stored right after patches
HEAD_DIM = EMBED // HEADS                # 16
SCALE = HEAD_DIM ** -0.5
MLP_HIDDEN = int(EMBED * MLP_RATIO)      # 256
K_RAW = IN_C * PATCH * PATCH             # 48
K_PAD = 64                               # patchify contraction, lane padded
EPS = 1e-6                               # norm_layer = partial(LayerNorm, eps=1e-6)
NEG = -1e9                               # softmax mask for padded key columns


# ----------------------------- in-kernel helpers ---------------------------
def _gelu(x):
    # tanh-approximation GELU (lowers to EUP tanh, which has its own bundle
    # slot).  Deviates from torch.nn.GELU's exact erf by < ~1e-3.
    # TODO(synk): exact erf GELU if bit-matching torch is required.
    c = 0.7978845608028654  # sqrt(2/pi)
    return 0.5 * x * (1.0 + jnp.tanh(c * (x + 0.044715 * x * x * x)))


def _layernorm(x, w, b):
    mu = jnp.mean(x, axis=-1, keepdims=True)
    xc = x - mu
    var = jnp.mean(xc * xc, axis=-1, keepdims=True)
    return xc * jax.lax.rsqrt(var + EPS) * w + b


# ------------------------------- fused kernel ------------------------------
def vit_kernel(patches_ref, pw_ref, init_ref,
               ln1_ref, wqkv_ref, bqkv_ref, wproj_ref, bproj_ref,
               ln2_ref, wfc1_ref, bfc1_ref, wfc2_ref, bfc2_ref,
               normwb_ref, headw_ref, headb_ref,
               o_ref):
    f32 = jnp.float32

    # Patch embedding (strided Conv2d == patchify matmul).  Conv bias, cls
    # token and positional embedding are pre-folded into init_ref, so padded
    # / cls rows of patches_ref are zero and the whole thing is one aligned
    # [48,64] @ [64,64] matmul + add.
    x = jnp.dot(patches_ref[...], pw_ref[...], preferred_element_type=f32) + init_ref[...]

    # Key mask for padded token columns (indices >= N_TOK within each sample).
    col = jax.lax.broadcasted_iota(jnp.int32, (1, 1, N_PAD), 2)
    key_mask = jnp.where(col < N_TOK, 0.0, NEG).astype(f32)

    for d in range(DEPTH):
        ln1 = ln1_ref[d]                                              # [2, 64]
        ln2 = ln2_ref[d]

        # ---------------- attention: x + proj(softmax(qk^T/sqrt(d)) v) -----
        h = _layernorm(x, ln1[0:1, :], ln1[1:2, :])                   # [48, 64]
        # fused QKV: one [48,64] @ [64,192] matmul + bias
        qkv = jnp.dot(h, wqkv_ref[d], preferred_element_type=f32) + bqkv_ref[d]
        qb = qkv[:, 0 * EMBED:1 * EMBED].reshape(B, N_PAD, EMBED)     # leading split
        kb = qkv[:, 1 * EMBED:2 * EMBED].reshape(B, N_PAD, EMBED)
        vb = qkv[:, 2 * EMBED:3 * EMBED].reshape(B, N_PAD, EMBED)

        wp = wproj_ref[d]                                             # [64, 64]
        attn = jnp.zeros((BN, EMBED), f32)
        for head in range(HEADS):
            lo = head * HEAD_DIM
            hi = lo + HEAD_DIM
            s = jnp.einsum('bnd,bmd->bnm', qb[:, :, lo:hi], kb[:, :, lo:hi],
                           preferred_element_type=f32) * SCALE        # [B,24,24]
            s = s + key_mask
            s = s - jnp.max(s, axis=-1, keepdims=True)
            p = jnp.exp(s)
            p = p * pl.reciprocal(jnp.sum(p, axis=-1, keepdims=True), approx=True)
            oh = jnp.einsum('bnm,bmd->bnd', p, vb[:, :, lo:hi],
                            preferred_element_type=f32)               # [B,24,16]
            # concat(heads) @ Wproj == sum_h head_h @ Wproj[h*hd:(h+1)*hd, :]
            attn = attn + jnp.dot(oh.reshape(BN, HEAD_DIM), wp[lo:hi, :],
                                  preferred_element_type=f32)
        x = x + attn + bproj_ref[d]

        # ---------------- MLP: x + fc2(gelu(fc1(ln(x)))) --------------------
        m = _layernorm(x, ln2[0:1, :], ln2[1:2, :])
        m = jnp.dot(m, wfc1_ref[d], preferred_element_type=f32) + bfc1_ref[d]
        m = _gelu(m)
        x = x + jnp.dot(m, wfc2_ref[d], preferred_element_type=f32) + bfc2_ref[d]

    # Final LayerNorm + classification head, on the cls rows only.
    cls = jnp.concatenate(
        [x[b * N_PAD + CLS_ROW: b * N_PAD + CLS_ROW + 1, :] for b in range(B)],
        axis=0)                                                       # [B, 64]
    cls = _layernorm(cls, normwb_ref[0:1, :], normwb_ref[1:2, :])
    o_ref[...] = jnp.dot(cls, headw_ref[...], preferred_element_type=f32) + headb_ref[...]


# ------------------------------ pallas wrapper ------------------------------
def _zero_map(n):
    return lambda *_: (0,) * n


def vit_forward(x_nchw, params):
    b, c, h, w = x_nchw.shape
    assert (b, c, h, w) == (B, IN_C, IMG, IMG)

    # patchify (glue): [B,C,gh,p,gw,p] -> [B,gh,gw,C,p,p] -> [B, P, C*p*p]
    xp = x_nchw.reshape(b, c, GRID, PATCH, GRID, PATCH)
    xp = xp.transpose(0, 2, 4, 1, 3, 5).reshape(b, NUM_PATCHES, K_RAW)
    # pad token rows 16 -> 24 (cls/pad rows zero) and contraction 48 -> 64
    xp = jnp.pad(xp, ((0, 0), (0, N_PAD - NUM_PATCHES), (0, K_PAD - K_RAW)))
    patches_mat = xp.reshape(BN, K_PAD)

    # conv weight padded with zero rows to the padded contraction dim
    patch_w = jnp.pad(params["patch_w"], ((0, K_PAD - K_RAW), (0, 0)))     # [64, 64]

    # init tensor = conv bias + positional embedding (+ cls token on its row)
    pos = params["pos_embed"][0]                                           # [17, 64]
    init = jnp.zeros((N_PAD, EMBED), jnp.float32)
    init = init.at[:NUM_PATCHES].set(pos[1:] + params["patch_b"])
    init = init.at[CLS_ROW].set(pos[0] + params["cls_token"][0, 0])
    init_mat = jnp.broadcast_to(init[None], (B, N_PAD, EMBED)).reshape(BN, EMBED)

    # stack per-block weights across depth -> a handful of slab tensors
    blocks = params["blocks"]
    ln1 = jnp.stack([jnp.concatenate([bl["ln1_w"], bl["ln1_b"]], 0) for bl in blocks])   # [D,2,64]
    ln2 = jnp.stack([jnp.concatenate([bl["ln2_w"], bl["ln2_b"]], 0) for bl in blocks])   # [D,2,64]
    wqkv = jnp.stack([bl["w_qkv"] for bl in blocks])                   # [D, 64, 192]
    bqkv = jnp.stack([bl["b_qkv"] for bl in blocks])                   # [D, 1, 192]
    wproj = jnp.stack([bl["w_proj"] for bl in blocks])                 # [D, 64, 64]
    bproj = jnp.stack([bl["b_proj"] for bl in blocks])                 # [D, 1, 64]
    wfc1 = jnp.stack([bl["w_fc1"] for bl in blocks])                   # [D, 64, 256]
    bfc1 = jnp.stack([bl["b_fc1"] for bl in blocks])                   # [D, 1, 256]
    wfc2 = jnp.stack([bl["w_fc2"] for bl in blocks])                   # [D, 256, 64]
    bfc2 = jnp.stack([bl["b_fc2"] for bl in blocks])                   # [D, 1, 64]
    normwb = jnp.concatenate([params["norm_w"], params["norm_b"]], 0)  # [2, 64]

    args = [patches_mat, patch_w, init_mat,
            ln1, wqkv, bqkv, wproj, bproj,
            ln2, wfc1, bfc1, wfc2, bfc2,
            normwb, params["head_w"], params["head_b"]]

    in_specs = [pl.BlockSpec(a.shape, _zero_map(a.ndim)) for a in args]
    return pl.pallas_call(
        vit_kernel,
        out_shape=jax.ShapeDtypeStruct((B, NUM_CLASSES), jnp.float32),
        grid=(1,),
        in_specs=in_specs,
        out_specs=pl.BlockSpec((B, NUM_CLASSES), _zero_map(2)),
        compiler_params=pltpu.CompilerParams(dimension_semantics=("arbitrary",)),
    )(*args)


# -------------------------------- parameters --------------------------------
def _trunc_normal(key, shape, std):
    return jax.random.truncated_normal(key, -2.0, 2.0, shape, jnp.float32) * std


def init_params(key):
    keys = iter(jax.random.split(key, 64))
    params = {}

    # PatchEmbed: Conv2d(in_c, embed, k=patch, stride=patch), kaiming_normal fan_out
    fan_out = EMBED * PATCH * PATCH
    conv_w = jax.random.normal(next(keys), (EMBED, IN_C, PATCH, PATCH), jnp.float32) * \
        jnp.sqrt(2.0 / fan_out)
    params["patch_w"] = conv_w.reshape(EMBED, K_RAW).T                 # [48, 64]
    params["patch_b"] = jnp.zeros((1, EMBED), jnp.float32)

    params["cls_token"] = _trunc_normal(next(keys), (1, 1, EMBED), 0.02)
    params["pos_embed"] = _trunc_normal(next(keys), (1, N_TOK, EMBED), 0.02)

    blocks = []
    for _ in range(DEPTH):
        blocks.append({
            "ln1_w": jnp.ones((1, EMBED), jnp.float32),
            "ln1_b": jnp.zeros((1, EMBED), jnp.float32),
            # nn.Linear weights are [out, in]; store transposed as [in, out]
            "w_qkv": _trunc_normal(next(keys), (3 * EMBED, EMBED), 0.01).T,
            "b_qkv": jnp.zeros((1, 3 * EMBED), jnp.float32),           # qkv_bias=True
            "w_proj": _trunc_normal(next(keys), (EMBED, EMBED), 0.01).T,
            "b_proj": jnp.zeros((1, EMBED), jnp.float32),
            "ln2_w": jnp.ones((1, EMBED), jnp.float32),
            "ln2_b": jnp.zeros((1, EMBED), jnp.float32),
            "w_fc1": _trunc_normal(next(keys), (MLP_HIDDEN, EMBED), 0.01).T,
            "b_fc1": jnp.zeros((1, MLP_HIDDEN), jnp.float32),
            "w_fc2": _trunc_normal(next(keys), (EMBED, MLP_HIDDEN), 0.01).T,
            "b_fc2": jnp.zeros((1, EMBED), jnp.float32),
        })
    params["blocks"] = blocks

    params["norm_w"] = jnp.ones((1, EMBED), jnp.float32)
    params["norm_b"] = jnp.zeros((1, EMBED), jnp.float32)
    params["head_w"] = _trunc_normal(next(keys), (NUM_CLASSES, EMBED), 0.01).T
    params["head_b"] = jnp.zeros((1, NUM_CLASSES), jnp.float32)
    return params


# ----------------------------------- main ------------------------------------
if __name__ == "__main__":
    key = jax.random.PRNGKey(0)
    k_param, k_input = jax.random.split(key)

    params = init_params(k_param)
    x = jax.random.normal(k_input, (B, IN_C, IMG, IMG), jnp.float32)   # NCHW

    fwd = jax.jit(vit_forward)
    logits = fwd(x, params)
    jax.block_until_ready(logits)

    assert logits.shape == (B, NUM_CLASSES)
    assert bool(jnp.all(jnp.isfinite(logits)))
    print("KERNEL_OK")
</pallas_src>

<mosaic_0001>
module attributes {stable_mosaic.version = 11 : i64} {
  func.func @vit_kernel(%arg0: i32, %arg1: memref<48x64xf32, #tpu.memory_space<vmem>>, %arg2: memref<64x64xf32, #tpu.memory_space<vmem>>, %arg3: memref<48x64xf32, #tpu.memory_space<vmem>>, %arg4: memref<2x2x64xf32, #tpu.memory_space<vmem>>, %arg5: memref<2x64x192xf32, #tpu.memory_space<vmem>>, %arg6: memref<2x1x192xf32, #tpu.memory_space<vmem>>, %arg7: memref<2x64x64xf32, #tpu.memory_space<vmem>>, %arg8: memref<2x1x64xf32, #tpu.memory_space<vmem>>, %arg9: memref<2x2x64xf32, #tpu.memory_space<vmem>>, %arg10: memref<2x64x256xf32, #tpu.memory_space<vmem>>, %arg11: memref<2x1x256xf32, #tpu.memory_space<vmem>>, %arg12: memref<2x256x64xf32, #tpu.memory_space<vmem>>, %arg13: memref<2x1x64xf32, #tpu.memory_space<vmem>>, %arg14: memref<2x64xf32, #tpu.memory_space<vmem>>, %arg15: memref<64x10xf32, #tpu.memory_space<vmem>>, %arg16: memref<1x10xf32, #tpu.memory_space<vmem>>, %arg17: memref<2x10xf32, #tpu.memory_space<vmem>>) attributes {dimension_semantics = [#tpu.dimension_semantics<arbitrary>], iteration_bounds = array<i64: 1>, scalar_prefetch = 0 : i64, scratch_operands = 0 : i64, tpu.core_type = #tpu.core_type<tc>, window_params = [{pipeline_mode = #tpu.pipeline_mode<synchronous>, transform_indices = @transform_0, window_bounds = array<i64: 48, 64>}, {pipeline_mode = #tpu.pipeline_mode<synchronous>, transform_indices = @transform_1, window_bounds = array<i64: 64, 64>}, {pipeline_mode = #tpu.pipeline_mode<synchronous>, transform_indices = @transform_2, window_bounds = array<i64: 48, 64>}, {pipeline_mode = #tpu.pipeline_mode<synchronous>, transform_indices = @transform_3, window_bounds = array<i64: 2, 2, 64>}, {pipeline_mode = #tpu.pipeline_mode<synchronous>, transform_indices = @transform_4, window_bounds = array<i64: 2, 64, 192>}, {pipeline_mode = #tpu.pipeline_mode<synchronous>, transform_indices = @transform_5, window_bounds = array<i64: 2, 1, 192>}, {pipeline_mode = #tpu.pipeline_mode<synchronous>, transform_indices = @transform_6, window_bounds = array<i64: 2, 64, 64>}, {pipeline_mode = #tpu.pipeline_mode<synchronous>, transform_indices = @transform_7, window_bounds = array<i64: 2, 1, 64>}, {pipeline_mode = #tpu.pipeline_mode<synchronous>, transform_indices = @transform_8, window_bounds = array<i64: 2, 2, 64>}, {pipeline_mode = #tpu.pipeline_mode<synchronous>, transform_indices = @transform_9, window_bounds = array<i64: 2, 64, 256>}, {pipeline_mode = #tpu.pipeline_mode<synchronous>, transform_indices = @transform_10, window_bounds = array<i64: 2, 1, 256>}, {pipeline_mode = #tpu.pipeline_mode<synchronous>, transform_indices = @transform_11, window_bounds = array<i64: 2, 256, 64>}, {pipeline_mode = #tpu.pipeline_mode<synchronous>, transform_indices = @transform_12, window_bounds = array<i64: 2, 1, 64>}, {pipeline_mode = #tpu.pipeline_mode<synchronous>, transform_indices = @transform_13, window_bounds = array<i64: 2, 64>}, {pipeline_mode = #tpu.pipeline_mode<synchronous>, transform_indices = @transform_14, window_bounds = array<i64: 64, 10>}, {pipeline_mode = #tpu.pipeline_mode<synchronous>, transform_indices = @transform_15, window_bounds = array<i64: 1, 10>}, {pipeline_mode = #tpu.pipeline_mode<synchronous>, transform_indices = @transform_16, window_bounds = array<i64: 2, 10>}]} {
    %c0 = arith.constant 0 : index
    %c0_0 = arith.constant 0 : index
    %0 = vector.load %arg1[%c0, %c0_0] : memref<48x64xf32, #tpu.memory_space<vmem>>, vector<48x64xf32>
    %c0_1 = arith.constant 0 : index
    %c0_2 = arith.constant 0 : index
    %1 = vector.load %arg2[%c0_1, %c0_2] : memref<64x64xf32, #tpu.memory_space<vmem>>, vector<64x64xf32>
    %cst = arith.constant dense<0.000000e+00> : vector<48x64xf32>
    %2 = tpu.matmul %0, %1, %cst {dimension_numbers = #tpu.dot_dimension_numbers<[1], [0], [0], [1], [0, 0, 1, 1], [], []>} : vector<48x64xf32>, vector<64x64xf32>, vector<48x64xf32> -> vector<48x64xf32>
    %c0_3 = arith.constant 0 : index
    %c0_4 = arith.constant 0 : index
    %3 = vector.load %arg3[%c0_3, %c0_4] : memref<48x64xf32, #tpu.memory_space<vmem>>, vector<48x64xf32>
    %4 = arith.addf %2, %3 : vector<48x64xf32>
    %5 = tpu.iota {dimensions = array<i32: 2>} : vector<1x1x24xi32>
    %c17_i32 = arith.constant 17 : i32
    %6 = vector.broadcast %c17_i32 : i32 to vector<1x1x24xi32>
    %7 = arith.cmpi slt, %5, %6 : vector<1x1x24xi32>
    %cst_5 = arith.constant 0.000000e+00 : f32
    %cst_6 = arith.constant -1.000000e+09 : f32
    %8 = vector.broadcast %cst_5 : f32 to vector<1x1x24xf32>
    %9 = vector.broadcast %cst_6 : f32 to vector<1x1x24xf32>
    %10 = arith.select %7, %8, %9 : vector<1x1x24xi1>, vector<1x1x24xf32>
    %c0_7 = arith.constant 0 : index
    %c0_8 = arith.constant 0 : index
    %c0_9 = arith.constant 0 : index
    %11 = vector.load %arg4[%c0_7, %c0_8, %c0_9] : memref<2x2x64xf32, #tpu.memory_space<vmem>>, vector<1x2x64xf32>
    %12 = vector.shape_cast %11 : vector<1x2x64xf32> to vector<2x64xf32>
    %c0_10 = arith.constant 0 : index
    %c0_11 = arith.constant 0 : index
    %c0_12 = arith.constant 0 : index
    %13 = vector.load %arg9[%c0_10, %c0_11, %c0_12] : memref<2x2x64xf32, #tpu.memory_space<vmem>>, vector<1x2x64xf32>
    %14 = vector.shape_cast %13 : vector<1x2x64xf32> to vector<2x64xf32>
    %15 = vector.extract_strided_slice %12 {offsets = [0, 0], sizes = [1, 64], strides = [1, 1]} : vector<2x64xf32> to vector<1x64xf32>
    %16 = vector.extract_strided_slice %12 {offsets = [1, 0], sizes = [1, 64], strides = [1, 1]} : vector<2x64xf32> to vector<1x64xf32>
    %cst_13 = arith.constant dense<0.000000e+00> : vector<48xf32>
    %17 = vector.multi_reduction <add>, %4, %cst_13 [1] : vector<48x64xf32> to vector<48xf32>
    %18 = vector.shape_cast %17 : vector<48xf32> to vector<48x1xf32>
    %cst_14 = arith.constant 6.400000e+01 : f32
    %19 = vector.broadcast %cst_14 : f32 to vector<48x1xf32>
    %20 = arith.divf %18, %19 : vector<48x1xf32>
    %21 = vector.broadcast %20 : vector<48x1xf32> to vector<48x64xf32>
    %22 = arith.subf %4, %21 : vector<48x64xf32>
    %23 = arith.mulf %22, %22 : vector<48x64xf32>
    %cst_15 = arith.constant dense<0.000000e+00> : vector<48xf32>
    %24 = vector.multi_reduction <add>, %23, %cst_15 [1] : vector<48x64xf32> to vector<48xf32>
    %25 = vector.shape_cast %24 : vector<48xf32> to vector<48x1xf32>
    %cst_16 = arith.constant 6.400000e+01 : f32
    %26 = vector.broadcast %cst_16 : f32 to vector<48x1xf32>
    %27 = arith.divf %25, %26 : vector<48x1xf32>
    %cst_17 = arith.constant 9.99999997E-7 : f32
    %28 = vector.broadcast %cst_17 : f32 to vector<48x1xf32>
    %29 = arith.addf %27, %28 : vector<48x1xf32>
    %30 = math.rsqrt %29 : vector<48x1xf32>
    %31 = vector.broadcast %30 : vector<48x1xf32> to vector<48x64xf32>
    %32 = arith.mulf %22, %31 : vector<48x64xf32>
    %33 = vector.broadcast %15 : vector<1x64xf32> to vector<48x64xf32>
    %34 = arith.mulf %32, %33 : vector<48x64xf32>
    %35 = vector.broadcast %16 : vector<1x64xf32> to vector<48x64xf32>
    %36 = arith.addf %34, %35 : vector<48x64xf32>
    %c0_18 = arith.constant 0 : index
    %c0_19 = arith.constant 0 : index
    %c0_20 = arith.constant 0 : index
    %37 = vector.load %arg5[%c0_18, %c0_19, %c0_20] : memref<2x64x192xf32, #tpu.memory_space<vmem>>, vector<1x64x192xf32>
    %38 = vector.shape_cast %37 : vector<1x64x192xf32> to vector<64x192xf32>
    %cst_21 = arith.constant dense<0.000000e+00> : vector<48x192xf32>
    %39 = tpu.matmul %36, %38, %cst_21 {dimension_numbers = #tpu.dot_dimension_numbers<[1], [0], [0], [1], [0, 0, 1, 1], [], []>} : vector<48x64xf32>, vector<64x192xf32>, vector<48x192xf32> -> vector<48x192xf32>
    %c0_22 = arith.constant 0 : index
    %c0_23 = arith.constant 0 : index
    %c0_24 = arith.constant 0 : index
    %40 = vector.load %arg6[%c0_22, %c0_23, %c0_24] : memref<2x1x192xf32, #tpu.memory_space<vmem>>, vector<1x1x192xf32>
    %41 = vector.shape_cast %40 : vector<1x1x192xf32> to vector<1x192xf32>
    %42 = vector.broadcast %41 : vector<1x192xf32> to vector<48x192xf32>
    %43 = arith.addf %39, %42 : vector<48x192xf32>
    %44 = vector.extract_strided_slice %43 {offsets = [0, 0], sizes = [48, 64], strides = [1, 1]} : vector<48x192xf32> to vector<48x64xf32>
    %45 = vector.shape_cast %44 : vector<48x64xf32> to vector<2x24x64xf32>
    %46 = vector.extract_strided_slice %43 {offsets = [0, 64], sizes = [48, 64], strides = [1, 1]} : vector<48x192xf32> to vector<48x64xf32>
    %47 = vector.shape_cast %46 : vector<48x64xf32> to vector<2x24x64xf32>
    %48 = vector.extract_strided_slice %43 {offsets = [0, 128], sizes = [48, 64], strides = [1, 1]} : vector<48x192xf32> to vector<48x64xf32>
    %49 = vector.shape_cast %48 : vector<48x64xf32> to vector<2x24x64xf32>
    %c0_25 = arith.constant 0 : index
    %c0_26 = arith.constant 0 : index
    %c0_27 = arith.constant 0 : index
    %50 = vector.load %arg7[%c0_25, %c0_26, %c0_27] : memref<2x64x64xf32, #tpu.memory_space<vmem>>, vector<1x64x64xf32>
    %51 = vector.shape_cast %50 : vector<1x64x64xf32> to vector<64x64xf32>
    %cst_28 = arith.constant 0.000000e+00 : f32
    %52 = vector.broadcast %cst_28 : f32 to vector<48x64xf32>
    %53 = vector.extract_strided_slice %45 {offsets = [0, 0, 0], sizes = [2, 24, 16], strides = [1, 1, 1]} : vector<2x24x64xf32> to vector<2x24x16xf32>
    %54 = vector.extract_strided_slice %47 {offsets = [0, 0, 0], sizes = [2, 24, 16], strides = [1, 1, 1]} : vector<2x24x64xf32> to vector<2x24x16xf32>
    "tpu.trace_start"() <{level = 10 : i32, message = "bnd,bmd->bnm"}> : () -> ()
    %cst_29 = arith.constant dense<0.000000e+00> : vector<2x24x24xf32>
    %55 = tpu.matmul %53, %54, %cst_29 {dimension_numbers = #tpu.dot_dimension_numbers<[2], [2], [1], [1], [0, 0, 0, 1, 1, 1], [0], [0]>} : vector<2x24x16xf32>, vector<2x24x16xf32>, vector<2x24x24xf32> -> vector<2x24x24xf32>
    "tpu.trace_stop"() : () -> ()
    %cst_30 = arith.constant 2.500000e-01 : f32
    %56 = vector.broadcast %cst_30 : f32 to vector<2x24x24xf32>
    %57 = arith.mulf %55, %56 : vector<2x24x24xf32>
    %58 = vector.broadcast %10 : vector<1x1x24xf32> to vector<2x24x24xf32>
    %59 = arith.addf %57, %58 : vector<2x24x24xf32>
    %cst_31 = arith.constant dense<0xFF800000> : vector<2x24xf32>
    %60 = vector.multi_reduction <maximumf>, %59, %cst_31 [2] : vector<2x24x24xf32> to vector<2x24xf32>
    %61 = vector.shape_cast %60 : vector<2x24xf32> to vector<2x24x1xf32>
    %62 = vector.broadcast %61 : vector<2x24x1xf32> to vector<2x24x24xf32>
    %63 = arith.subf %59, %62 : vector<2x24x24xf32>
    %64 = math.exp %63 : vector<2x24x24xf32>
    %cst_32 = arith.constant dense<0.000000e+00> : vector<2x24xf32>
    %65 = vector.multi_reduction <add>, %64, %cst_32 [2] : vector<2x24x24xf32> to vector<2x24xf32>
    %66 = vector.shape_cast %65 : vector<2x24xf32> to vector<2x24x1xf32>
    %67 = tpu.reciprocal %66 {approx = true} : vector<2x24x1xf32> -> vector<2x24x1xf32>
    %68 = vector.broadcast %67 : vector<2x24x1xf32> to vector<2x24x24xf32>
    %69 = arith.mulf %64, %68 : vector<2x24x24xf32>
    %70 = vector.extract_strided_slice %49 {offsets = [0, 0, 0], sizes = [2, 24, 16], strides = [1, 1, 1]} : vector<2x24x64xf32> to vector<2x24x16xf32>
    "tpu.trace_start"() <{level = 10 : i32, message = "bnm,bmd->bnd"}> : () -> ()
    %cst_33 = arith.constant dense<0.000000e+00> : vector<2x24x16xf32>
    %71 = tpu.matmul %69, %70, %cst_33 {dimension_numbers = #tpu.dot_dimension_numbers<[2], [1], [1], [2], [0, 0, 0, 1, 1, 2], [0], [0]>} : vector<2x24x24xf32>, vector<2x24x16xf32>, vector<2x24x16xf32> -> vector<2x24x16xf32>
    "tpu.trace_stop"() : () -> ()
    %72 = vector.shape_cast %71 : vector<2x24x16xf32> to vector<48x16xf32>
    %73 = vector.extract_strided_slice %51 {offsets = [0, 0], sizes = [16, 64], strides = [1, 1]} : vector<64x64xf32> to vector<16x64xf32>
    %cst_34 = arith.constant dense<0.000000e+00> : vector<48x64xf32>
    %74 = tpu.matmul %72, %73, %cst_34 {dimension_numbers = #tpu.dot_dimension_numbers<[1], [0], [0], [1], [0, 0, 1, 1], [], []>} : vector<48x16xf32>, vector<16x64xf32>, vector<48x64xf32> -> vector<48x64xf32>
    %75 = arith.addf %52, %74 : vector<48x64xf32>
    %76 = vector.extract_strided_slice %45 {offsets = [0, 0, 16], sizes = [2, 24, 16], strides = [1, 1, 1]} : vector<2x24x64xf32> to vector<2x24x16xf32>
    %77 = vector.extract_strided_slice %47 {offsets = [0, 0, 16], sizes = [2, 24, 16], strides = [1, 1, 1]} : vector<2x24x64xf32> to vector<2x24x16xf32>
    "tpu.trace_start"() <{level = 10 : i32, message = "bnd,bmd->bnm"}> : () -> ()
    %cst_35 = arith.constant dense<0.000000e+00> : vector<2x24x24xf32>
    %78 = tpu.matmul %76, %77, %cst_35 {dimension_numbers = #tpu.dot_dimension_numbers<[2], [2], [1], [1], [0, 0, 0, 1, 1, 1], [0], [0]>} : vector<2x24x16xf32>, vector<2x24x16xf32>, vector<2x24x24xf32> -> vector<2x24x24xf32>
    "tpu.trace_stop"() : () -> ()
    %cst_36 = arith.constant 2.500000e-01 : f32
    %79 = vector.broadcast %cst_36 : f32 to vector<2x24x24xf32>
    %80 = arith.mulf %78, %79 : vector<2x24x24xf32>
    %81 = vector.broadcast %10 : vector<1x1x24xf32> to vector<2x24x24xf32>
    %82 = arith.addf %80, %81 : vector<2x24x24xf32>
    %cst_37 = arith.constant dense<0xFF800000> : vector<2x24xf32>
    %83 = vector.multi_reduction <maximumf>, %82, %cst_37 [2] : vector<2x24x24xf32> to vector<2x24xf32>
    %84 = vector.shape_cast %83 : vector<2x24xf32> to vector<2x24x1xf32>
    %85 = vector.broadcast %84 : vector<2x24x1xf32> to vector<2x24x24xf32>
    %86 = arith.subf %82, %85 : vector<2x24x24xf32>
    %87 = math.exp %86 : vector<2x24x24xf32>
    %cst_38 = arith.constant dense<0.000000e+00> : vector<2x24xf32>
    %88 = vector.multi_reduction <add>, %87, %cst_38 [2] : vector<2x24x24xf32> to vector<2x24xf32>
    %89 = vector.shape_cast %88 : vector<2x24xf32> to vector<2x24x1xf32>
    %90 = tpu.reciprocal %89 {approx = true} : vector<2x24x1xf32> -> vector<2x24x1xf32>
    %91 = vector.broadcast %90 : vector<2x24x1xf32> to vector<2x24x24xf32>
    %92 = arith.mulf %87, %91 : vector<2x24x24xf32>
    %93 = vector.extract_strided_slice %49 {offsets = [0, 0, 16], sizes = [2, 24, 16], strides = [1, 1, 1]} : vector<2x24x64xf32> to vector<2x24x16xf32>
    "tpu.trace_start"() <{level = 10 : i32, message = "bnm,bmd->bnd"}> : () -> ()
    %cst_39 = arith.constant dense<0.000000e+00> : vector<2x24x16xf32>
    %94 = tpu.matmul %92, %93, %cst_39 {dimension_numbers = #tpu.dot_dimension_numbers<[2], [1], [1], [2], [0, 0, 0, 1, 1, 2], [0], [0]>} : vector<2x24x24xf32>, vector<2x24x16xf32>, vector<2x24x16xf32> -> vector<2x24x16xf32>
    "tpu.trace_stop"() : () -> ()
    %95 = vector.shape_cast %94 : vector<2x24x16xf32> to vector<48x16xf32>
    %96 = vector.extract_strided_slice %51 {offsets = [16, 0], sizes = [16, 64], strides = [1, 1]} : vector<64x64xf32> to vector<16x64xf32>
    %cst_40 = arith.constant dense<0.000000e+00> : vector<48x64xf32>
    %97 = tpu.matmul %95, %96, %cst_40 {dimension_numbers = #tpu.dot_dimension_numbers<[1], [0], [0], [1], [0, 0, 1, 1], [], []>} : vector<48x16xf32>, vector<16x64xf32>, vector<48x64xf32> -> vector<48x64xf32>
    %98 = arith.addf %75, %97 : vector<48x64xf32>
    %99 = vector.extract_strided_slice %45 {offsets = [0, 0, 32], sizes = [2, 24, 16], strides = [1, 1, 1]} : vector<2x24x64xf32> to vector<2x24x16xf32>
    %100 = vector.extract_strided_slice %47 {offsets = [0, 0, 32], sizes = [2, 24, 16], strides = [1, 1, 1]} : vector<2x24x64xf32> to vector<2x24x16xf32>
    "tpu.trace_start"() <{level = 10 : i32, message = "bnd,bmd->bnm"}> : () -> ()
    %cst_41 = arith.constant dense<0.000000e+00> : vector<2x24x24xf32>
    %101 = tpu.matmul %99, %100, %cst_41 {dimension_numbers = #tpu.dot_dimension_numbers<[2], [2], [1], [1], [0, 0, 0, 1, 1, 1], [0], [0]>} : vector<2x24x16xf32>, vector<2x24x16xf32>, vector<2x24x24xf32> -> vector<2x24x24xf32>
    "tpu.trace_stop"() : () -> ()
    %cst_42 = arith.constant 2.500000e-01 : f32
    %102 = vector.broadcast %cst_42 : f32 to vector<2x24x24xf32>
    %103 = arith.mulf %101, %102 : vector<2x24x24xf32>
    %104 = vector.broadcast %10 : vector<1x1x24xf32> to vector<2x24x24xf32>
    %105 = arith.addf %103, %104 : vector<2x24x24xf32>
    %cst_43 = arith.constant dense<0xFF800000> : vector<2x24xf32>
    %106 = vector.multi_reduction <maximumf>, %105, %cst_43 [2] : vector<2x24x24xf32> to vector<2x24xf32>
    %107 = vector.shape_cast %106 : vector<2x24xf32> to vector<2x24x1xf32>
    %108 = vector.broadcast %107 : vector<2x24x1xf32> to vector<2x24x24xf32>
    %109 = arith.subf %105, %108 : vector<2x24x24xf32>
    %110 = math.exp %109 : vector<2x24x24xf32>
    %cst_44 = arith.constant dense<0.000000e+00> : vector<2x24xf32>
    %111 = vector.multi_reduction <add>, %110, %cst_44 [2] : vector<2x24x24xf32> to vector<2x24xf32>
    %112 = vector.shape_cast %111 : vector<2x24xf32> to vector<2x24x1xf32>
    %113 = tpu.reciprocal %112 {approx = true} : vector<2x24x1xf32> -> vector<2x24x1xf32>
    %114 = vector.broadcast %113 : vector<2x24x1xf32> to vector<2x24x24xf32>
    %115 = arith.mulf %110, %114 : vector<2x24x24xf32>
    %116 = vector.extract_strided_slice %49 {offsets = [0, 0, 32], sizes = [2, 24, 16], strides = [1, 1, 1]} : vector<2x24x64xf32> to vector<2x24x16xf32>
    "tpu.trace_start"() <{level = 10 : i32, message = "bnm,bmd->bnd"}> : () -> ()
    %cst_45 = arith.constant dense<0.000000e+00> : vector<2x24x16xf32>
    %117 = tpu.matmul %115, %116, %cst_45 {dimension_numbers = #tpu.dot_dimension_numbers<[2], [1], [1], [2], [0, 0, 0, 1, 1, 2], [0], [0]>} : vector<2x24x24xf32>, vector<2x24x16xf32>, vector<2x24x16xf32> -> vector<2x24x16xf32>
    "tpu.trace_stop"() : () -> ()
    %118 = vector.shape_cast %117 : vector<2x24x16xf32> to vector<48x16xf32>
    %119 = vector.extract_strided_slice %51 {offsets = [32, 0], sizes = [16, 64], strides = [1, 1]} : vector<64x64xf32> to vector<16x64xf32>
    %cst_46 = arith.constant dense<0.000000e+00> : vector<48x64xf32>
    %120 = tpu.matmul %118, %119, %cst_46 {dimension_numbers = #tpu.dot_dimension_numbers<[1], [0], [0], [1], [0, 0, 1, 1], [], []>} : vector<48x16xf32>, vector<16x64xf32>, vector<48x64xf32> -> vector<48x64xf32>
    %121 = arith.addf %98, %120 : vector<48x64xf32>
    %122 = vector.extract_strided_slice %45 {offsets = [0, 0, 48], sizes = [2, 24, 16], strides = [1, 1, 1]} : vector<2x24x64xf32> to vector<2x24x16xf32>
    %123 = vector.extract_strided_slice %47 {offsets = [0, 0, 48], sizes = [2, 24, 16], strides = [1, 1, 1]} : vector<2x24x64xf32> to vector<2x24x16xf32>
    "tpu.trace_start"() <{level = 10 : i32, message = "bnd,bmd->bnm"}> : () -> ()
    %cst_47 = arith.constant dense<0.000000e+00> : vector<2x24x24xf32>
    %124 = tpu.matmul %122, %123, %cst_47 {dimension_numbers = #tpu.dot_dimension_numbers<[2], [2], [1], [1], [0, 0, 0, 1, 1, 1], [0], [0]>} : vector<2x24x16xf32>, vector<2x24x16xf32>, vector<2x24x24xf32> -> vector<2x24x24xf32>
    "tpu.trace_stop"() : () -> ()
    %cst_48 = arith.constant 2.500000e-01 : f32
    %125 = vector.broadcast %cst_48 : f32 to vector<2x24x24xf32>
    %126 = arith.mulf %124, %125 : vector<2x24x24xf32>
    %127 = vector.broadcast %10 : vector<1x1x24xf32> to vector<2x24x24xf32>
    %128 = arith.addf %126, %127 : vector<2x24x24xf32>
    %cst_49 = arith.constant dense<0xFF800000> : vector<2x24xf32>
    %129 = vector.multi_reduction <maximumf>, %128, %cst_49 [2] : vector<2x24x24xf32> to vector<2x24xf32>
    %130 = vector.shape_cast %129 : vector<2x24xf32> to vector<2x24x1xf32>
    %131 = vector.broadcast %130 : vector<2x24x1xf32> to vector<2x24x24xf32>
    %132 = arith.subf %128, %131 : vector<2x24x24xf32>
    %133 = math.exp %132 : vector<2x24x24xf32>
    %cst_50 = arith.constant dense<0.000000e+00> : vector<2x24xf32>
    %134 = vector.multi_reduction <add>, %133, %cst_50 [2] : vector<2x24x24xf32> to vector<2x24xf32>
    %135 = vector.shape_cast %134 : vector<2x24xf32> to vector<2x24x1xf32>
    %136 = tpu.reciprocal %135 {approx = true} : vector<2x24x1xf32> -> vector<2x24x1xf32>
    %137 = vector.broadcast %136 : vector<2x24x1xf32> to vector<2x24x24xf32>
    %138 = arith.mulf %133, %137 : vector<2x24x24xf32>
    %139 = vector.extract_strided_slice %49 {offsets = [0, 0, 48], sizes = [2, 24, 16], strides = [1, 1, 1]} : vector<2x24x64xf32> to vector<2x24x16xf32>
    "tpu.trace_start"() <{level = 10 : i32, message = "bnm,bmd->bnd"}> : () -> ()
    %cst_51 = arith.constant dense<0.000000e+00> : vector<2x24x16xf32>
    %140 = tpu.matmul %138, %139, %cst_51 {dimension_numbers = #tpu.dot_dimension_numbers<[2], [1], [1], [2], [0, 0, 0, 1, 1, 2], [0], [0]>} : vector<2x24x24xf32>, vector<2x24x16xf32>, vector<2x24x16xf32> -> vector<2x24x16xf32>
    "tpu.trace_stop"() : () -> ()
    %141 = vector.shape_cast %140 : vector<2x24x16xf32> to vector<48x16xf32>
    %142 = vector.extract_strided_slice %51 {offsets = [48, 0], sizes = [16, 64], strides = [1, 1]} : vector<64x64xf32> to vector<16x64xf32>
    %cst_52 = arith.constant dense<0.000000e+00> : vector<48x64xf32>
    %143 = tpu.matmul %141, %142, %cst_52 {dimension_numbers = #tpu.dot_dimension_numbers<[1], [0], [0], [1], [0, 0, 1, 1], [], []>} : vector<48x16xf32>, vector<16x64xf32>, vector<48x64xf32> -> vector<48x64xf32>
    %144 = arith.addf %121, %143 : vector<48x64xf32>
    %145 = arith.addf %4, %144 : vector<48x64xf32>
    %c0_53 = arith.constant 0 : index
    %c0_54 = arith.constant 0 : index
    %c0_55 = arith.constant 0 : index
    %146 = vector.load %arg8[%c0_53, %c0_54, %c0_55] : memref<2x1x64xf32, #tpu.memory_space<vmem>>, vector<1x1x64xf32>
    %147 = vector.shape_cast %146 : vector<1x1x64xf32> to vector<1x64xf32>
    %148 = vector.broadcast %147 : vector<1x64xf32> to vector<48x64xf32>
    %149 = arith.addf %145, %148 : vector<48x64xf32>
    %150 = vector.extract_strided_slice %14 {offsets = [0, 0], sizes = [1, 64], strides = [1, 1]} : vector<2x64xf32> to vector<1x64xf32>
    %151 = vector.extract_strided_slice %14 {offsets = [1, 0], sizes = [1, 64], strides = [1, 1]} : vector<2x64xf32> to vector<1x64xf32>
    %cst_56 = arith.constant dense<0.000000e+00> : vector<48xf32>
    %152 = vector.multi_reduction <add>, %149, %cst_56 [1] : vector<48x64xf32> to vector<48xf32>
    %153 = vector.shape_cast %152 : vector<48xf32> to vector<48x1xf32>
    %cst_57 = arith.constant 6.400000e+01 : f32
    %154 = vector.broadcast %cst_57 : f32 to vector<48x1xf32>
    %155 = arith.divf %153, %154 : vector<48x1xf32>
    %156 = vector.broadcast %155 : vector<48x1xf32> to vector<48x64xf32>
    %157 = arith.subf %149, %156 : vector<48x64xf32>
    %158 = arith.mulf %157, %157 : vector<48x64xf32>
    %cst_58 = arith.constant dense<0.000000e+00> : vector<48xf32>
    %159 = vector.multi_reduction <add>, %158, %cst_58 [1] : vector<48x64xf32> to vector<48xf32>
    %160 = vector.shape_cast %159 : vector<48xf32> to vector<48x1xf32>
    %cst_59 = arith.constant 6.400000e+01 : f32
    %161 = vector.broadcast %cst_59 : f32 to vector<48x1xf32>
    %162 = arith.divf %160, %161 : vector<48x1xf32>
    %cst_60 = arith.constant 9.99999997E-7 : f32
    %163 = vector.broadcast %cst_60 : f32 to vector<48x1xf32>
    %164 = arith.addf %162, %163 : vector<48x1xf32>
    %165 = math.rsqrt %164 : vector<48x1xf32>
    %166 = vector.broadcast %165 : vector<48x1xf32> to vector<48x64xf32>
    %167 = arith.mulf %157, %166 : vector<48x64xf32>
    %168 = vector.broadcast %150 : vector<1x64xf32> to vector<48x64xf32>
    %169 = arith.mulf %167, %168 : vector<48x64xf32>
    %170 = vector.broadcast %151 : vector<1x64xf32> to vector<48x64xf32>
    %171 = arith.addf %169, %170 : vector<48x64xf32>
    %c0_61 = arith.constant 0 : index
    %c0_62 = arith.constant 0 : index
    %c0_63 = arith.constant 0 : index
    %172 = vector.load %arg10[%c0_61, %c0_62, %c0_63] : memref<2x64x256xf32, #tpu.memory_space<vmem>>, vector<1x64x256xf32>
    %173 = vector.shape_cast %172 : vector<1x64x256xf32> to vector<64x256xf32>
    %cst_64 = arith.constant dense<0.000000e+00> : vector<48x256xf32>
    %174 = tpu.matmul %171, %173, %cst_64 {dimension_numbers = #tpu.dot_dimension_numbers<[1], [0], [0], [1], [0, 0, 1, 1], [], []>} : vector<48x64xf32>, vector<64x256xf32>, vector<48x256xf32> -> vector<48x256xf32>
    %c0_65 = arith.constant 0 : index
    %c0_66 = arith.constant 0 : index
    %c0_67 = arith.constant 0 : index
    %175 = vector.load %arg11[%c0_65, %c0_66, %c0_67] : memref<2x1x256xf32, #tpu.memory_space<vmem>>, vector<1x1x256xf32>
    %176 = vector.shape_cast %175 : vector<1x1x256xf32> to vector<1x256xf32>
    %177 = vector.broadcast %176 : vector<1x256xf32> to vector<48x256xf32>
    %178 = arith.addf %174, %177 : vector<48x256xf32>
    %cst_68 = arith.constant 5.000000e-01 : f32
    %179 = vector.broadcast %cst_68 : f32 to vector<48x256xf32>
    %180 = arith.mulf %179, %178 : vector<48x256xf32>
    %cst_69 = arith.constant 4.471500e-02 : f32
    %181 = vector.broadcast %cst_69 : f32 to vector<48x256xf32>
    %182 = arith.mulf %181, %178 : vector<48x256xf32>
    %183 = arith.mulf %182, %178 : vector<48x256xf32>
    %184 = arith.mulf %183, %178 : vector<48x256xf32>
    %185 = arith.addf %178, %184 : vector<48x256xf32>
    %cst_70 = arith.constant 0.797884583 : f32
    %186 = vector.broadcast %cst_70 : f32 to vector<48x256xf32>
    %187 = arith.mulf %186, %185 : vector<48x256xf32>
    %188 = math.tanh %187 : vector<48x256xf32>
    %cst_71 = arith.constant 1.000000e+00 : f32
    %189 = vector.broadcast %cst_71 : f32 to vector<48x256xf32>
    %190 = arith.addf %189, %188 : vector<48x256xf32>
    %191 = arith.mulf %180, %190 : vector<48x256xf32>
    %c0_72 = arith.constant 0 : index
    %c0_73 = arith.constant 0 : index
    %c0_74 = arith.constant 0 : index
    %192 = vector.load %arg12[%c0_72, %c0_73, %c0_74] : memref<2x256x64xf32, #tpu.memory_space<vmem>>, vector<1x256x64xf32>
    %193 = vector.shape_cast %192 : vector<1x256x64xf32> to vector<256x64xf32>
    %cst_75 = arith.constant dense<0.000000e+00> : vector<48x64xf32>
    %194 = tpu.matmul %191, %193, %cst_75 {dimension_numbers = #tpu.dot_dimension_numbers<[1], [0], [0], [1], [0, 0, 1, 1], [], []>} : vector<48x256xf32>, vector<256x64xf32>, vector<48x64xf32> -> vector<48x64xf32>
    %195 = arith.addf %149, %194 : vector<48x64xf32>
    %c0_76 = arith.constant 0 : index
    %c0_77 = arith.constant 0 : index
    %c0_78 = arith.constant 0 : index
    %196 = vector.load %arg13[%c0_76, %c0_77, %c0_78] : memref<2x1x64xf32, #tpu.memory_space<vmem>>, vector<1x1x64xf32>
    %197 = vector.shape_cast %196 : vector<1x1x64xf32> to vector<1x64xf32>
    %198 = vector.broadcast %197 : vector<1x64xf32> to vector<48x64xf32>
    %199 = arith.addf %195, %198 : vector<48x64xf32>
    %c1 = arith.constant 1 : index
    %c0_79 = arith.constant 0 : index
    %c0_80 = arith.constant 0 : index
    %200 = vector.load %arg4[%c1, %c0_79, %c0_80] : memref<2x2x64xf32, #tpu.memory_space<vmem>>, vector<1x2x64xf32>
    %201 = vector.shape_cast %200 : vector<1x2x64xf32> to vector<2x64xf32>
    %c1_81 = arith.constant 1 : index
    %c0_82 = arith.constant 0 : index
    %c0_83 = arith.constant 0 : index
    %202 = vector.load %arg9[%c1_81, %c0_82, %c0_83] : memref<2x2x64xf32, #tpu.memory_space<vmem>>, vector<1x2x64xf32>
    %203 = vector.shape_cast %202 : vector<1x2x64xf32> to vector<2x64xf32>
    %204 = vector.extract_strided_slice %201 {offsets = [0, 0], sizes = [1, 64], strides = [1, 1]} : vector<2x64xf32> to vector<1x64xf32>
    %205 = vector.extract_strided_slice %201 {offsets = [1, 0], sizes = [1, 64], strides = [1, 1]} : vector<2x64xf32> to vector<1x64xf32>
    %cst_84 = arith.constant dense<0.000000e+00> : vector<48xf32>
    %206 = vector.multi_reduction <add>, %199, %cst_84 [1] : vector<48x64xf32> to vector<48xf32>
    %207 = vector.shape_cast %206 : vector<48xf32> to vector<48x1xf32>
    %cst_85 = arith.constant 6.400000e+01 : f32
    %208 = vector.broadcast %cst_85 : f32 to vector<48x1xf32>
    %209 = arith.divf %207, %208 : vector<48x1xf32>
    %210 = vector.broadcast %209 : vector<48x1xf32> to vector<48x64xf32>
    %211 = arith.subf %199, %210 : vector<48x64xf32>
    %212 = arith.mulf %211, %211 : vector<48x64xf32>
    %cst_86 = arith.constant dense<0.000000e+00> : vector<48xf32>
    %213 = vector.multi_reduction <add>, %212, %cst_86 [1] : vector<48x64xf32> to vector<48xf32>
    %214 = vector.shape_cast %213 : vector<48xf32> to vector<48x1xf32>
    %cst_87 = arith.constant 6.400000e+01 : f32
    %215 = vector.broadcast %cst_87 : f32 to vector<48x1xf32>
    %216 = arith.divf %214, %215 : vector<48x1xf32>
    %cst_88 = arith.constant 9.99999997E-7 : f32
    %217 = vector.broadcast %cst_88 : f32 to vector<48x1xf32>
    %218 = arith.addf %216, %217 : vector<48x1xf32>
    %219 = math.rsqrt %218 : vector<48x1xf32>
    %220 = vector.broadcast %219 : vector<48x1xf32> to vector<48x64xf32>
    %221 = arith.mulf %211, %220 : vector<48x64xf32>
    %222 = vector.broadcast %204 : vector<1x64xf32> to vector<48x64xf32>
    %223 = arith.mulf %221, %222 : vector<48x64xf32>
    %224 = vector.broadcast %205 : vector<1x64xf32> to vector<48x64xf32>
    %225 = arith.addf %223, %224 : vector<48x64xf32>
    %c1_89 = arith.constant 1 : index
    %c0_90 = arith.constant 0 : index
    %c0_91 = arith.constant 0 : index
    %226 = vector.load %arg5[%c1_89, %c0_90, %c0_91] : memref<2x64x192xf32, #tpu.memory_space<vmem>>, vector<1x64x192xf32>
    %227 = vector.shape_cast %226 : vector<1x64x192xf32> to vector<64x192xf32>
    %cst_92 = arith.constant dense<0.000000e+00> : vector<48x192xf32>
    %228 = tpu.matmul %225, %227, %cst_92 {dimension_numbers = #tpu.dot_dimension_numbers<[1], [0], [0], [1], [0, 0, 1, 1], [], []>} : vector<48x64xf32>, vector<64x192xf32>, vector<48x192xf32> -> vector<48x192xf32>
    %c1_93 = arith.constant 1 : index
    %c0_94 = arith.constant 0 : index
    %c0_95 = arith.constant 0 : index
    %229 = vector.load %arg6[%c1_93, %c0_94, %c0_95] : memref<2x1x192xf32, #tpu.memory_space<vmem>>, vector<1x1x192xf32>
    %230 = vector.shape_cast %229 : vector<1x1x192xf32> to vector<1x192xf32>
    %231 = vector.broadcast %230 : vector<1x192xf32> to vector<48x192xf32>
    %232 = arith.addf %228, %231 : vector<48x192xf32>
    %233 = vector.extract_strided_slice %232 {offsets = [0, 0], sizes = [48, 64], strides = [1, 1]} : vector<48x192xf32> to vector<48x64xf32>
    %234 = vector.shape_cast %233 : vector<48x64xf32> to vector<2x24x64xf32>
    %235 = vector.extract_strided_slice %232 {offsets = [0, 64], sizes = [48, 64], strides = [1, 1]} : vector<48x192xf32> to vector<48x64xf32>
    %236 = vector.shape_cast %235 : vector<48x64xf32> to vector<2x24x64xf32>
    %237 = vector.extract_strided_slice %232 {offsets = [0, 128], sizes = [48, 64], strides = [1, 1]} : vector<48x192xf32> to vector<48x64xf32>
    %238 = vector.shape_cast %237 : vector<48x64xf32> to vector<2x24x64xf32>
    %c1_96 = arith.constant 1 : index
    %c0_97 = arith.constant 0 : index
    %c0_98 = arith.constant 0 : index
    %239 = vector.load %arg7[%c1_96, %c0_97, %c0_98] : memref<2x64x64xf32, #tpu.memory_space<vmem>>, vector<1x64x64xf32>
    %240 = vector.shape_cast %239 : vector<1x64x64xf32> to vector<64x64xf32>
    %cst_99 = arith.constant 0.000000e+00 : f32
    %241 = vector.broadcast %cst_99 : f32 to vector<48x64xf32>
    %242 = vector.extract_strided_slice %234 {offsets = [0, 0, 0], sizes = [2, 24, 16], strides = [1, 1, 1]} : vector<2x24x64xf32> to vector<2x24x16xf32>
    %243 = vector.extract_strided_slice %236 {offsets = [0, 0, 0], sizes = [2, 24, 16], strides = [1, 1, 1]} : vector<2x24x64xf32> to vector<2x24x16xf32>
    "tpu.trace_start"() <{level = 10 : i32, message = "bnd,bmd->bnm"}> : () -> ()
    %cst_100 = arith.constant dense<0.000000e+00> : vector<2x24x24xf32>
    %244 = tpu.matmul %242, %243, %cst_100 {dimension_numbers = #tpu.dot_dimension_numbers<[2], [2], [1], [1], [0, 0, 0, 1, 1, 1], [0], [0]>} : vector<2x24x16xf32>, vector<2x24x16xf32>, vector<2x24x24xf32> -> vector<2x24x24xf32>
    "tpu.trace_stop"() : () -> ()
    %cst_101 = arith.constant 2.500000e-01 : f32
    %245 = vector.broadcast %cst_101 : f32 to vector<2x24x24xf32>
    %246 = arith.mulf %244, %245 : vector<2x24x24xf32>
    %247 = vector.broadcast %10 : vector<1x1x24xf32> to vector<2x24x24xf32>
    %248 = arith.addf %246, %247 : vector<2x24x24xf32>
    %cst_102 = arith.constant dense<0xFF800000> : vector<2x24xf32>
    %249 = vector.multi_reduction <maximumf>, %248, %cst_102 [2] : vector<2x24x24xf32> to vector<2x24xf32>
    %250 = vector.shape_cast %249 : vector<2x24xf32> to vector<2x24x1xf32>
    %251 = vector.broadcast %250 : vector<2x24x1xf32> to vector<2x24x24xf32>
    %252 = arith.subf %248, %251 : vector<2x24x24xf32>
    %253 = math.exp %252 : vector<2x24x24xf32>
    %cst_103 = arith.constant dense<0.000000e+00> : vector<2x24xf32>
    %254 = vector.multi_reduction <add>, %253, %cst_103 [2] : vector<2x24x24xf32> to vector<2x24xf32>
    %255 = vector.shape_cast %254 : vector<2x24xf32> to vector<2x24x1xf32>
    %256 = tpu.reciprocal %255 {approx = true} : vector<2x24x1xf32> -> vector<2x24x1xf32>
    %257 = vector.broadcast %256 : vector<2x24x1xf32> to vector<2x24x24xf32>
    %258 = arith.mulf %253, %257 : vector<2x24x24xf32>
    %259 = vector.extract_strided_slice %238 {offsets = [0, 0, 0], sizes = [2, 24, 16], strides = [1, 1, 1]} : vector<2x24x64xf32> to vector<2x24x16xf32>
    "tpu.trace_start"() <{level = 10 : i32, message = "bnm,bmd->bnd"}> : () -> ()
    %cst_104 = arith.constant dense<0.000000e+00> : vector<2x24x16xf32>
    %260 = tpu.matmul %258, %259, %cst_104 {dimension_numbers = #tpu.dot_dimension_numbers<[2], [1], [1], [2], [0, 0, 0, 1, 1, 2], [0], [0]>} : vector<2x24x24xf32>, vector<2x24x16xf32>, vector<2x24x16xf32> -> vector<2x24x16xf32>
    "tpu.trace_stop"() : () -> ()
    %261 = vector.shape_cast %260 : vector<2x24x16xf32> to vector<48x16xf32>
    %262 = vector.extract_strided_slice %240 {offsets = [0, 0], sizes = [16, 64], strides = [1, 1]} : vector<64x64xf32> to vector<16x64xf32>
    %cst_105 = arith.constant dense<0.000000e+00> : vector<48x64xf32>
    %263 = tpu.matmul %261, %262, %cst_105 {dimension_numbers = #tpu.dot_dimension_numbers<[1], [0], [0], [1], [0, 0, 1, 1], [], []>} : vector<48x16xf32>, vector<16x64xf32>, vector<48x64xf32> -> vector<48x64xf32>
    %264 = arith.addf %241, %263 : vector<48x64xf32>
    %265 = vector.extract_strided_slice %234 {offsets = [0, 0, 16], sizes = [2, 24, 16], strides = [1, 1, 1]} : vector<2x24x64xf32> to vector<2x24x16xf32>
    %266 = vector.extract_strided_slice %236 {offsets = [0, 0, 16], sizes = [2, 24, 16], strides = [1, 1, 1]} : vector<2x24x64xf32> to vector<2x24x16xf32>
    "tpu.trace_start"() <{level = 10 : i32, message = "bnd,bmd->bnm"}> : () -> ()
    %cst_106 = arith.constant dense<0.000000e+00> : vector<2x24x24xf32>
    %267 = tpu.matmul %265, %266, %cst_106 {dimension_numbers = #tpu.dot_dimension_numbers<[2], [2], [1], [1], [0, 0, 0, 1, 1, 1], [0], [0]>} : vector<2x24x16xf32>, vector<2x24x16xf32>, vector<2x24x24xf32> -> vector<2x24x24xf32>
    "tpu.trace_stop"() : () -> ()
    %cst_107 = arith.constant 2.500000e-01 : f32
    %268 = vector.broadcast %cst_107 : f32 to vector<2x24x24xf32>
    %269 = arith.mulf %267, %268 : vector<2x24x24xf32>
    %270 = vector.broadcast %10 : vector<1x1x24xf32> to vector<2x24x24xf32>
    %271 = arith.addf %269, %270 : vector<2x24x24xf32>
    %cst_108 = arith.constant dense<0xFF800000> : vector<2x24xf32>
    %272 = vector.multi_reduction <maximumf>, %271, %cst_108 [2] : vector<2x24x24xf32> to vector<2x24xf32>
    %273 = vector.shape_cast %272 : vector<2x24xf32> to vector<2x24x1xf32>
    %274 = vector.broadcast %273 : vector<2x24x1xf32> to vector<2x24x24xf32>
    %275 = arith.subf %271, %274 : vector<2x24x24xf32>
    %276 = math.exp %275 : vector<2x24x24xf32>
    %cst_109 = arith.constant dense<0.000000e+00> : vector<2x24xf32>
    %277 = vector.multi_reduction <add>, %276, %cst_109 [2] : vector<2x24x24xf32> to vector<2x24xf32>
    %278 = vector.shape_cast %277 : vector<2x24xf32> to vector<2x24x1xf32>
    %279 = tpu.reciprocal %278 {approx = true} : vector<2x24x1xf32> -> vector<2x24x1xf32>
    %280 = vector.broadcast %279 : vector<2x24x1xf32> to vector<2x24x24xf32>
    %281 = arith.mulf %276, %280 : vector<2x24x24xf32>
    %282 = vector.extract_strided_slice %238 {offsets = [0, 0, 16], sizes = [2, 24, 16], strides = [1, 1, 1]} : vector<2x24x64xf32> to vector<2x24x16xf32>
    "tpu.trace_start"() <{level = 10 : i32, message = "bnm,bmd->bnd"}> : () -> ()
    %cst_110 = arith.constant dense<0.000000e+00> : vector<2x24x16xf32>
    %283 = tpu.matmul %281, %282, %cst_110 {dimension_numbers = #tpu.dot_dimension_numbers<[2], [1], [1], [2], [0, 0, 0, 1, 1, 2], [0], [0]>} : vector<2x24x24xf32>, vector<2x24x16xf32>, vector<2x24x16xf32> -> vector<2x24x16xf32>
    "tpu.trace_stop"() : () -> ()
    %284 = vector.shape_cast %283 : vector<2x24x16xf32> to vector<48x16xf32>
    %285 = vector.extract_strided_slice %240 {offsets = [16, 0], sizes = [16, 64], strides = [1, 1]} : vector<64x64xf32> to vector<16x64xf32>
    %cst_111 = arith.constant dense<0.000000e+00> : vector<48x64xf32>
    %286 = tpu.matmul %284, %285, %cst_111 {dimension_numbers = #tpu.dot_dimension_numbers<[1], [0], [0], [1], [0, 0, 1, 1], [], []>} : vector<48x16xf32>, vector<16x64xf32>, vector<48x64xf32> -> vector<48x64xf32>
    %287 = arith.addf %264, %286 : vector<48x64xf32>
    %288 = vector.extract_strided_slice %234 {offsets = [0, 0, 32], sizes = [2, 24, 16], strides = [1, 1, 1]} : vector<2x24x64xf32> to vector<2x24x16xf32>
    %289 = vector.extract_strided_slice %236 {offsets = [0, 0, 32], sizes = [2, 24, 16], strides = [1, 1, 1]} : vector<2x24x64xf32> to vector<2x24x16xf32>
    "tpu.trace_start"() <{level = 10 : i32, message = "bnd,bmd->bnm"}> : () -> ()
    %cst_112 = arith.constant dense<0.000000e+00> : vector<2x24x24xf32>
    %290 = tpu.matmul %288, %289, %cst_112 {dimension_numbers = #tpu.dot_dimension_numbers<[2], [2], [1], [1], [0, 0, 0, 1, 1, 1], [0], [0]>} : vector<2x24x16xf32>, vector<2x24x16xf32>, vector<2x24x24xf32> -> vector<2x24x24xf32>
    "tpu.trace_stop"() : () -> ()
    %cst_113 = arith.constant 2.500000e-01 : f32
    %291 = vector.broadcast %cst_113 : f32 to vector<2x24x24xf32>
    %292 = arith.mulf %290, %291 : vector<2x24x24xf32>
    %293 = vector.broadcast %10 : vector<1x1x24xf32> to vector<2x24x24xf32>
    %294 = arith.addf %292, %293 : vector<2x24x24xf32>
    %cst_114 = arith.constant dense<0xFF800000> : vector<2x24xf32>
    %295 = vector.multi_reduction <maximumf>, %294, %cst_114 [2] : vector<2x24x24xf32> to vector<2x24xf32>
    %296 = vector.shape_cast %295 : vector<2x24xf32> to vector<2x24x1xf32>
    %297 = vector.broadcast %296 : vector<2x24x1xf32> to vector<2x24x24xf32>
    %298 = arith.subf %294, %297 : vector<2x24x24xf32>
    %299 = math.exp %298 : vector<2x24x24xf32>
    %cst_115 = arith.constant dense<0.000000e+00> : vector<2x24xf32>
    %300 = vector.multi_reduction <add>, %299, %cst_115 [2] : vector<2x24x24xf32> to vector<2x24xf32>
    %301 = vector.shape_cast %300 : vector<2x24xf32> to vector<2x24x1xf32>
    %302 = tpu.reciprocal %301 {approx = true} : vector<2x24x1xf32> -> vector<2x24x1xf32>
    %303 = vector.broadcast %302 : vector<2x24x1xf32> to vector<2x24x24xf32>
    %304 = arith.mulf %299, %303 : vector<2x24x24xf32>
    %305 = vector.extract_strided_slice %238 {offsets = [0, 0, 32], sizes = [2, 24, 16], strides = [1, 1, 1]} : vector<2x24x64xf32> to vector<2x24x16xf32>
    "tpu.trace_start"() <{level = 10 : i32, message = "bnm,bmd->bnd"}> : () -> ()
    %cst_116 = arith.constant dense<0.000000e+00> : vector<2x24x16xf32>
    %306 = tpu.matmul %304, %305, %cst_116 {dimension_numbers = #tpu.dot_dimension_numbers<[2], [1], [1], [2], [0, 0, 0, 1, 1, 2], [0], [0]>} : vector<2x24x24xf32>, vector<2x24x16xf32>, vector<2x24x16xf32> -> vector<2x24x16xf32>
    "tpu.trace_stop"() : () -> ()
    %307 = vector.shape_cast %306 : vector<2x24x16xf32> to vector<48x16xf32>
    %308 = vector.extract_strided_slice %240 {offsets = [32, 0], sizes = [16, 64], strides = [1, 1]} : vector<64x64xf32> to vector<16x64xf32>
    %cst_117 = arith.constant dense<0.000000e+00> : vector<48x64xf32>
    %309 = tpu.matmul %307, %308, %cst_117 {dimension_numbers = #tpu.dot_dimension_numbers<[1], [0], [0], [1], [0, 0, 1, 1], [], []>} : vector<48x16xf32>, vector<16x64xf32>, vector<48x64xf32> -> vector<48x64xf32>
    %310 = arith.addf %287, %309 : vector<48x64xf32>
    %311 = vector.extract_strided_slice %234 {offsets = [0, 0, 48], sizes = [2, 24, 16], strides = [1, 1, 1]} : vector<2x24x64xf32> to vector<2x24x16xf32>
    %312 = vector.extract_strided_slice %236 {offsets = [0, 0, 48], sizes = [2, 24, 16], strides = [1, 1, 1]} : vector<2x24x64xf32> to vector<2x24x16xf32>
    "tpu.trace_start"() <{level = 10 : i32, message = "bnd,bmd->bnm"}> : () -> ()
    %cst_118 = arith.constant dense<0.000000e+00> : vector<2x24x24xf32>
    %313 = tpu.matmul %311, %312, %cst_118 {dimension_numbers = #tpu.dot_dimension_numbers<[2], [2], [1], [1], [0, 0, 0, 1, 1, 1], [0], [0]>} : vector<2x24x16xf32>, vector<2x24x16xf32>, vector<2x24x24xf32> -> vector<2x24x24xf32>
    "tpu.trace_stop"() : () -> ()
    %cst_119 = arith.constant 2.500000e-01 : f32
    %314 = vector.broadcast %cst_119 : f32 to vector<2x24x24xf32>
    %315 = arith.mulf %313, %314 : vector<2x24x24xf32>
    %316 = vector.broadcast %10 : vector<1x1x24xf32> to vector<2x24x24xf32>
    %317 = arith.addf %315, %316 : vector<2x24x24xf32>
    %cst_120 = arith.constant dense<0xFF800000> : vector<2x24xf32>
    %318 = vector.multi_reduction <maximumf>, %317, %cst_120 [2] : vector<2x24x24xf32> to vector<2x24xf32>
    %319 = vector.shape_cast %318 : vector<2x24xf32> to vector<2x24x1xf32>
    %320 = vector.broadcast %319 : vector<2x24x1xf32> to vector<2x24x24xf32>
    %321 = arith.subf %317, %320 : vector<2x24x24xf32>
    %322 = math.exp %321 : vector<2x24x24xf32>
    %cst_121 = arith.constant dense<0.000000e+00> : vector<2x24xf32>
    %323 = vector.multi_reduction <add>, %322, %cst_121 [2] : vector<2x24x24xf32> to vector<2x24xf32>
    %324 = vector.shape_cast %323 : vector<2x24xf32> to vector<2x24x1xf32>
    %325 = tpu.reciprocal %324 {approx = true} : vector<2x24x1xf32> -> vector<2x24x1xf32>
    %326 = vector.broadcast %325 : vector<2x24x1xf32> to vector<2x24x24xf32>
    %327 = arith.mulf %322, %326 : vector<2x24x24xf32>
    %328 = vector.extract_strided_slice %238 {offsets = [0, 0, 48], sizes = [2, 24, 16], strides = [1, 1, 1]} : vector<2x24x64xf32> to vector<2x24x16xf32>
    "tpu.trace_start"() <{level = 10 : i32, message = "bnm,bmd->bnd"}> : () -> ()
    %cst_122 = arith.constant dense<0.000000e+00> : vector<2x24x16xf32>
    %329 = tpu.matmul %327, %328, %cst_122 {dimension_numbers = #tpu.dot_dimension_numbers<[2], [1], [1], [2], [0, 0, 0, 1, 1, 2], [0], [0]>} : vector<2x24x24xf32>, vector<2x24x16xf32>, vector<2x24x16xf32> -> vector<2x24x16xf32>
    "tpu.trace_stop"() : () -> ()
    %330 = vector.shape_cast %329 : vector<2x24x16xf32> to vector<48x16xf32>
    %331 = vector.extract_strided_slice %240 {offsets = [48, 0], sizes = [16, 64], strides = [1, 1]} : vector<64x64xf32> to vector<16x64xf32>
    %cst_123 = arith.constant dense<0.000000e+00> : vector<48x64xf32>
    %332 = tpu.matmul %330, %331, %cst_123 {dimension_numbers = #tpu.dot_dimension_numbers<[1], [0], [0], [1], [0, 0, 1, 1], [], []>} : vector<48x16xf32>, vector<16x64xf32>, vector<48x64xf32> -> vector<48x64xf32>
    %333 = arith.addf %310, %332 : vector<48x64xf32>
    %334 = arith.addf %199, %333 : vector<48x64xf32>
    %c1_124 = arith.constant 1 : index
    %c0_125 = arith.constant 0 : index
    %c0_126 = arith.constant 0 : index
    %335 = vector.load %arg8[%c1_124, %c0_125, %c0_126] : memref<2x1x64xf32, #tpu.memory_space<vmem>>, vector<1x1x64xf32>
    %336 = vector.shape_cast %335 : vector<1x1x64xf32> to vector<1x64xf32>
    %337 = vector.broadcast %336 : vector<1x64xf32> to vector<48x64xf32>
    %338 = arith.addf %334, %337 : vector<48x64xf32>
    %339 = vector.extract_strided_slice %203 {offsets = [0, 0], sizes = [1, 64], strides = [1, 1]} : vector<2x64xf32> to vector<1x64xf32>
    %340 = vector.extract_strided_slice %203 {offsets = [1, 0], sizes = [1, 64], strides = [1, 1]} : vector<2x64xf32> to vector<1x64xf32>
    %cst_127 = arith.constant dense<0.000000e+00> : vector<48xf32>
    %341 = vector.multi_reduction <add>, %338, %cst_127 [1] : vector<48x64xf32> to vector<48xf32>
    %342 = vector.shape_cast %341 : vector<48xf32> to vector<48x1xf32>
    %cst_128 = arith.constant 6.400000e+01 : f32
    %343 = vector.broadcast %cst_128 : f32 to vector<48x1xf32>
    %344 = arith.divf %342, %343 : vector<48x1xf32>
    %345 = vector.broadcast %344 : vector<48x1xf32> to vector<48x64xf32>
    %346 = arith.subf %338, %345 : vector<48x64xf32>
    %347 = arith.mulf %346, %346 : vector<48x64xf32>
    %cst_129 = arith.constant dense<0.000000e+00> : vector<48xf32>
    %348 = vector.multi_reduction <add>, %347, %cst_129 [1] : vector<48x64xf32> to vector<48xf32>
    %349 = vector.shape_cast %348 : vector<48xf32> to vector<48x1xf32>
    %cst_130 = arith.constant 6.400000e+01 : f32
    %350 = vector.broadcast %cst_130 : f32 to vector<48x1xf32>
    %351 = arith.divf %349, %350 : vector<48x1xf32>
    %cst_131 = arith.constant 9.99999997E-7 : f32
    %352 = vector.broadcast %cst_131 : f32 to vector<48x1xf32>
    %353 = arith.addf %351, %352 : vector<48x1xf32>
    %354 = math.rsqrt %353 : vector<48x1xf32>
    %355 = vector.broadcast %354 : vector<48x1xf32> to vector<48x64xf32>
    %356 = arith.mulf %346, %355 : vector<48x64xf32>
    %357 = vector.broadcast %339 : vector<1x64xf32> to vector<48x64xf32>
    %358 = arith.mulf %356, %357 : vector<48x64xf32>
    %359 = vector.broadcast %340 : vector<1x64xf32> to vector<48x64xf32>
    %360 = arith.addf %358, %359 : vector<48x64xf32>
    %c1_132 = arith.constant 1 : index
    %c0_133 = arith.constant 0 : index
    %c0_134 = arith.constant 0 : index
    %361 = vector.load %arg10[%c1_132, %c0_133, %c0_134] : memref<2x64x256xf32, #tpu.memory_space<vmem>>, vector<1x64x256xf32>
    %362 = vector.shape_cast %361 : vector<1x64x256xf32> to vector<64x256xf32>
    %cst_135 = arith.constant dense<0.000000e+00> : vector<48x256xf32>
    %363 = tpu.matmul %360, %362, %cst_135 {dimension_numbers = #tpu.dot_dimension_numbers<[1], [0], [0], [1], [0, 0, 1, 1], [], []>} : vector<48x64xf32>, vector<64x256xf32>, vector<48x256xf32> -> vector<48x256xf32>
    %c1_136 = arith.constant 1 : index
    %c0_137 = arith.constant 0 : index
    %c0_138 = arith.constant 0 : index
    %364 = vector.load %arg11[%c1_136, %c0_137, %c0_138] : memref<2x1x256xf32, #tpu.memory_space<vmem>>, vector<1x1x256xf32>
    %365 = vector.shape_cast %364 : vector<1x1x256xf32> to vector<1x256xf32>
    %366 = vector.broadcast %365 : vector<1x256xf32> to vector<48x256xf32>
    %367 = arith.addf %363, %366 : vector<48x256xf32>
    %cst_139 = arith.constant 5.000000e-01 : f32
    %368 = vector.broadcast %cst_139 : f32 to vector<48x256xf32>
    %369 = arith.mulf %368, %367 : vector<48x256xf32>
    %cst_140 = arith.constant 4.471500e-02 : f32
    %370 = vector.broadcast %cst_140 : f32 to vector<48x256xf32>
    %371 = arith.mulf %370, %367 : vector<48x256xf32>
    %372 = arith.mulf %371, %367 : vector<48x256xf32>
    %373 = arith.mulf %372, %367 : vector<48x256xf32>
    %374 = arith.addf %367, %373 : vector<48x256xf32>
    %cst_141 = arith.constant 0.797884583 : f32
    %375 = vector.broadcast %cst_141 : f32 to vector<48x256xf32>
    %376 = arith.mulf %375, %374 : vector<48x256xf32>
    %377 = math.tanh %376 : vector<48x256xf32>
    %cst_142 = arith.constant 1.000000e+00 : f32
    %378 = vector.broadcast %cst_142 : f32 to vector<48x256xf32>
    %379 = arith.addf %378, %377 : vector<48x256xf32>
    %380 = arith.mulf %369, %379 : vector<48x256xf32>
    %c1_143 = arith.constant 1 : index
    %c0_144 = arith.constant 0 : index
    %c0_145 = arith.constant 0 : index
    %381 = vector.load %arg12[%c1_143, %c0_144, %c0_145] : memref<2x256x64xf32, #tpu.memory_space<vmem>>, vector<1x256x64xf32>
    %382 = vector.shape_cast %381 : vector<1x256x64xf32> to vector<256x64xf32>
    %cst_146 = arith.constant dense<0.000000e+00> : vector<48x64xf32>
    %383 = tpu.matmul %380, %382, %cst_146 {dimension_numbers = #tpu.dot_dimension_numbers<[1], [0], [0], [1], [0, 0, 1, 1], [], []>} : vector<48x256xf32>, vector<256x64xf32>, vector<48x64xf32> -> vector<48x64xf32>
    %384 = arith.addf %338, %383 : vector<48x64xf32>
    %c1_147 = arith.constant 1 : index
    %c0_148 = arith.constant 0 : index
    %c0_149 = arith.constant 0 : index
    %385 = vector.load %arg13[%c1_147, %c0_148, %c0_149] : memref<2x1x64xf32, #tpu.memory_space<vmem>>, vector<1x1x64xf32>
    %386 = vector.shape_cast %385 : vector<1x1x64xf32> to vector<1x64xf32>
    %387 = vector.broadcast %386 : vector<1x64xf32> to vector<48x64xf32>
    %388 = arith.addf %384, %387 : vector<48x64xf32>
    %389 = vector.extract_strided_slice %388 {offsets = [16, 0], sizes = [1, 64], strides = [1, 1]} : vector<48x64xf32> to vector<1x64xf32>
    %390 = vector.extract_strided_slice %388 {offsets = [40, 0], sizes = [1, 64], strides = [1, 1]} : vector<48x64xf32> to vector<1x64xf32>
    %391 = tpu.concatenate %389, %390 in 0 : vector<1x64xf32>, vector<1x64xf32> -> vector<2x64xf32>
    %c0_150 = arith.constant 0 : index
    %c0_151 = arith.constant 0 : index
    %392 = vector.load %arg14[%c0_150, %c0_151] : memref<2x64xf32, #tpu.memory_space<vmem>>, vector<1x64xf32>
    %c1_152 = arith.constant 1 : index
    %c0_153 = arith.constant 0 : index
    %393 = vector.load %arg14[%c1_152, %c0_153] : memref<2x64xf32, #tpu.memory_space<vmem>>, vector<1x64xf32>
    %cst_154 = arith.constant dense<0.000000e+00> : vector<2xf32>
    %394 = vector.multi_reduction <add>, %391, %cst_154 [1] : vector<2x64xf32> to vector<2xf32>
    %395 = vector.shape_cast %394 : vector<2xf32> to vector<2x1xf32>
    %cst_155 = arith.constant 6.400000e+01 : f32
    %396 = vector.broadcast %cst_155 : f32 to vector<2x1xf32>
    %397 = arith.divf %395, %396 : vector<2x1xf32>
    %398 = vector.broadcast %397 : vector<2x1xf32> to vector<2x64xf32>
    %399 = arith.subf %391, %398 : vector<2x64xf32>
    %400 = arith.mulf %399, %399 : vector<2x64xf32>
    %cst_156 = arith.constant dense<0.000000e+00> : vector<2xf32>
    %401 = vector.multi_reduction <add>, %400, %cst_156 [1] : vector<2x64xf32> to vector<2xf32>
    %402 = vector.shape_cast %401 : vector<2xf32> to vector<2x1xf32>
    %cst_157 = arith.constant 6.400000e+01 : f32
    %403 = vector.broadcast %cst_157 : f32 to vector<2x1xf32>
    %404 = arith.divf %402, %403 : vector<2x1xf32>
    %cst_158 = arith.constant 9.99999997E-7 : f32
    %405 = vector.broadcast %cst_158 : f32 to vector<2x1xf32>
    %406 = arith.addf %404, %405 : vector<2x1xf32>
    %407 = math.rsqrt %406 : vector<2x1xf32>
    %408 = vector.broadcast %407 : vector<2x1xf32> to vector<2x64xf32>
    %409 = arith.mulf %399, %408 : vector<2x64xf32>
    %410 = vector.broadcast %392 : vector<1x64xf32> to vector<2x64xf32>
    %411 = arith.mulf %409, %410 : vector<2x64xf32>
    %412 = vector.broadcast %393 : vector<1x64xf32> to vector<2x64xf32>
    %413 = arith.addf %411, %412 : vector<2x64xf32>
    %c0_159 = arith.constant 0 : index
    %c0_160 = arith.constant 0 : index
    %414 = vector.load %arg15[%c0_159, %c0_160] : memref<64x10xf32, #tpu.memory_space<vmem>>, vector<64x10xf32>
    %cst_161 = arith.constant dense<0.000000e+00> : vector<2x10xf32>
    %415 = tpu.matmul %413, %414, %cst_161 {dimension_numbers = #tpu.dot_dimension_numbers<[1], [0], [0], [1], [0, 0, 1, 1], [], []>} : vector<2x64xf32>, vector<64x10xf32>, vector<2x10xf32> -> vector<2x10xf32>
    %c0_162 = arith.constant 0 : index
    %c0_163 = arith.constant 0 : index
    %416 = vector.load %arg16[%c0_162, %c0_163] : memref<1x10xf32, #tpu.memory_space<vmem>>, vector<1x10xf32>
    %417 = vector.broadcast %416 : vector<1x10xf32> to vector<2x10xf32>
    %418 = arith.addf %415, %417 : vector<2x10xf32>
    %c0_164 = arith.constant 0 : index
    %c0_165 = arith.constant 0 : index
    %419 = vector.load %arg17[%c0_164, %c0_165] : memref<2x10xf32, #tpu.memory_space<vmem>>, vector<2x10xf32>
    tpu.vector_store %arg17[%c0_164, %c0_165], %418 {strides = array<i32>} : memref<2x10xf32, #tpu.memory_space<vmem>>, vector<2x10xf32>,
    return
  }
  func.func @transform_0(%arg0: i32) -> (i32, i32) {
    %c0_i32 = arith.constant 0 : i32
    %c0_i32_0 = arith.constant 0 : i32
    %c0_i32_1 = arith.constant 0 : i32
    return %c0_i32, %c0_i32_0 : i32, i32
  }
  func.func @transform_1(%arg0: i32) -> (i32, i32) {
    %c0_i32 = arith.constant 0 : i32
    %c0_i32_0 = arith.constant 0 : i32
    %c0_i32_1 = arith.constant 0 : i32
    return %c0_i32, %c0_i32_0 : i32, i32
  }
  func.func @transform_2(%arg0: i32) -> (i32, i32) {
    %c0_i32 = arith.constant 0 : i32
    %c0_i32_0 = arith.constant 0 : i32
    %c0_i32_1 = arith.constant 0 : i32
    return %c0_i32, %c0_i32_0 : i32, i32
  }
  func.func @transform_3(%arg0: i32) -> (i32, i32, i32) {
    %c0_i32 = arith.constant 0 : i32
    %c0_i32_0 = arith.constant 0 : i32
    %c0_i32_1 = arith.constant 0 : i32
    %c0_i32_2 = arith.constant 0 : i32
    return %c0_i32, %c0_i32_0, %c0_i32_1 : i32, i32, i32
  }
  func.func @transform_4(%arg0: i32) -> (i32, i32, i32) {
    %c0_i32 = arith.constant 0 : i32
    %c0_i32_0 = arith.constant 0 : i32
    %c0_i32_1 = arith.constant 0 : i32
    %c0_i32_2 = arith.constant 0 : i32
    return %c0_i32, %c0_i32_0, %c0_i32_1 : i32, i32, i32
  }
  func.func @transform_5(%arg0: i32) -> (i32, i32, i32) {
    %c0_i32 = arith.constant 0 : i32
    %c0_i32_0 = arith.constant 0 : i32
    %c0_i32_1 = arith.constant 0 : i32
    %c0_i32_2 = arith.constant 0 : i32
    return %c0_i32, %c0_i32_0, %c0_i32_1 : i32, i32, i32
  }
  func.func @transform_6(%arg0: i32) -> (i32, i32, i32) {
    %c0_i32 = arith.constant 0 : i32
    %c0_i32_0 = arith.constant 0 : i32
    %c0_i32_1 = arith.constant 0 : i32
    %c0_i32_2 = arith.constant 0 : i32
    return %c0_i32, %c0_i32_0, %c0_i32_1 : i32, i32, i32
  }
  func.func @transform_7(%arg0: i32) -> (i32, i32, i32) {
    %c0_i32 = arith.constant 0 : i32
    %c0_i32_0 = arith.constant 0 : i32
    %c0_i32_1 = arith.constant 0 : i32
    %c0_i32_2 = arith.constant 0 : i32
    return %c0_i32, %c0_i32_0, %c0_i32_1 : i32, i32, i32
  }
  func.func @transform_8(%arg0: i32) -> (i32, i32, i32) {
    %c0_i32 = arith.constant 0 : i32
    %c0_i32_0 = arith.constant 0 : i32
    %c0_i32_1 = arith.constant 0 : i32
    %c0_i32_2 = arith.constant 0 : i32
    return %c0_i32, %c0_i32_0, %c0_i32_1 : i32, i32, i32
  }
  func.func @transform_9(%arg0: i32) -> (i32, i32, i32) {
    %c0_i32 = arith.constant 0 : i32
    %c0_i32_0 = arith.constant 0 : i32
    %c0_i32_1 = arith.constant 0 : i32
    %c0_i32_2 = arith.constant 0 : i32
    return %c0_i32, %c0_i32_0, %c0_i32_1 : i32, i32, i32
  }
  func.func @transform_10(%arg0: i32) -> (i32, i32, i32) {
    %c0_i32 = arith.constant 0 : i32
    %c0_i32_0 = arith.constant 0 : i32
    %c0_i32_1 = arith.constant 0 : i32
    %c0_i32_2 = arith.constant 0 : i32
    return %c0_i32, %c0_i32_0, %c0_i32_1 : i32, i32, i32
  }
  func.func @transform_11(%arg0: i32) -> (i32, i32, i32) {
    %c0_i32 = arith.constant 0 : i32
    %c0_i32_0 = arith.constant 0 : i32
    %c0_i32_1 = arith.constant 0 : i32
    %c0_i32_2 = arith.constant 0 : i32
    return %c0_i32, %c0_i32_0, %c0_i32_1 : i32, i32, i32
  }
  func.func @transform_12(%arg0: i32) -> (i32, i32, i32) {
    %c0_i32 = arith.constant 0 : i32
    %c0_i32_0 = arith.constant 0 : i32
    %c0_i32_1 = arith.constant 0 : i32
    %c0_i32_2 = arith.constant 0 : i32
    return %c0_i32, %c0_i32_0, %c0_i32_1 : i32, i32, i32
  }
  func.func @transform_13(%arg0: i32) -> (i32, i32) {
    %c0_i32 = arith.constant 0 : i32
    %c0_i32_0 = arith.constant 0 : i32
    %c0_i32_1 = arith.constant 0 : i32
    return %c0_i32, %c0_i32_0 : i32, i32
  }
  func.func @transform_14(%arg0: i32) -> (i32, i32) {
    %c0_i32 = arith.constant 0 : i32
    %c0_i32_0 = arith.constant 0 : i32
    %c0_i32_1 = arith.constant 0 : i32
    return %c0_i32, %c0_i32_0 : i32, i32
  }
  func.func @transform_15(%arg0: i32) -> (i32, i32) {
    %c0_i32 = arith.constant 0 : i32
    %c0_i32_0 = arith.constant 0 : i32
    %c0_i32_1 = arith.constant 0 : i32
    return %c0_i32, %c0_i32_0 : i32, i32
  }
  func.func @transform_16(%arg0: i32) -> (i32, i32) {
    %c0_i32 = arith.constant 0 : i32
    %c0_i32_0 = arith.constant 0 : i32
    %c0_i32_1 = arith.constant 0 : i32
    return %c0_i32, %c0_i32_0 : i32, i32
  }
}

</mosaic_0001>

<bundles_post_ra>
// kernel: vit_forward.1
= control target key start
LH: loop header
LB: loop body
LE: loop exit
PB: predicated region body
PF: predicated region fallthrough
CT: control target
= control target key end

     0   :  { %s10886_s0 = inlined_call_operand.vmem [shape: f32[48,64], index: 0, kind: input, shape index: {}]   ;;  %s10887_s1 = inlined_call_operand.vmem [shape: f32[64,64], index: 1, kind: input, shape index: {}]   ;;  %s10888_s2 = inlined_call_operand.vmem [shape: f32[48,64], index: 2, kind: input, shape index: {}]   ;;  %s10889_s3 = inlined_call_operand.vmem [shape: f32[2,2,64], index: 3, kind: input, shape index: {}]   ;;  %s10890_s4 = inlined_call_operand.vmem [shape: f32[2,64,192], index: 4, kind: input, shape index: {}]   ;;  %s10891_s5 = inlined_call_operand.vmem [shape: f32[2,1,192], index: 5, kind: input, shape index: {}]   ;;  %s10892_s6 = inlined_call_operand.vmem [shape: f32[2,64,64], index: 6, kind: input, shape index: {}]   ;;  %s10893_s7 = inlined_call_operand.vmem [shape: f32[2,1,64], index: 7, kind: input, shape index: {}]   ;;  %s10894_s8 = inlined_call_operand.vmem [shape: f32[2,2,64], index: 8, kind: input, shape index: {}]   ;;  %s10895_s9 = inlined_call_operand.vmem [shape: f32[2,64,256], index: 9, kind: input, shape index: {}]   ;;  %s10896_s10 = inlined_call_operand.vmem [shape: f32[2,1,256], index: 10, kind: input, shape index: {}]   ;;  %s10897_s11 = inlined_call_operand.vmem [shape: f32[2,256,64], index: 11, kind: input, shape index: {}]   ;;  %s10898_s12 = inlined_call_operand.vmem [shape: f32[2,1,64], index: 12, kind: input, shape index: {}]   ;;  %s10899_s13 = inlined_call_operand.vmem [shape: f32[2,64], index: 13, kind: input, shape index: {}]   ;;  %s10900_s14 = inlined_call_operand.vmem [shape: f32[64,10], index: 14, kind: input, shape index: {}]   ;;  %s10901_s15 = inlined_call_operand.vmem [shape: f32[1,10], index: 15, kind: input, shape index: {}]   ;;  %s10902_s16 = inlined_call_operand.hbm [shape: f32[2,10], index: 16, kind: output, shape index: {}]  }
   0x1   :  { %10906 = sst [smem:[#allocation5_spill]] %s10886_s0 }
   0x2   :  { %v60_v0 = vld [vmem:[%s10887_s1] sm:$0xff]  ;;  %v61_v1 = vld [vmem:[%s10887_s1 + $0x8] sm:$0xff]  ;;  %v62_v2 = vld [vmem:[%s10887_s1 + $0x10] sm:$0xff]  ;;  %vm74_vm0 = vcmask 523264   ;;  %s10907_s20 = sld [smem:[#allocation5_spill]] }
   0x3   :  { %v7937_v3 = vpack.c.bf16 %v61_v1, %v60_v0  ;;  %v63_v4 = vld [vmem:[%s10887_s1 + $0x18] sm:$0xff]  ;;  %v64_v6 = vld [vmem:[%s10887_s1 + $0x20] sm:$0xff]  ;;  %v65_v7 = vld [vmem:[%s10887_s1 + $0x28] sm:$0xff] }
   0x4   :  { %v7941_v5 = vpack.c.bf16 %v63_v4, %v62_v2  ;;  %v7945_v9 = vpack.c.bf16 %v65_v7, %v64_v6 }
   0x5   :  { %7938 = vmatprep.subr.bf16.mxu0 %v7937_v3 }
   0x6   :  { %7940 = vmatpush3.bf16.msra.mxu0 %v7937_v3 }
   0x7   :  { %7942 = vmatprep.subr.bf16.mxu0 %v7941_v5 }
   0x8   :  { %v54_v8 = vld [vmem:[%s10907_s20] sm:$0xff] }
   0x9   :  { %7325 = vmatprep.mubr.msk.f32.mxu0 %vm74_vm0, %v54_v8 }
   0xa   :  { %21 = vsyncpa [#allocation3], 0  ;;  %v66_v10 = vld [vmem:[%s10887_s1 + $0x30] sm:$0xff]  ;;  %v67_v11 = vld [vmem:[%s10887_s1 + $0x38] sm:$0xff]  ;;  %7944 = vmatpush3.bf16.msra.mxu0 %v7941_v5  ;;  %s8749_s0 = smov 64   ;;  %vm8750_vm1 = vmmov 0  }
   0xb   :  { %7946 = vmatprep.subr.bf16.mxu0 %v7945_v9  ;;  %v7949_v12 = vpack.c.bf16 %v67_v11, %v66_v10  ;;  %v55_v13 = vld [vmem:[%s10907_s20 + $0x8] sm:$0xff]  ;;  %v56_v14 = vld [vmem:[%s10907_s20 + $0x10] sm:$0xff]  ;;  %v57_v15 = vld [vmem:[%s10907_s20 + $0x18] sm:$0xff]  ;;  %vm457_vm2 = vcmask 130048   ;;  %vm663_vm5 = vcmask 195584   ;;  %s8752_s17 = smov 48  }
   0xc   :  { %v58_v16 = vld [vmem:[%s10907_s20 + $0x20] sm:$0xff]  ;;  %v59_v17 = vld [vmem:[%s10907_s20 + $0x28] sm:$0xff]  ;;  %v71_v23 = vld [vmem:[%s10888_s2 + $0x18] sm:$0xff]  ;;  %s8753_s18 = smov 112   ;;  %s8754_s19 = smov 32   ;;  %vm6490_vm6 = vcmask 1040384  }
   0xd   :  { %v68_v18 = vld [vmem:[%s10888_s2] sm:$0xff]  ;;  %v69_v20 = vld [vmem:[%s10888_s2 + $0x8] sm:$0xff]  ;;  %v70_v24 = vld [vmem:[%s10888_s2 + $0x10] sm:$0xff]  ;;  %s8755_s21 = smov 96   ;;  %s8756_s29 = smov 16   ;;  %vm6494_vm7 = vcmask 517120  }
   0xe   :  { %7948 = vmatpush3.bf16.msra.mxu0 %v7945_v9  ;;  %v73_v31 = vld [vmem:[%s10888_s2 + $0x28] sm:$0xff]  ;;  %v72_v32 = vld [vmem:[%s10888_s2 + $0x20] sm:$0xff]  ;;  %v296_v9 = vld [vmem:[%s10890_s4 + $0x18] sm:$0xff]  ;;  %s10904_s1 = smov 80   ;;  %s10910_s23 = smov 80   ;;  %vm6606_vm8 = vcmask 74752  }
   0xf   :  { %7950 = vmatprep.subr.bf16.mxu0 %v7949_v12  ;;  %v294_v8 = vld [vmem:[%s10890_s4 + $0x8] sm:$0xff]  ;;  %v293_v11 = vld [vmem:[%s10890_s4] sm:$0xff]  ;;  %vm9098_vm3 = vmpackc.low %vm457_vm2, %vm457_vm2  ;;  %s8758_s28 = smov [#allocation2]  }
  0x10   :  { %v7953_v10 = vpack.c.bf16 %v296_v9, %v294_v8 }
  0x12   :  { %7952 = vmatpush3.bf16.msra.mxu0 %v7949_v12  ;;  %v295_v12 = vld [vmem:[%s10890_s4 + $0x10] sm:$0xff]  ;;  %8237 = vmatprep.subr.bf16.mxu1 %v7953_v10 }
  0x13   :  { %7954 = vmatprep.subr.bf16.mxu0 %v7953_v10 }
  0x15   :  { %7326 = vmatmul.mubr.msk.f32.vlgmr.msra.gmra.mrb[0].mxu0 %vm74_vm0, %v55_v13  ;;  %v7955_v13 = vpack.c.bf16 %v295_v12, %v293_v11 }
  0x16   :  { %7328 = vmatprep.mubr.msk.f32.mxu0 %vm74_vm0, %v56_v14  ;;  %v298_v14 = vld [vmem:[%s10890_s4 + $0x28] sm:$0xff] }
  0x17   :  { %7956 = vmatpush1.bf16.msra.mxu0 %v7955_v13  ;;  %8241 = vmatpush1.bf16.msra.mxu1 %v7955_v13 }
  0x19   :  { %7329 = vmatmul.mubr.msk.f32.gmra.mrb[2].mxu0 %vm74_vm0, %v57_v15  ;;  %v300_v15 = vld [vmem:[%s10890_s4 + $0x38] sm:$0xff] }
  0x1a   :  { %7331 = vmatprep.mubr.msk.f32.mxu0 %vm74_vm0, %v58_v16  ;;  %v7957_v16 = vpack.c.bf16 %v300_v15, %v298_v14 }
  0x1c   :  { %7958 = vmatprep.subr.bf16.mxu0 %v7957_v16  ;;  %8238 = vmatprep.subr.bf16.mxu1 %v7957_v16 }
  0x1d   :  { %7332 = vmatmul.mubr.msk.f32.gmra.mrb[4].mxu0 %vm74_vm0, %v59_v17  ;;  %v297_v17 = vld [vmem:[%s10890_s4 + $0x20] sm:$0xff] }
  0xe8   :  { %v7327_v19 = vpop.f32.mrb[0].mxu0 }
  0xe9   :  { %v159_v21 = vpop.f32.mrb[1].mxu0  ;;  %v8906_v25 = vadd.f32 %v7327_v19, %v69_v20  ;;  %v302_v20 = vld [vmem:[%s10890_s4 + $0x48] sm:$0xff] }
  0xea   :  { %v8898_v22 = vadd.f32 %v159_v21, %v68_v18  ;;  %v299_v18 = vld [vmem:[%s10890_s4 + $0x30] sm:$0xff]  ;;  %v304_v21 = vld [vmem:[%s10890_s4 + $0x58] sm:$0xff] }
  0xeb   :  { %v197_v35 = vsel %vm74_vm0, %v8906_v25, 0.0  ;;  %v7959_v19 = vpack.c.bf16 %v299_v18, %v297_v17 }
  0xec   :  { %v7330_v26 = vpop.f32.mrb[2].mxu0  ;;  %v194_v27 = vsel %vm74_vm0, %v8898_v22, 0.0 }
  0xed   :  { %v169_v28 = vpop.f32.mrb[3].mxu0  ;;  %195 = vadd.xlane.f32.xlu0 %v194_v27  ;;  %v8910_v29 = vadd.f32 %v7330_v26, %v71_v23  ;;  %7960 = vmatpush1.bf16.msra.mxu0 %v7959_v19  ;;  %v7961_v23 = vpack.c.bf16 %v304_v21, %v302_v20  ;;  %v303_v26 = vld [vmem:[%s10890_s4 + $0x50] sm:$0xff] }
  0xee   :  { %v8912_v30 = vadd.f32 %v169_v28, %v70_v24  ;;  %8242 = vmatpush1.bf16.msra.mxu1 %v7959_v19  ;;  %v301_v24 = vld [vmem:[%s10890_s4 + $0x40] sm:$0xff]  ;;  %v306_v28 = vld [vmem:[%s10890_s4 + $0x68] sm:$0xff] }
  0xef   :  { %v203_v39 = vsel %vm74_vm0, %v8910_v29, 0.0  ;;  %v7963_v27 = vpack.c.bf16 %v303_v26, %v301_v24  ;;  %7962 = vmatprep.subr.bf16.mxu0 %v7961_v23  ;;  %8239 = vmatprep.subr.bf16.mxu1 %v7961_v23 }
  0xf0   :  { %v7333_v33 = vpop.f32.mrb[4].mxu0  ;;  %v200_v34 = vsel %vm74_vm0, %v8912_v30, 0.0 }
  0xf1   :  { %v179_v36 = vpop.f32.mrb[5].mxu0  ;;  %201 = vadd.xlane.f32.xlu1 %v200_v34  ;;  %198 = vadd.xlane.f32.xlu0 %v197_v35  ;;  %v8924_v37 = vadd.f32 %v7333_v33, %v73_v31  ;;  %v308_v31 = vld [vmem:[%s10890_s4 + $0x78] sm:$0xff]  ;;  %v305_v33 = vld [vmem:[%s10890_s4 + $0x60] sm:$0xff]  ;;  %v307_v34 = vld [vmem:[%s10890_s4 + $0x70] sm:$0xff] }
  0xf2   :  { %v8926_v38 = vadd.f32 %v179_v36, %v72_v32  ;;  %7964 = vmatpush1.bf16.msra.mxu0 %v7963_v27  ;;  %8243 = vmatpush1.bf16.msra.mxu1 %v7963_v27  ;;  %v7965_v32 = vpack.c.bf16 %v308_v31, %v306_v28  ;;  %v7967_v35 = vpack.c.bf16 %v307_v34, %v305_v33  ;;  %v8747_v36 = vmov 0.0  }
  0xf3   :  { %v209_v41 = vsel %vm74_vm0, %v8924_v37, 0.0  ;;  %403 = vmatprep.mubr.f32.mxu0 %v8747_v36  ;;  %427 = vmatprep.mubr.f32.mxu1 %v8747_v36  ;;  %v8748_v27 = vmov 0.0|0.0  }
  0xf4   :  { %v206_v40 = vsel %vm74_vm0, %v8926_v38, 0.0  ;;  %7966 = vmatprep.subr.bf16.mxu0 %v7965_v32  ;;  %8240 = vmatprep.subr.bf16.mxu1 %v7965_v32 }
  0xf5   :  { %204 = vadd.xlane.f32.xlu1 %v203_v39  ;;  %207 = vadd.xlane.f32.xlu0 %v206_v40 }
  0xf6   :  { %7968 = vmatpush1.bf16.msra.mxu0 %v7967_v35  ;;  %8244 = vmatpush1.bf16.msra.mxu1 %v7967_v35 }
  0xf7   :  { %7977 = vmatprep.subr.bf16.mxu1 %v8748_v27  ;;  %7969 = vmatprep.subr.bf16.mxu0 %v8748_v27 }
  0xf9   :  { %210 = vadd.xlane.f32.xlu1 %v209_v41  ;;  %v188_v41 = vlaneseq }
 0x17a   :  { %v196_v42 = vpop.xlane.xlu0 %195 }
 0x17b   :  { %v213_v43 = vmul.f32 0.015625, %v196_v42 }
 0x17d   :  { %v8935_v44 = vsub.f32 %v8898_v22, %v213_v43 }
 0x17e   :  { %v202_v45 = vpop.xlane.xlu1 %201  ;;  %v199_v46 = vpop.xlane.xlu0 %198 }
 0x17f   :  { %v215_v47 = vmul.f32 0.015625, %v202_v45  ;;  %v214_v48 = vmul.f32 0.015625, %v199_v46  ;;  %v225_v49 = vmul.f32 %v8935_v44, %v8935_v44 }
 0x181   :  { %v8940_v50 = vsub.f32 %v8912_v30, %v215_v47  ;;  %v8943_v51 = vsub.f32 %v8906_v25, %v214_v48  ;;  %v231_v52 = vsel %vm74_vm0, %v225_v49, 0.0  ;;  %v274_v48 = vshrl.u32 %v188_v41, 7 }
 0x182   :  { %v205_v53 = vpop.xlane.xlu1 %204  ;;  %232 = vadd.xlane.f32.xlu0 %v231_v52  ;;  %v208_v54 = vpop.xlane.xlu0 %207 }
 0x183   :  { %v216_v55 = vmul.f32 0.015625, %v205_v53  ;;  %v217_v56 = vmul.f32 0.015625, %v208_v54  ;;  %v227_v57 = vmul.f32 %v8940_v50, %v8940_v50  ;;  %v226_v58 = vmul.f32 %v8943_v51, %v8943_v51 }
 0x185   :  { %v8951_v59 = vsub.f32 %v8910_v29, %v216_v55  ;;  %v8954_v60 = vsub.f32 %v8926_v38, %v217_v56  ;;  %v237_v61 = vsel %vm74_vm0, %v227_v57, 0.0  ;;  %v234_v62 = vsel %vm74_vm0, %v226_v58, 0.0  ;;  %v192_v58 = vld [vmem:[%s10889_s3] sm:$0x3] }
 0x186   :  { %v211_v63 = vpop.xlane.xlu1 %210  ;;  %238 = vadd.xlane.f32.xlu0 %v237_v61  ;;  %235 = vadd.xlane.f32.xlu1 %v234_v62  ;;  %v9021_v57 = vsub.s32 0, %v274_v48 }
 0x187   :  { %v218_v0 = vmul.f32 0.015625, %v211_v63  ;;  %v228_v1 = vmul.f32 %v8951_v59, %v8951_v59  ;;  %v229_v2 = vmul.f32 %v8954_v60, %v8954_v60 }
 0x189   :  { %v8963_v3 = vsub.f32 %v8924_v37, %v218_v0  ;;  %v240_v4 = vsel %vm74_vm0, %v228_v1, 0.0  ;;  %v243_v5 = vsel %vm74_vm0, %v229_v2, 0.0  ;;  %v9026_v0 = vsub.s32 1, %v274_v48 }
 0x18a   :  { %241 = vadd.xlane.f32.xlu1 %v240_v4  ;;  %244 = vadd.xlane.f32.xlu0 %v243_v5  ;;  %v276_v2 = vrot.slane %v192_v58, %v9021_v57 }
 0x18b   :  { %v230_v6 = vmul.f32 %v8963_v3, %v8963_v3 }
 0x18d   :  { %v246_v7 = vsel %vm74_vm0, %v230_v6, 0.0 }
 0x18e   :  { %247 = vadd.xlane.f32.xlu1 %v246_v7  ;;  %v286_v7 = vrot.slane %v192_v58, %v9026_v0 }
 0x20f   :  { %v233_v39 = vpop.xlane.xlu0 %232 }
 0x210   :  { %v249_v40 = vmul.f32 0.015625, %v233_v39 }
 0x212   :  { %v255_v42 = vadd.f32 1e-06, %v249_v40 }
 0x213   :  { %v236_v43 = vpop.xlane.xlu1 %235  ;;  %v239_v45 = vpop.xlane.xlu0 %238 }
 0x214   :  { %8433 = vrsqrt.f32 %v255_v42  ;;  %v250_v46 = vmul.f32 0.015625, %v236_v43  ;;  %v251_v47 = vmul.f32 0.015625, %v239_v45 }
 0x216   :  { %v256_v49 = vadd.f32 1e-06, %v250_v46  ;;  %v257_v52 = vadd.f32 1e-06, %v251_v47 }
 0x217   :  { %v242_v53 = vpop.xlane.xlu1 %241  ;;  %v245_v54 = vpop.xlane.xlu0 %244 }
 0x218   :  { %8435 = vrsqrt.f32 %v256_v49  ;;  %v252_v55 = vmul.f32 0.015625, %v242_v53  ;;  %v253_v56 = vmul.f32 0.015625, %v245_v54 }
 0x219   :  { %8437 = vrsqrt.f32 %v257_v52 }
 0x21a   :  { %v258_v61 = vadd.f32 1e-06, %v252_v55  ;;  %v259_v62 = vadd.f32 1e-06, %v253_v56 }
 0x21b   :  { %v248_v63 = vpop.xlane.xlu1 %247 }
 0x21c   :  { %8439 = vrsqrt.f32 %v258_v61  ;;  %v254_v1 = vmul.f32 0.015625, %v248_v63 }
 0x21d   :  { %8441 = vrsqrt.f32 %v259_v62 }
 0x21e   :  { %v8434_v4 = vpop.eup %8433  ;;  %v260_v5 = vadd.f32 1e-06, %v254_v1 }
 0x21f   :  { %v267_v6 = vmul.f32 %v8434_v4, %v8935_v44 }
 0x220   :  { %8443 = vrsqrt.f32 %v260_v5 }
 0x221   :  { %v277_v8 = vmul.f32 %v276_v2, %v267_v6 }
 0x222   :  { %v8436_v9 = vpop.eup %8435 }
 0x223   :  { %v8438_v10 = vpop.eup %8437  ;;  %v287_v11 = vadd.f32 %v286_v7, %v277_v8  ;;  %v268_v12 = vmul.f32 %v8436_v9, %v8943_v51 }
 0x224   :  { %v269_v13 = vmul.f32 %v8438_v10, %v8940_v50 }
 0x225   :  { %6628 = vmatmul.mubr.msk.f32.vlgmr.msra.gmra.mrb[6].mxu0 %vm74_vm0, %v287_v11  ;;  %v278_v14 = vmul.f32 %v276_v2, %v268_v12 }
 0x226   :  { %v8440_v15 = vpop.eup %8439  ;;  %409 = vmatprep.mubr.f32.mxu0 %v8747_v36  ;;  %v279_v44 = vmul.f32 %v276_v2, %v269_v13 }
 0x227   :  { %v8442_v16 = vpop.eup %8441  ;;  %v288_v17 = vadd.f32 %v286_v7, %v278_v14  ;;  %v270_v18 = vmul.f32 %v8440_v15, %v8951_v59 }
 0x228   :  { %v271_v19 = vmul.f32 %v8442_v16, %v8954_v60  ;;  %v289_v50 = vadd.f32 %v286_v7, %v279_v44 }
 0x229   :  { %6629 = vmatmul.mubr.msk.f32.gmra.mrb[8].mxu0 %vm74_vm0, %v288_v17  ;;  %v280_v21 = vmul.f32 %v276_v2, %v270_v18 }
 0x22a   :  { %v8444_v20 = vpop.eup %8443  ;;  %415 = vmatprep.mubr.f32.mxu0 %v8747_v36  ;;  %v281_v51 = vmul.f32 %v276_v2, %v271_v19 }
 0x22b   :  { %v272_v23 = vmul.f32 %v8444_v20, %v8963_v3  ;;  %v290_v59 = vadd.f32 %v286_v7, %v280_v21  ;;  %v309_v3 = vld [vmem:[%s10891_s5] sm:$0x3] }
 0x22c   :  { %v291_v24 = vadd.f32 %v286_v7, %v281_v51  ;;  %v314_v31 = vrot.slane %v309_v3, %v9021_v57  ;;  %v318_v33 = vrot.slane %v309_v3, %v9026_v0 }
 0x22d   :  { %6630 = vmatmul.mubr.msk.f32.gmra.mrb[10].mxu0 %vm74_vm0, %v289_v50  ;;  %v282_v26 = vmul.f32 %v276_v2, %v272_v23  ;;  %v189_v23 = vand.u32 127, %v188_v41 }
 0x22e   :  { %6632 = vmatmul.mubr.msk.f32.vlgmr.msra.gmra.mrb[0].mxu1 %vm74_vm0, %v291_v24  ;;  %421 = vmatprep.mubr.f32.mxu0 %v8747_v36 }
 0x22f   :  { %433 = vmatprep.mubr.f32.mxu1 %v8747_v36  ;;  %v292_v60 = vadd.f32 %v286_v7, %v282_v26  ;;  %vm190_vm4 = vcmp.lt.s32.totalorder %v189_v23, 17 }
 0x231   :  { %6631 = vmatmul.mubr.msk.f32.gmra.mrb[12].mxu0 %vm74_vm0, %v290_v59 }
 0x232   :  { %6633 = vmatmul.mubr.msk.f32.gmra.mrb[2].mxu1 %vm74_vm0, %v292_v60  ;;  %7340 = vmatprep.mubr.msk.f32.mxu0 %vm8750_vm1, %v8747_v36 }
 0x233   :  { %7370 = vmatprep.mubr.msk.f32.mxu1 %vm8750_vm1, %v8747_v36 }
 0x2f8   :  { %v405_v28 = vpop.f32.mrb[6].mxu0 }
 0x2f9   :  { %v407_v32 = vpop.f32.mrb[7].mxu0  ;;  %v9053_v35 = vadd.f32 %v405_v28, %v314_v31  ;;  %v8751_v28 = vmov -1e+09  }
 0x2fa   :  { %v408_v42 = vadd.f32 %v407_v32, %v318_v33 }
 0x2fc   :  { %v411_v34 = vpop.f32.mrb[8].mxu0 }
 0x2fd   :  { %v9055_v39 = vadd.f32 %v411_v34, %v314_v31  ;;  %v413_v40 = vpop.f32.mrb[9].mxu0 }
 0x2fe   :  { %v414_v43 = vadd.f32 %v413_v40, %v318_v33 }
 0x2ff   :  { %v9059_v45 = vpack.i.bf16 %v9055_v39, %v9053_v35 }
 0x300   :  { %v417_v46 = vpop.f32.mrb[10].mxu0  ;;  %v7978_v47 = vpack.c.bf16 %v414_v43, %v408_v42  ;;  %v9061_v48 = vpack.i.bf16 %v414_v43, %v408_v42 }
 0x301   :  { %v9063_v49 = vadd.f32 %v417_v46, %v314_v31  ;;  %v429_v52 = vpop.f32.mrb[0].mxu1  ;;  %8294 = vrot.lane.b32.xlu0 %v9059_v45, %s8749_s0  ;;  %v419_v53 = vpop.f32.mrb[11].mxu0 }
 0x302   :  { %v431_v54 = vpop.f32.mrb[1].mxu1  ;;  %7979 = vmatpush3.bf16.msra.mxu1 %v7978_v47  ;;  %v9074_v56 = vadd.f32 %v419_v53, %v318_v33  ;;  %v9076_v61 = vadd.f32 %v429_v52, %v314_v31 }
 0x303   :  { %v432_v55 = vadd.f32 %v431_v54, %v318_v33  ;;  %455 = vrot.lane.b32.xlu1 %v9063_v49, %s8749_s0  ;;  %7368 = vmatprep.subr.mxu1 %v8747_v36 }
 0x304   :  { %v423_v58 = vpop.f32.mrb[12].mxu0 }
 0x305   :  { %v9078_v62 = vadd.f32 %v423_v58, %v314_v31  ;;  %v435_v63 = vpop.f32.mrb[2].mxu1  ;;  %v425_v1 = vpop.f32.mrb[13].mxu0 }
 0x306   :  { %v426_v2 = vadd.f32 %v425_v1, %v318_v33  ;;  %v437_v4 = vpop.f32.mrb[3].mxu1  ;;  %7369 = vmatpush3.msra.mxu1 %v9074_v56  ;;  %v9092_v9 = vadd.f32 %v435_v63, %v314_v31  ;;  %v9140_v31 = vsel %vm190_vm4, 0.0, %v8751_v28 }
 0x307   :  { %v9081_v5 = vadd.f32 %v437_v4, %v318_v33  ;;  %v9085_v6 = vpack.i.bf16 %v9076_v61, %v9078_v62  ;;  %7983 = vmatprep.subr.bf16.mxu1 %v8748_v27 }
 0x308   :  { %v7981_v7 = vpack.c.bf16 %v432_v55, %v426_v2  ;;  %v9088_v8 = vpack.i.bf16 %v432_v55, %v426_v2 }
 0x309   :  { %8299 = vrot.lane.b32.xlu1 %v9085_v6, %s8749_s0 }
 0x30d   :  { %557 = vrot.lane.b32.xlu1 %v9092_v9, %s8749_s0 }
 0x373   :  { %v8295_v10 = vpop.permute.xlu0 %8294 }
 0x374   :  { %v8297_v11 = vunpack.i.h.bf16 %v8295_v10  ;;  %v8296_v12 = vunpack.i.l.bf16 %v8295_v10 }
 0x375   :  { %v456_v15 = vpop.permute.xlu1 %455 }
 0x376   :  { %v7970_v14 = vpack.c.bf16 %v8297_v11, %v8296_v12 }
 0x378   :  { %7972 = vmatpush3.bf16.xpose.msk.msra.mxu0 %vm9098_vm3, %v7970_v14 }
 0x379   :  { %7338 = vmatprep.subr.mxu0 %v8747_v36 }
 0x37b   :  { %v8300_v16 = vpop.permute.xlu1 %8299 }
 0x37c   :  { %v8302_v17 = vunpack.i.h.bf16 %v8300_v16  ;;  %v8301_v44 = vunpack.i.l.bf16 %v8300_v16 }
 0x37e   :  { %v7974_v18 = vpack.c.bf16 %v8302_v17, %v8301_v44 }
 0x37f   :  { %v558_v19 = vpop.permute.xlu1 %557 }
 0x380   :  { %7339 = vmatpush3.xpose.msk.msra.mxu0 %vm457_vm2, %v456_v15 }
 0x381   :  { %7973 = vmatprep.subr.bf16.mxu0 %v8748_v27 }
 0x383   :  { %7341 = vmatmul.mubr.msk.f32.vlgmr.msra.gmra.mrb[14].mxu0 %vm457_vm2, %v9053_v35 }
 0x384   :  { %7976 = vmatpush3.bf16.xpose.msk.msra.mxu0 %vm9098_vm3, %v7974_v18  ;;  %7343 = vmatprep.mubr.msk.f32.mxu0 %vm8750_vm1, %v8747_v36 }
 0x385   :  { %7353 = vmatprep.subr.mxu0 %v8747_v36 }
 0x387   :  { %7344 = vmatmul.mubr.msk.f32.gmra.mrb[16].mxu0 %vm457_vm2, %v9055_v39 }
 0x388   :  { %7346 = vmatprep.mubr.msk.f32.mxu0 %vm8750_vm1, %v8747_v36 }
 0x38b   :  { %7347 = vmatmul.mubr.msk.f32.gmra.mrb[18].mxu0 %vm457_vm2, %v9063_v49 }
 0x38c   :  { %7354 = vmatpush3.xpose.msk.msra.mxu0 %vm457_vm2, %v558_v19  ;;  %7355 = vmatprep.mubr.msk.f32.mxu0 %vm8750_vm1, %v8747_v36 }
 0x38d   :  { %7980 = vmatprep.subr.bf16.mxu0 %v8748_v27 }
 0x38f   :  { %7356 = vmatmul.mubr.msk.f32.vlgmr.msra.gmra.mrb[20].mxu0 %vm457_vm2, %v9078_v62 }
 0x390   :  { %7982 = vmatpush3.bf16.msra.mxu0 %v7981_v7  ;;  %7358 = vmatprep.mubr.msk.f32.mxu0 %vm8750_vm1, %v8747_v36 }
 0x391   :  { %7383 = vmatprep.subr.mxu0 %v8747_v36 }
 0x393   :  { %7359 = vmatmul.mubr.msk.f32.gmra.mrb[22].mxu0 %vm457_vm2, %v9076_v61 }
 0x394   :  { %7384 = vmatpush3.msra.mxu0 %v9081_v5  ;;  %7361 = vmatprep.mubr.msk.f32.mxu0 %vm8750_vm1, %v8747_v36 }
 0x395   :  { %7987 = vmatprep.subr.bf16.mxu0 %v8748_v27 }
 0x397   :  { %7362 = vmatmul.mubr.msk.f32.gmra.mrb[24].mxu0 %vm457_vm2, %v9092_v9 }
 0x398   :  { %7385 = vmatprep.mubr.msk.f32.mxu0 %vm8750_vm1, %v8747_v36 }
 0x456   :  { %v536_v20 = vpop.f32.mrb[14].mxu0 }
 0x457   :  { %v7342_v51 = vpop.f32.mrb[15].mxu0  ;;  %v651_v18 = vmul.f32 0.25, %v536_v20 }
 0x459   :  { %v657_v23 = vadd.f32 %v651_v18, %v9140_v31 }
 0x45a   :  { %v541_v50 = vpop.f32.mrb[16].mxu0 }
 0x45b   :  { %v7345_v21 = vpop.f32.mrb[17].mxu0  ;;  %v652_v19 = vmul.f32 0.25, %v541_v50 }
 0x45d   :  { %v658_v21 = vadd.f32 %v652_v19, %v9140_v31 }
 0x45e   :  { %v546_v24 = vpop.f32.mrb[18].mxu0 }
 0x45f   :  { %v7348_v26 = vpop.f32.mrb[19].mxu0  ;;  %v653_v51 = vmul.f32 0.25, %v546_v24 }
 0x460   :  { %v667_v26 = vsel %vm663_vm5, %v658_v21, -inf }
 0x462   :  { %v637_v59 = vpop.f32.mrb[20].mxu0 }
 0x463   :  { %v654_v60 = vmul.f32 0.25, %v637_v59  ;;  %v7357_v3 = vpop.f32.mrb[21].mxu0  ;;  %v664_v59 = vsel %vm663_vm5, %v657_v23, -inf }
 0x465   :  { %v660_v32 = vadd.f32 %v654_v60, %v9140_v31  ;;  %v659_v60 = vadd.f32 %v653_v51, %v9140_v31 }
 0x466   :  { %v642_v33 = vpop.f32.mrb[22].mxu0 }
 0x467   :  { %v655_v34 = vmul.f32 0.25, %v642_v33  ;;  %v7360_v40 = vpop.f32.mrb[23].mxu0  ;;  %v673_v42 = vsel %vm663_vm5, %v660_v32, -inf  ;;  %v670_v3 = vsel %vm663_vm5, %v659_v60, -inf }
 0x468   :  { %674 = vmax.xlane.f32.xlu0 %v673_v42 }
 0x469   :  { %v661_v41 = vadd.f32 %v655_v34, %v9140_v31 }
 0x46a   :  { %v647_v43 = vpop.f32.mrb[24].mxu0 }
 0x46b   :  { %v656_v46 = vmul.f32 0.25, %v647_v43  ;;  %v7363_v47 = vpop.f32.mrb[25].mxu0  ;;  %v676_v52 = vsel %vm663_vm5, %v661_v41, -inf }
 0x46c   :  { %677 = vmax.xlane.f32.xlu1 %v676_v52 }
 0x46d   :  { %v662_v53 = vadd.f32 %v656_v46, %v9140_v31 }
 0x46f   :  { %v679_v54 = vsel %vm663_vm5, %v662_v53, -inf }
 0x470   :  { %680 = vmax.xlane.f32.xlu0 %v679_v54 }
 0x47d   :  { %1022 = vrot.lane.b32.xlu1 %v9092_v9, %s8752_s17 }
 0x481   :  { %1012 = vrot.lane.b32.xlu1 %v9078_v62, %s8753_s18 }
 0x4f5   :  { %v675_v55 = vpop.xlane.xlu0 %674 }
 0x4f6   :  { %v685_v58 = vsub.f32 %v660_v32, %v675_v55 }
 0x4f8   :  { %v694_v63 = vmul.f32 1.442695, %v685_v58 }
 0x4f9   :  { %v678_v1 = vpop.xlane.xlu1 %677 }
 0x4fa   :  { %8445 = vpow2.f32 %v694_v63  ;;  %v686_v2 = vsub.f32 %v661_v41, %v678_v1 }
 0x4fc   :  { %v696_v4 = vmul.f32 1.442695, %v686_v2 }
 0x4fd   :  { %v681_v7 = vpop.xlane.xlu0 %680  ;;  %v1023_v28 = vpop.permute.xlu1 %1022 }
 0x4fe   :  { %8447 = vpow2.f32 %v696_v4  ;;  %v687_v10 = vsub.f32 %v662_v53, %v681_v7 }
 0x500   :  { %v698_v11 = vmul.f32 1.442695, %v687_v10 }
 0x501   :  { %v1013_v20 = vpop.permute.xlu1 %1012 }
 0x502   :  { %8449 = vpow2.f32 %v698_v11 }
 0x504   :  { %v8446_v12 = vpop.eup %8445 }
 0x505   :  { %v709_v14 = vsel %vm663_vm5, %v8446_v12, 0.0 }
 0x506   :  { %710 = vadd.xlane.f32.xlu0 %v709_v14 }
 0x508   :  { %v8448_v15 = vpop.eup %8447 }
 0x509   :  { %v712_v16 = vsel %vm663_vm5, %v8448_v15, 0.0 }
 0x50a   :  { %713 = vadd.xlane.f32.xlu0 %v712_v16 }
 0x50c   :  { %v8450_v17 = vpop.eup %8449 }
 0x50d   :  { %v715_v44 = vsel %vm663_vm5, %v8450_v17, 0.0 }
 0x50e   :  { %716 = vadd.xlane.f32.xlu1 %v715_v44 }
 0x51f   :  { %1014 = vrot.lane.b32.xlu1 %v9076_v61, %s8753_s18 }
 0x520   :  { %8304 = vrot.lane.b32.xlu0 %v9085_v6, %s8752_s17 }
 0x524   :  { %1016 = vrot.lane.b32.xlu0 %v9092_v9, %s8753_s18 }
 0x543   :  { %668 = vmax.xlane.f32.xlu0 %v667_v26  ;;  %665 = vmax.xlane.f32.xlu1 %v664_v59 }
 0x547   :  { %671 = vmax.xlane.f32.xlu0 %v670_v3 }
 0x593   :  { %v711_v32 = vpop.xlane.xlu0 %710 }
 0x594   :  { %8451 = vrcp.f32 %v711_v32 }
 0x597   :  { %v714_v50 = vpop.xlane.xlu0 %713 }
 0x598   :  { %8453 = vrcp.f32 %v714_v50 }
 0x59b   :  { %v717_v24 = vpop.xlane.xlu1 %716  ;;  %v8305_v33 = vpop.permute.xlu0 %8304 }
 0x59c   :  { %8455 = vrcp.f32 %v717_v24  ;;  %v8307_v34 = vunpack.i.h.bf16 %v8305_v33  ;;  %v8306_v40 = vunpack.i.l.bf16 %v8305_v33 }
 0x59e   :  { %v8452_v42 = vpop.eup %8451  ;;  %v7988_v41 = vpack.c.bf16 %v8307_v34, %v8306_v40 }
 0x59f   :  { %v727_v43 = vmul.f32 %v8452_v42, %v8446_v12  ;;  %v1015_v54 = vpop.permute.xlu1 %1014  ;;  %v1017_v55 = vpop.permute.xlu0 %1016 }
 0x5a1   :  { %7386 = vmatmul.mubr.msk.f32.vlgmr.msra.gmra.mrb[26].mxu0 %vm663_vm5, %v727_v43 }
 0x5a2   :  { %v8454_v46 = vpop.eup %8453  ;;  %7990 = vmatpush3.bf16.xpose.msk.msra.mxu0 %vm9098_vm3, %v7988_v41  ;;  %7388 = vmatprep.mubr.msk.f32.mxu0 %vm8750_vm1, %v8747_v36 }
 0x5a3   :  { %v728_v47 = vmul.f32 %v8454_v46, %v8448_v15  ;;  %7413 = vmatprep.subr.mxu0 %v8747_v36 }
 0x5a5   :  { %7389 = vmatmul.mubr.msk.f32.gmra.mrb[28].mxu0 %vm663_vm5, %v728_v47 }
 0x5a6   :  { %v8456_v52 = vpop.eup %8455  ;;  %7391 = vmatprep.mubr.msk.f32.mxu0 %vm8750_vm1, %v8747_v36 }
 0x5a7   :  { %v729_v53 = vmul.f32 %v8456_v52, %v8450_v17 }
 0x5a9   :  { %7392 = vmatmul.mubr.msk.f32.gmra.mrb[30].mxu0 %vm663_vm5, %v729_v53 }
 0x5aa   :  { %7414 = vmatpush3.xpose.msk.msra.mxu0 %vm457_vm2, %v1023_v28  ;;  %7415 = vmatprep.mubr.msk.f32.mxu0 %vm8750_vm1, %v8747_v36 }
 0x5ab   :  { %7994 = vmatprep.subr.bf16.mxu0 %v8748_v27 }
 0x5ad   :  { %7416 = vmatmul.mubr.msk.f32.vlgmr.msra.gmra.mrb[32].mxu0 %vm457_vm2, %v1013_v20 }
 0x5ae   :  { %7418 = vmatprep.mubr.msk.f32.mxu0 %vm8750_vm1, %v8747_v36 }
 0x5b1   :  { %7419 = vmatmul.mubr.msk.f32.gmra.mrb[34].mxu0 %vm457_vm2, %v1015_v54 }
 0x5b2   :  { %7421 = vmatprep.mubr.msk.f32.mxu0 %vm8750_vm1, %v8747_v36 }
 0x5b5   :  { %7422 = vmatmul.mubr.msk.f32.gmra.mrb[36].mxu0 %vm457_vm2, %v1017_v55 }
 0x5b6   :  { %7445 = vmatprep.mubr.msk.f32.mxu0 %vm8750_vm1, %v8747_v36 }
 0x5d0   :  { %v666_v58 = vpop.xlane.xlu1 %665  ;;  %v669_v63 = vpop.xlane.xlu0 %668 }
 0x5d1   :  { %v682_v1 = vsub.f32 %v657_v23, %v666_v58  ;;  %v683_v2 = vsub.f32 %v658_v21, %v669_v63 }
 0x5d3   :  { %v688_v4 = vmul.f32 1.442695, %v682_v1  ;;  %v690_v7 = vmul.f32 1.442695, %v683_v2 }
 0x5d4   :  { %v672_v10 = vpop.xlane.xlu0 %671 }
 0x5d5   :  { %8457 = vpow2.f32 %v688_v4  ;;  %v684_v11 = vsub.f32 %v659_v60, %v672_v10 }
 0x5d6   :  { %8459 = vpow2.f32 %v690_v7 }
 0x5d7   :  { %v692_v12 = vmul.f32 1.442695, %v684_v11 }
 0x5d9   :  { %8461 = vpow2.f32 %v692_v12 }
 0x5df   :  { %v8458_v14 = vpop.eup %8457 }
 0x5e0   :  { %v8460_v15 = vpop.eup %8459  ;;  %v700_v16 = vsel %vm663_vm5, %v8458_v14, 0.0 }
 0x5e1   :  { %701 = vadd.xlane.f32.xlu0 %v700_v16  ;;  %v703_v17 = vsel %vm663_vm5, %v8460_v15, 0.0 }
 0x5e2   :  { %704 = vadd.xlane.f32.xlu1 %v703_v17 }
 0x5e3   :  { %v8462_v44 = vpop.eup %8461 }
 0x5e4   :  { %v706_v18 = vsel %vm663_vm5, %v8462_v44, 0.0 }
 0x5e5   :  { %707 = vadd.xlane.f32.xlu0 %v706_v18 }
 0x5f3   :  { %8309 = vrot.lane.b32.xlu1 %v9059_v45, %s8752_s17 }
 0x5f7   :  { %908 = vrot.lane.b32.xlu1 %v9053_v35, %s8753_s18 }
 0x5fb   :  { %910 = vrot.lane.b32.xlu1 %v9055_v39, %s8753_s18  ;;  %918 = vrot.lane.b32.xlu0 %v9063_v49, %s8752_s17 }
 0x5ff   :  { %912 = vrot.lane.b32.xlu1 %v9063_v49, %s8753_s18 }
 0x66e   :  { %v702_v19 = vpop.xlane.xlu0 %701 }
 0x66f   :  { %v705_v51 = vpop.xlane.xlu1 %704  ;;  %8463 = vrcp.f32 %v702_v19 }
 0x670   :  { %8465 = vrcp.f32 %v705_v51 }
 0x672   :  { %v708_v21 = vpop.xlane.xlu0 %707 }
 0x673   :  { %v8310_v23 = vpop.permute.xlu1 %8309  ;;  %8467 = vrcp.f32 %v708_v21 }
 0x674   :  { %v9203_v26 = vpop.f32.mrb[26].mxu0  ;;  %v8312_v60 = vunpack.i.h.bf16 %v8310_v23  ;;  %v8311_v3 = vunpack.i.l.bf16 %v8310_v23 }
 0x675   :  { %v7387_v59 = vpop.f32.mrb[27].mxu0 }
 0x676   :  { %v7984_v33 = vpack.c.bf16 %v8312_v60, %v8311_v3  ;;  %v919_v55 = vpop.permute.xlu0 %918 }
 0x677   :  { %v909_v53 = vpop.permute.xlu1 %908 }
 0x678   :  { %v9205_v28 = vpop.f32.mrb[28].mxu0 }
 0x679   :  { %v8464_v32 = vpop.eup %8463  ;;  %v7390_v20 = vpop.f32.mrb[29].mxu0 }
 0x67a   :  { %v724_v50 = vmul.f32 %v8464_v32, %v8458_v14  ;;  %v8466_v24 = vpop.eup %8465 }
 0x67b   :  { %v725_v42 = vmul.f32 %v8466_v24, %v8460_v15  ;;  %v911_v10 = vpop.permute.xlu1 %910 }
 0x67c   :  { %7371 = vmatmul.mubr.msk.f32.vlgmr.msra.gmra.mrb[4].mxu1 %vm663_vm5, %v724_v50  ;;  %v9208_v34 = vpop.f32.mrb[30].mxu0 }
 0x67d   :  { %7986 = vmatpush3.bf16.xpose.msk.msra.mxu1 %vm9098_vm3, %v7984_v33  ;;  %v7393_v40 = vpop.f32.mrb[31].mxu0  ;;  %7373 = vmatprep.mubr.msk.f32.mxu1 %vm8750_vm1, %v8747_v36  ;;  %v8468_v41 = vpop.eup %8467 }
 0x67e   :  { %7398 = vmatprep.subr.mxu1 %v8747_v36  ;;  %v726_v52 = vmul.f32 %v8468_v41, %v8462_v44 }
 0x67f   :  { %v913_v17 = vpop.permute.xlu1 %912 }
 0x680   :  { %7374 = vmatmul.mubr.msk.f32.gmra.mrb[6].mxu1 %vm663_vm5, %v725_v42  ;;  %v1102_v43 = vpop.f32.mrb[32].mxu0 }
 0x681   :  { %v1119_v46 = vmul.f32 0.25, %v1102_v43  ;;  %v7417_v47 = vpop.f32.mrb[33].mxu0  ;;  %7376 = vmatprep.mubr.msk.f32.mxu1 %vm8750_vm1, %v8747_v36 }
 0x683   :  { %v1125_v54 = vadd.f32 %v1119_v46, %v9140_v31 }
 0x684   :  { %7377 = vmatmul.mubr.msk.f32.gmra.mrb[8].mxu1 %vm663_vm5, %v726_v52  ;;  %v1107_v58 = vpop.f32.mrb[34].mxu0 }
 0x685   :  { %7399 = vmatpush3.xpose.msk.msra.mxu1 %vm457_vm2, %v919_v55  ;;  %v1120_v63 = vmul.f32 0.25, %v1107_v58  ;;  %v7420_v1 = vpop.f32.mrb[35].mxu0  ;;  %v1137_v2 = vsel %vm663_vm5, %v1125_v54, -inf  ;;  %7400 = vmatprep.mubr.msk.f32.mxu1 %vm8750_vm1, %v8747_v36 }
 0x686   :  { %1138 = vmax.xlane.f32.xlu0 %v1137_v2  ;;  %7991 = vmatprep.subr.bf16.mxu1 %v8748_v27 }
 0x687   :  { %v1126_v4 = vadd.f32 %v1120_v63, %v9140_v31 }
 0x688   :  { %7401 = vmatmul.mubr.msk.f32.vlgmr.msra.gmra.mrb[10].mxu1 %vm457_vm2, %v909_v53  ;;  %v1112_v7 = vpop.f32.mrb[36].mxu0 }
 0x689   :  { %v1121_v11 = vmul.f32 0.25, %v1112_v7  ;;  %v7423_v12 = vpop.f32.mrb[37].mxu0  ;;  %v1140_v14 = vsel %vm663_vm5, %v1126_v4, -inf  ;;  %7403 = vmatprep.mubr.msk.f32.mxu1 %vm8750_vm1, %v8747_v36 }
 0x68a   :  { %1141 = vmax.xlane.f32.xlu1 %v1140_v14 }
 0x68b   :  { %v1127_v15 = vadd.f32 %v1121_v11, %v9140_v31 }
 0x68c   :  { %7404 = vmatmul.mubr.msk.f32.gmra.mrb[12].mxu1 %vm457_vm2, %v911_v10 }
 0x68d   :  { %v1143_v16 = vsel %vm663_vm5, %v1127_v15, -inf  ;;  %7406 = vmatprep.mubr.msk.f32.mxu1 %vm8750_vm1, %v8747_v36 }
 0x68e   :  { %1144 = vmax.xlane.f32.xlu0 %v1143_v16 }
 0x690   :  { %7407 = vmatmul.mubr.msk.f32.gmra.mrb[14].mxu1 %vm457_vm2, %v913_v17 }
 0x691   :  { %7430 = vmatprep.mubr.msk.f32.mxu1 %vm8750_vm1, %v8747_v36 }
 0x69b   :  { %1302 = vrot.lane.b32.xlu1 %v9081_v5, %s8753_s18 }
 0x69f   :  { %8319 = vrot.lane.b32.xlu1 %v9059_v45, %s8754_s19 }
 0x6a3   :  { %1632 = vrot.lane.b32.xlu1 %v9063_v49, %s8754_s19 }
 0x713   :  { %v1139_v44 = vpop.xlane.xlu0 %1138 }
 0x714   :  { %v1149_v18 = vsub.f32 %v1125_v54, %v1139_v44 }
 0x716   :  { %v1158_v19 = vmul.f32 1.442695, %v1149_v18 }
 0x717   :  { %v1142_v51 = vpop.xlane.xlu1 %1141 }
 0x718   :  { %8469 = vpow2.f32 %v1158_v19  ;;  %v1150_v21 = vsub.f32 %v1126_v4, %v1142_v51 }
 0x71a   :  { %v1160_v23 = vmul.f32 1.442695, %v1150_v21 }
 0x71b   :  { %v1145_v59 = vpop.xlane.xlu0 %1144  ;;  %v1303_v17 = vpop.permute.xlu1 %1302 }
 0x71c   :  { %8471 = vpow2.f32 %v1160_v23  ;;  %v1151_v60 = vsub.f32 %v1127_v15, %v1145_v59 }
 0x71e   :  { %v1162_v3 = vmul.f32 1.442695, %v1151_v60 }
 0x71f   :  { %v8320_v44 = vpop.permute.xlu1 %8319 }
 0x720   :  { %8473 = vpow2.f32 %v1162_v3 }
 0x722   :  { %v8470_v32 = vpop.eup %8469 }
 0x723   :  { %v1173_v20 = vsel %vm663_vm5, %v8470_v32, 0.0  ;;  %v1633_v19 = vpop.permute.xlu1 %1632 }
 0x724   :  { %1174 = vadd.xlane.f32.xlu0 %v1173_v20 }
 0x726   :  { %v9245_v50 = vpop.eup %8471 }
 0x727   :  { %v1176_v24 = vsel %vm663_vm5, %v9245_v50, 0.0 }
 0x728   :  { %1177 = vadd.xlane.f32.xlu0 %v1176_v24 }
 0x72a   :  { %v9249_v33 = vpop.eup %8473 }
 0x72b   :  { %v1179_v40 = vsel %vm663_vm5, %v9249_v33, 0.0 }
 0x72c   :  { %1180 = vadd.xlane.f32.xlu1 %v1179_v40 }
 0x73d   :  { %1622 = vrot.lane.b32.xlu1 %v9053_v35, %s8755_s21 }
 0x73e   :  { %8314 = vrot.lane.b32.xlu0 %v9088_v8, %s8753_s18 }
 0x741   :  { %1626 = vrot.lane.b32.xlu1 %v9063_v49, %s8755_s21 }
 0x742   :  { %8324 = vrot.lane.b32.xlu0 %v9085_v6, %s8754_s19 }
 0x745   :  { %1726 = vrot.lane.b32.xlu1 %v9078_v62, %s8755_s21 }
 0x746   :  { %1624 = vrot.lane.b32.xlu0 %v9055_v39, %s8755_s21 }
 0x749   :  { %1730 = vrot.lane.b32.xlu1 %v9092_v9, %s8755_s21 }
 0x74a   :  { %1736 = vrot.lane.b32.xlu0 %v9092_v9, %s8754_s19 }
 0x74e   :  { %1728 = vrot.lane.b32.xlu0 %v9076_v61, %s8755_s21 }
 0x74f   :  { %v9271_v42 = vpop.f32.mrb[4].mxu1 }
 0x750   :  { %v7372_v41 = vpop.f32.mrb[5].mxu1 }
 0x751   :  { %v8322_v41 = vunpack.i.h.bf16 %v8320_v44 }
 0x753   :  { %v9273_v43 = vpop.f32.mrb[6].mxu1 }
 0x754   :  { %v7375_v46 = vpop.f32.mrb[7].mxu1 }
 0x755   :  { %v8321_v46 = vunpack.i.l.bf16 %v8320_v44 }
 0x757   :  { %v9275_v47 = vpop.f32.mrb[8].mxu1 }
 0x758   :  { %v7378_v52 = vpop.f32.mrb[9].mxu1 }
 0x75b   :  { %v998_v53 = vpop.f32.mrb[10].mxu1 }
 0x75c   :  { %v7402_v54 = vpop.f32.mrb[11].mxu1  ;;  %v1116_v1 = vmul.f32 0.25, %v998_v53 }
 0x75d   :  { %v8006_v54 = vpack.c.bf16 %v8322_v41, %v8321_v46 }
 0x75e   :  { %v9278_v10 = vadd.f32 %v1116_v1, %v9140_v31 }
 0x75f   :  { %v1003_v55 = vpop.f32.mrb[12].mxu1 }
 0x760   :  { %v7405_v58 = vpop.f32.mrb[13].mxu1  ;;  %v1117_v2 = vmul.f32 0.25, %v1003_v55  ;;  %v1128_v12 = vsel %vm663_vm5, %v9278_v10, -inf }
 0x762   :  { %v9281_v11 = vadd.f32 %v1117_v2, %v9140_v31 }
 0x763   :  { %v1008_v63 = vpop.f32.mrb[14].mxu1 }
 0x764   :  { %v7408_v4 = vpop.f32.mrb[15].mxu1  ;;  %v1118_v7 = vmul.f32 0.25, %v1008_v63  ;;  %v1131_v14 = vsel %vm663_vm5, %v9281_v11, -inf }
 0x766   :  { %v9288_v15 = vadd.f32 %v1118_v7, %v9140_v31 }
 0x768   :  { %v1134_v16 = vsel %vm663_vm5, %v9288_v15, -inf }
 0x76d   :  { %1129 = vmax.xlane.f32.xlu0 %v1128_v12  ;;  %1132 = vmax.xlane.f32.xlu1 %v1131_v14 }
 0x771   :  { %1135 = vmax.xlane.f32.xlu0 %v1134_v16 }
 0x7b1   :  { %v1175_v18 = vpop.xlane.xlu0 %1174 }
 0x7b2   :  { %8475 = vrcp.f32 %v1175_v18 }
 0x7b5   :  { %v1178_v51 = vpop.xlane.xlu0 %1177 }
 0x7b6   :  { %8477 = vrcp.f32 %v1178_v51 }
 0x7b9   :  { %v1181_v21 = vpop.xlane.xlu1 %1180  ;;  %v8315_v23 = vpop.permute.xlu0 %8314 }
 0x7ba   :  { %v8317_v59 = vunpack.i.h.bf16 %v8315_v23  ;;  %v8316_v60 = vunpack.i.l.bf16 %v8315_v23  ;;  %8479 = vrcp.f32 %v1181_v21 }
 0x7bc   :  { %v7995_v3 = vpack.c.bf16 %v8317_v59, %v8316_v60  ;;  %v8476_v20 = vpop.eup %8475 }
 0x7bd   :  { %v1191_v24 = vmul.f32 %v8476_v20, %v8470_v32  ;;  %v8325_v55 = vpop.permute.xlu0 %8324  ;;  %v1623_v63 = vpop.permute.xlu1 %1622 }
 0x7be   :  { %7996 = vmatpush3.bf16.msra.mxu0 %v7995_v3  ;;  %v8326_v58 = vunpack.i.l.bf16 %v8325_v55 }
 0x7bf   :  { %7443 = vmatprep.subr.mxu0 %v8747_v36 }
 0x7c0   :  { %v8478_v40 = vpop.eup %8477 }
 0x7c1   :  { %v1192_v52 = vmul.f32 %v8478_v40, %v9245_v50  ;;  %v8327_v50 = vunpack.i.h.bf16 %v8325_v55  ;;  %v1627_v2 = vpop.permute.xlu1 %1626 }
 0x7c2   :  { %7444 = vmatpush3.msra.mxu0 %v1303_v17 }
 0x7c3   :  { %7446 = vmatmul.mubr.msk.f32.vlgmr.msra.gmra.mrb[38].mxu0 %vm663_vm5, %v1191_v24  ;;  %8005 = vmatprep.subr.bf16.mxu0 %v8748_v27  ;;  %v8010_v1 = vpack.c.bf16 %v8327_v50, %v8326_v58 }
 0x7c4   :  { %7448 = vmatprep.mubr.msk.f32.mxu0 %vm8750_vm1, %v8747_v36  ;;  %v8480_v53 = vpop.eup %8479 }
 0x7c5   :  { %v1193_v32 = vmul.f32 %v8480_v53, %v9249_v33  ;;  %v1625_v33 = vpop.permute.xlu0 %1624  ;;  %v1727_v7 = vpop.permute.xlu1 %1726 }
 0x7c7   :  { %7449 = vmatmul.mubr.msk.f32.gmra.mrb[40].mxu0 %vm663_vm5, %v1192_v52 }
 0x7c8   :  { %7451 = vmatprep.mubr.msk.f32.mxu0 %vm8750_vm1, %v8747_v36 }
 0x7c9   :  { %8008 = vmatpush3.bf16.xpose.msk.msra.mxu0 %vm9098_vm3, %v8006_v54  ;;  %v1737_v4 = vpop.permute.xlu0 %1736  ;;  %v1731_v14 = vpop.permute.xlu1 %1730 }
 0x7ca   :  { %7484 = vmatprep.subr.mxu0 %v8747_v36 }
 0x7cb   :  { %7452 = vmatmul.mubr.msk.f32.gmra.mrb[42].mxu0 %vm663_vm5, %v1193_v32 }
 0x7cc   :  { %7486 = vmatprep.mubr.msk.f32.mxu0 %vm8750_vm1, %v8747_v36 }
 0x7cd   :  { %v1729_v12 = vpop.permute.xlu0 %1728 }
 0x7d1   :  { %7485 = vmatpush3.xpose.msk.msra.mxu0 %vm457_vm2, %v1633_v19 }
 0x7d2   :  { %8009 = vmatprep.subr.bf16.mxu0 %v8748_v27 }
 0x7d4   :  { %7487 = vmatmul.mubr.msk.f32.vlgmr.msra.gmra.mrb[44].mxu0 %vm457_vm2, %v1623_v63 }
 0x7d5   :  { %8012 = vmatpush3.bf16.xpose.msk.msra.mxu0 %vm9098_vm3, %v8010_v1  ;;  %7489 = vmatprep.mubr.msk.f32.mxu0 %vm8750_vm1, %v8747_v36 }
 0x7d6   :  { %7499 = vmatprep.subr.mxu0 %v8747_v36 }
 0x7d8   :  { %7490 = vmatmul.mubr.msk.f32.gmra.mrb[46].mxu0 %vm457_vm2, %v1625_v33 }
 0x7d9   :  { %7492 = vmatprep.mubr.msk.f32.mxu0 %vm8750_vm1, %v8747_v36 }
 0x7dc   :  { %7493 = vmatmul.mubr.msk.f32.gmra.mrb[48].mxu0 %vm457_vm2, %v1627_v2 }
 0x7dd   :  { %7500 = vmatpush3.xpose.msk.msra.mxu0 %vm457_vm2, %v1737_v4  ;;  %7501 = vmatprep.mubr.msk.f32.mxu0 %vm8750_vm1, %v8747_v36 }
 0x7de   :  { %8016 = vmatprep.subr.bf16.mxu0 %v8748_v27 }
 0x7e0   :  { %7502 = vmatmul.mubr.msk.f32.vlgmr.msra.gmra.mrb[50].mxu0 %vm457_vm2, %v1727_v7 }
 0x7e1   :  { %7504 = vmatprep.mubr.msk.f32.mxu0 %vm8750_vm1, %v8747_v36 }
 0x7e4   :  { %7505 = vmatmul.mubr.msk.f32.gmra.mrb[52].mxu0 %vm457_vm2, %v1729_v12 }
 0x7e5   :  { %7507 = vmatprep.mubr.msk.f32.mxu0 %vm8750_vm1, %v8747_v36 }
 0x7e8   :  { %7508 = vmatmul.mubr.msk.f32.gmra.mrb[54].mxu0 %vm457_vm2, %v1731_v14 }
 0x7e9   :  { %7531 = vmatprep.mubr.msk.f32.mxu0 %vm8750_vm1, %v8747_v36 }
 0x7fa   :  { %v1133_v16 = vpop.xlane.xlu1 %1132  ;;  %v1130_v17 = vpop.xlane.xlu0 %1129 }
 0x7fb   :  { %v1147_v44 = vsub.f32 %v9281_v11, %v1133_v16  ;;  %v1146_v18 = vsub.f32 %v9278_v10, %v1130_v17 }
 0x7fd   :  { %v1152_v19 = vmul.f32 1.442695, %v1146_v18  ;;  %v1154_v51 = vmul.f32 1.442695, %v1147_v44 }
 0x7fe   :  { %v1136_v21 = vpop.xlane.xlu0 %1135 }
 0x7ff   :  { %v1148_v23 = vsub.f32 %v9288_v15, %v1136_v21  ;;  %8481 = vpow2.f32 %v1152_v19 }
 0x800   :  { %8483 = vpow2.f32 %v1154_v51 }
 0x801   :  { %v1156_v59 = vmul.f32 1.442695, %v1148_v23 }
 0x803   :  { %8485 = vpow2.f32 %v1156_v59 }
 0x809   :  { %v8482_v60 = vpop.eup %8481 }
 0x80a   :  { %v1164_v3 = vsel %vm663_vm5, %v8482_v60, 0.0  ;;  %v8484_v20 = vpop.eup %8483 }
 0x80b   :  { %1165 = vadd.xlane.f32.xlu0 %v1164_v3  ;;  %v1167_v11 = vsel %vm663_vm5, %v8484_v20, 0.0 }
 0x80d   :  { %v8486_v24 = vpop.eup %8485 }
 0x80e   :  { %v1170_v40 = vsel %vm663_vm5, %v8486_v24, 0.0 }
 0x80f   :  { %1171 = vadd.xlane.f32.xlu1 %v1170_v40  ;;  %1168 = vadd.xlane.f32.xlu0 %v1167_v11 }
 0x820   :  { %1201 = vrot.lane.b32.xlu1 %v9074_v56, %s8753_s18 }
 0x825   :  { %8329 = vrot.lane.b32.xlu0 %v9061_v48, %s8753_s18 }
 0x896   :  { %v9343_v10 = vpop.f32.mrb[38].mxu0 }
 0x897   :  { %v7447_v15 = vpop.f32.mrb[39].mxu0 }
 0x898   :  { %v1166_v41 = vpop.xlane.xlu0 %1165 }
 0x899   :  { %8487 = vrcp.f32 %v1166_v41 }
 0x89a   :  { %v9345_v46 = vpop.f32.mrb[40].mxu0 }
 0x89b   :  { %v7450_v52 = vpop.f32.mrb[41].mxu0 }
 0x89c   :  { %v1169_v53 = vpop.xlane.xlu0 %1168  ;;  %v1172_v55 = vpop.xlane.xlu1 %1171 }
 0x89d   :  { %8489 = vrcp.f32 %v1169_v53 }
 0x89e   :  { %v9347_v54 = vpop.f32.mrb[42].mxu0  ;;  %8491 = vrcp.f32 %v1172_v55 }
 0x89f   :  { %v7453_v32 = vpop.f32.mrb[43].mxu0 }
 0x8a0   :  { %v8330_v50 = vpop.permute.xlu0 %8329  ;;  %v1202_v14 = vpop.permute.xlu1 %1201 }
 0x8a1   :  { %v8332_v58 = vunpack.i.h.bf16 %v8330_v50  ;;  %v8331_v63 = vunpack.i.l.bf16 %v8330_v50 }
 0x8a3   :  { %v7992_v1 = vpack.c.bf16 %v8332_v58, %v8331_v63  ;;  %v8488_v33 = vpop.eup %8487 }
 0x8a4   :  { %v1188_v12 = vmul.f32 %v8488_v33, %v8482_v60 }
 0x8a5   :  { %7993 = vmatpush3.bf16.msra.mxu1 %v7992_v1 }
 0x8a6   :  { %7428 = vmatprep.subr.mxu1 %v8747_v36 }
 0x8a7   :  { %v1712_v2 = vpop.f32.mrb[44].mxu0  ;;  %v8490_v16 = vpop.eup %8489 }
 0x8a8   :  { %v1830_v4 = vmul.f32 0.25, %v1712_v2  ;;  %v7488_v7 = vpop.f32.mrb[45].mxu0  ;;  %v1189_v21 = vmul.f32 %v8490_v16, %v8484_v20  ;;  %v8492_v23 = vpop.eup %8491  ;;  %v442_v16 = vld [vmem:[%s10892_s6 + $0x10] sm:$0xff] }
 0x8a9   :  { %7429 = vmatpush3.msra.mxu1 %v1202_v14  ;;  %v1190_v15 = vmul.f32 %v8492_v23, %v8486_v24 }
 0x8aa   :  { %v1836_v17 = vadd.f32 %v1830_v4, %v9140_v31  ;;  %7431 = vmatmul.mubr.msk.f32.vlgmr.msra.gmra.mrb[16].mxu1 %vm663_vm5, %v1188_v12 }
 0x8ab   :  { %v1717_v44 = vpop.f32.mrb[46].mxu0  ;;  %7433 = vmatprep.mubr.msk.f32.mxu1 %vm8750_vm1, %v8747_v36 }
 0x8ac   :  { %v1831_v18 = vmul.f32 0.25, %v1717_v44  ;;  %v7491_v19 = vpop.f32.mrb[47].mxu0  ;;  %v1842_v51 = vsel %vm663_vm5, %v1836_v17, -inf  ;;  %v443_v44 = vld [vmem:[%s10892_s6 + $0x18] sm:$0xff] }
 0x8ad   :  { %1843 = vmax.xlane.f32.xlu1 %v1842_v51  ;;  %v440_v19 = vld [vmem:[%s10892_s6] sm:$0xff]  ;;  %v441_v51 = vld [vmem:[%s10892_s6 + $0x8] sm:$0xff] }
 0x8ae   :  { %v1837_v59 = vadd.f32 %v1831_v18, %v9140_v31  ;;  %7434 = vmatmul.mubr.msk.f32.gmra.mrb[18].mxu1 %vm663_vm5, %v1189_v21  ;;  %v7997_v18 = vpack.c.bf16 %v443_v44, %v442_v16  ;;  %v8001_v21 = vpack.c.bf16 %v441_v51, %v440_v19 }
 0x8af   :  { %v1722_v60 = vpop.f32.mrb[48].mxu0  ;;  %7436 = vmatprep.mubr.msk.f32.mxu1 %vm8750_vm1, %v8747_v36 }
 0x8b0   :  { %v1832_v3 = vmul.f32 0.25, %v1722_v60  ;;  %v7494_v40 = vpop.f32.mrb[49].mxu0  ;;  %v1845_v11 = vsel %vm663_vm5, %v1837_v59, -inf  ;;  %7998 = vmatprep.subr.bf16.mxu1 %v7997_v18 }
 0x8b1   :  { %1846 = vmax.xlane.f32.xlu0 %v1845_v11  ;;  %8000 = vmatpush3.bf16.msra.mxu1 %v7997_v18 }
 0x8b2   :  { %v1838_v41 = vadd.f32 %v1832_v3, %v9140_v31  ;;  %7437 = vmatmul.mubr.msk.f32.gmra.mrb[20].mxu1 %vm663_vm5, %v1190_v15  ;;  %8002 = vmatprep.subr.bf16.mxu1 %v8001_v21 }
 0x8b3   :  { %v1816_v20 = vpop.f32.mrb[50].mxu0 }
 0x8b4   :  { %v1833_v52 = vmul.f32 0.25, %v1816_v20  ;;  %v7503_v53 = vpop.f32.mrb[51].mxu0  ;;  %v1848_v32 = vsel %vm663_vm5, %v1838_v41, -inf }
 0x8b5   :  { %1849 = vmax.xlane.f32.xlu1 %v1848_v32 }
 0x8b6   :  { %v1839_v55 = vadd.f32 %v1833_v52, %v9140_v31 }
 0x8b7   :  { %v1821_v50 = vpop.f32.mrb[52].mxu0 }
 0x8b8   :  { %v1834_v58 = vmul.f32 0.25, %v1821_v50  ;;  %v7506_v63 = vpop.f32.mrb[53].mxu0  ;;  %v1851_v1 = vsel %vm663_vm5, %v1839_v55, -inf }
 0x8b9   :  { %1852 = vmax.xlane.f32.xlu0 %v1851_v1 }
 0x8ba   :  { %v1840_v24 = vadd.f32 %v1834_v58, %v9140_v31 }
 0x8bb   :  { %v1826_v33 = vpop.f32.mrb[54].mxu0 }
 0x8bc   :  { %v1835_v2 = vmul.f32 0.25, %v1826_v33  ;;  %v7509_v4 = vpop.f32.mrb[55].mxu0  ;;  %v1854_v7 = vsel %vm663_vm5, %v1840_v24, -inf }
 0x8bd   :  { %1855 = vmax.xlane.f32.xlu0 %v1854_v7 }
 0x8be   :  { %v1841_v12 = vadd.f32 %v1835_v2, %v9140_v31 }
 0x8c0   :  { %v1857_v14 = vsel %vm663_vm5, %v1841_v12, -inf }
 0x8c1   :  { %1858 = vmax.xlane.f32.xlu1 %v1857_v14 }
 0x93a   :  { %v1844_v23 = vpop.xlane.xlu1 %1843 }
 0x93b   :  { %v1860_v60 = vsub.f32 %v1836_v17, %v1844_v23 }
 0x93d   :  { %v1866_v3 = vmul.f32 1.442695, %v1860_v60 }
 0x93e   :  { %v1847_v40 = vpop.xlane.xlu0 %1846 }
 0x93f   :  { %8493 = vpow2.f32 %v1866_v3  ;;  %v1861_v11 = vsub.f32 %v1837_v59, %v1847_v40 }
 0x941   :  { %v1868_v15 = vmul.f32 1.442695, %v1861_v11 }
 0x942   :  { %v1850_v20 = vpop.xlane.xlu1 %1849 }
 0x943   :  { %8495 = vpow2.f32 %v1868_v15  ;;  %v1862_v52 = vsub.f32 %v1838_v41, %v1850_v20 }
 0x945   :  { %v1870_v53 = vmul.f32 1.442695, %v1862_v52 }
 0x946   :  { %v1853_v32 = vpop.xlane.xlu0 %1852 }
 0x947   :  { %8497 = vpow2.f32 %v1870_v53  ;;  %v1863_v50 = vsub.f32 %v1839_v55, %v1853_v32 }
 0x949   :  { %v9381_v58 = vpop.eup %8493  ;;  %v1872_v63 = vmul.f32 1.442695, %v1863_v50 }
 0x94a   :  { %v1856_v1 = vpop.xlane.xlu0 %1855  ;;  %v1878_v33 = vsel %vm663_vm5, %v9381_v58, 0.0 }
 0x94b   :  { %8499 = vpow2.f32 %v1872_v63  ;;  %v1864_v17 = vsub.f32 %v1840_v24, %v1856_v1  ;;  %1879 = vadd.xlane.f32.xlu0 %v1878_v33 }
 0x94d   :  { %v9385_v2 = vpop.eup %8495  ;;  %v1874_v59 = vmul.f32 1.442695, %v1864_v17 }
 0x94e   :  { %v1881_v41 = vsel %vm663_vm5, %v9385_v2, 0.0  ;;  %v1859_v44 = vpop.xlane.xlu1 %1858 }
 0x94f   :  { %8501 = vpow2.f32 %v1874_v59  ;;  %1882 = vadd.xlane.f32.xlu1 %v1881_v41  ;;  %v1865_v18 = vsub.f32 %v1841_v12, %v1859_v44 }
 0x951   :  { %v9389_v4 = vpop.eup %8497  ;;  %v1876_v19 = vmul.f32 1.442695, %v1865_v18 }
 0x952   :  { %v1884_v55 = vsel %vm663_vm5, %v9389_v4, 0.0 }
 0x953   :  { %1885 = vadd.xlane.f32.xlu1 %v1884_v55  ;;  %8503 = vpow2.f32 %v1876_v19 }
 0x955   :  { %v9393_v7 = vpop.eup %8499 }
 0x956   :  { %v1887_v24 = vsel %vm663_vm5, %v9393_v7, 0.0 }
 0x957   :  { %1888 = vadd.xlane.f32.xlu0 %v1887_v24 }
 0x959   :  { %v9397_v14 = vpop.eup %8501 }
 0x95a   :  { %v1890_v16 = vsel %vm663_vm5, %v9397_v14, 0.0 }
 0x95b   :  { %1891 = vadd.xlane.f32.xlu0 %v1890_v16 }
 0x964   :  { %8339 = vrot.lane.b32.xlu1 %v9088_v8, %s8755_s21 }
 0x968   :  { %1912 = vrot.lane.b32.xlu1 %v9074_v56, %s8755_s21 }
 0x971   :  { %8334 = vrot.lane.b32.xlu0 %v9061_v48, %s8755_s21 }
 0x975   :  { %8344 = vrot.lane.b32.xlu0 %v9059_v45, %s8756_s29 }
 0x979   :  { %8349 = vrot.lane.b32.xlu0 %v9085_v6, %s8756_s29  ;;  %v9421_v6 = vpop.eup %8503 }
 0x97a   :  { %v1893_v12 = vsel %vm663_vm5, %v9421_v6, 0.0 }
 0x97d   :  { %2225 = vrot.lane.b32.xlu0 %v9055_v39, %s10904_s1  ;;  %v1281_v51 = vpop.f32.mrb[16].mxu1 }
 0x97e   :  { %v7432_v23 = vpop.f32.mrb[17].mxu1  ;;  %7458 = vmatprep.mubr.msk.f32.mxu1 %vm457_vm2, %v1281_v51 }
 0x981   :  { %2227 = vrot.lane.b32.xlu0 %v9063_v49, %s10904_s1  ;;  %v1286_v60 = vpop.f32.mrb[18].mxu1 }
 0x982   :  { %v7435_v3 = vpop.f32.mrb[19].mxu1  ;;  %7459 = vmatmul.mubr.msk.f32.vlgmr.msra.gmra.mrb[22].mxu1 %vm457_vm2, %v1286_v60 }
 0x983   :  { %8004 = vmatpush3.bf16.msra.mxu1 %v8001_v21  ;;  %v445_v21 = vld [vmem:[%s10892_s6 + $0x28] sm:$0xff] }
 0x984   :  { %8013 = vmatprep.subr.bf16.mxu1 %v8748_v27 }
 0x985   :  { %2329 = vrot.lane.b32.xlu0 %v9076_v61, %s10904_s1  ;;  %v1291_v45 = vpop.f32.mrb[20].mxu1 }
 0x986   :  { %v7438_v39 = vpop.f32.mrb[21].mxu1  ;;  %7461 = vmatprep.mubr.msk.f32.mxu1 %vm457_vm2, %v1291_v45 }
 0x987   :  { %7462 = vmatmul.mubr.msk.f32.gmra.mrb[24].mxu1 %vm457_vm2, %v9343_v10 }
 0x988   :  { %7464 = vmatprep.mubr.msk.f32.mxu1 %vm457_vm2, %v9345_v46 }
 0x98b   :  { %7465 = vmatmul.mubr.msk.f32.gmra.mrb[26].mxu1 %vm457_vm2, %v9347_v54 }
 0x98c   :  { %1894 = vadd.xlane.f32.xlu1 %v1893_v12  ;;  %7471 = vmatprep.mubr.msk.f32.mxu1 %vm457_vm2, %v9271_v42 }
 0x98f   :  { %7472 = vmatmul.mubr.msk.f32.vlgmr.msra.gmra.mrb[22].mxu1 %vm457_vm2, %v9273_v43 }
 0x990   :  { %7474 = vmatprep.mubr.msk.f32.mxu1 %vm457_vm2, %v9275_v47 }
 0x993   :  { %7475 = vmatmul.mubr.msk.f32.gmra.mrb[24].mxu1 %vm457_vm2, %v9203_v26 }
 0x994   :  { %7477 = vmatprep.mubr.msk.f32.mxu1 %vm457_vm2, %v9205_v28 }
 0x997   :  { %7478 = vmatmul.mubr.msk.f32.gmra.mrb[26].mxu1 %vm457_vm2, %v9208_v34 }
 0x998   :  { %7516 = vmatprep.mubr.msk.f32.mxu1 %vm8750_vm1, %v8747_v36 }
 0x99d   :  { %2010 = vrot.lane.b32.xlu1 %v9081_v5, %s8755_s21 }
 0x9a1   :  { %2233 = vrot.lane.b32.xlu1 %v9063_v49, %s8756_s29 }
 0x9a5   :  { %2223 = vrot.lane.b32.xlu1 %v9053_v35, %s10904_s1 }
 0x9a9   :  { %2337 = vrot.lane.b32.xlu1 %v9092_v9, %s8756_s29 }
 0x9ad   :  { %2327 = vrot.lane.b32.xlu1 %v9078_v62, %s10904_s1 }
 0x9b1   :  { %2331 = vrot.lane.b32.xlu1 %v9092_v9, %s10904_s1  ;;  %v444_v9 = vld [vmem:[%s10892_s6 + $0x20] sm:$0xff] }
 0x9b2   :  { %v8019_v11 = vpack.c.bf16 %v445_v21, %v444_v9 }
 0x9d8   :  { %v1880_v26 = vpop.xlane.xlu0 %1879 }
 0x9d9   :  { %8505 = vrcp.f32 %v1880_v26 }
 0x9dc   :  { %v1883_v61 = vpop.xlane.xlu1 %1882 }
 0x9dd   :  { %8507 = vrcp.f32 %v1883_v61 }
 0x9e0   :  { %v1886_v28 = vpop.xlane.xlu1 %1885 }
 0x9e1   :  { %8509 = vrcp.f32 %v1886_v28 }
 0x9e3   :  { %v8506_v40 = vpop.eup %8505 }
 0x9e4   :  { %v1889_v34 = vpop.xlane.xlu0 %1888  ;;  %v8340_v42 = vpop.permute.xlu1 %8339  ;;  %v1902_v15 = vmul.f32 %v8506_v40, %v9381_v58 }
 0x9e5   :  { %v8342_v43 = vunpack.i.h.bf16 %v8340_v42  ;;  %v8341_v47 = vunpack.i.l.bf16 %v8340_v42  ;;  %8511 = vrcp.f32 %v1889_v34 }
 0x9e7   :  { %v8017_v49 = vpack.c.bf16 %v8342_v43, %v8341_v47  ;;  %v8508_v52 = vpop.eup %8507 }
 0x9e8   :  { %v1892_v10 = vpop.xlane.xlu0 %1891  ;;  %v1913_v20 = vpop.permute.xlu1 %1912  ;;  %v1903_v53 = vmul.f32 %v8508_v52, %v9385_v2 }
 0x9e9   :  { %8018 = vmatpush3.bf16.msra.mxu0 %v8017_v49  ;;  %8513 = vrcp.f32 %v1892_v10 }
 0x9ea   :  { %7529 = vmatprep.subr.mxu0 %v8747_v36 }
 0x9eb   :  { %v8510_v32 = vpop.eup %8509 }
 0x9ec   :  { %v8335_v35 = vpop.permute.xlu0 %8334  ;;  %v1904_v50 = vmul.f32 %v8510_v32, %v9389_v4 }
 0x9ed   :  { %v8337_v46 = vunpack.i.h.bf16 %v8335_v35  ;;  %v8336_v62 = vunpack.i.l.bf16 %v8335_v35 }
 0x9ef   :  { %v8014_v54 = vpack.c.bf16 %v8337_v46, %v8336_v62  ;;  %v8512_v63 = vpop.eup %8511 }
 0x9f0   :  { %v8345_v1 = vpop.permute.xlu0 %8344  ;;  %v1905_v33 = vmul.f32 %v8512_v63, %v9393_v7 }
 0x9f1   :  { %8015 = vmatpush3.bf16.msra.mxu1 %v8014_v54  ;;  %v8347_v59 = vunpack.i.h.bf16 %v8345_v1  ;;  %v8346_v41 = vunpack.i.l.bf16 %v8345_v1 }
 0x9f2   :  { %7514 = vmatprep.subr.mxu1 %v8747_v36 }
 0x9f3   :  { %v8514_v2 = vpop.eup %8513  ;;  %v8024_v55 = vpack.c.bf16 %v8347_v59, %v8346_v41 }
 0x9f4   :  { %v1906_v4 = vmul.f32 %v8514_v2, %v9397_v14  ;;  %v8350_v16 = vpop.permute.xlu0 %8349 }
 0x9f5   :  { %7515 = vmatpush3.msra.mxu1 %v1913_v20  ;;  %v8352_v51 = vunpack.i.h.bf16 %v8350_v16  ;;  %v8351_v23 = vunpack.i.l.bf16 %v8350_v16 }
 0x9f6   :  { %7517 = vmatmul.mubr.msk.f32.vlgmr.msra.gmra.mrb[28].mxu1 %vm663_vm5, %v1902_v15  ;;  %8020 = vmatprep.subr.bf16.mxu1 %v8019_v11 }
 0x9f7   :  { %7519 = vmatprep.mubr.msk.f32.mxu1 %vm8750_vm1, %v8747_v36  ;;  %8022 = vmatpush3.bf16.msra.mxu1 %v8019_v11  ;;  %v8028_v45 = vpack.c.bf16 %v8352_v51, %v8351_v23 }
 0x9f8   :  { %8027 = vmatprep.subr.bf16.mxu1 %v8748_v27  ;;  %v2226_v18 = vpop.permute.xlu0 %2225 }
 0x9fa   :  { %7520 = vmatmul.mubr.msk.f32.gmra.mrb[30].mxu1 %vm663_vm5, %v1903_v53 }
 0x9fb   :  { %7522 = vmatprep.mubr.msk.f32.mxu1 %vm8750_vm1, %v8747_v36 }
 0x9fc   :  { %v2228_v19 = vpop.permute.xlu0 %2227 }
 0x9fe   :  { %7523 = vmatmul.mubr.msk.f32.gmra.mrb[32].mxu1 %vm663_vm5, %v1904_v50 }
 0xa00   :  { %v2330_v35 = vpop.permute.xlu0 %2329 }
 0xa19   :  { %v1895_v58 = vpop.xlane.xlu1 %1894 }
 0xa1a   :  { %8515 = vrcp.f32 %v1895_v58 }
 0xa1d   :  { %v2011_v17 = vpop.permute.xlu1 %2010 }
 0xa1e   :  { %7530 = vmatpush3.msra.mxu0 %v2011_v17 }
 0xa1f   :  { %7532 = vmatmul.mubr.msk.f32.vlgmr.msra.gmra.mrb[56].mxu0 %vm663_vm5, %v1905_v33  ;;  %8023 = vmatprep.subr.bf16.mxu0 %v8748_v27 }
 0xa20   :  { %7534 = vmatprep.mubr.msk.f32.mxu0 %vm8750_vm1, %v8747_v36 }
 0xa21   :  { %v2234_v14 = vpop.permute.xlu1 %2233 }
 0xa23   :  { %7535 = vmatmul.mubr.msk.f32.gmra.mrb[58].mxu0 %vm663_vm5, %v1906_v4 }
 0xa24   :  { %v8516_v24 = vpop.eup %8515  ;;  %7537 = vmatprep.mubr.msk.f32.mxu0 %vm8750_vm1, %v8747_v36 }
 0xa25   :  { %8026 = vmatpush3.bf16.xpose.msk.msra.mxu0 %vm9098_vm3, %v8024_v55  ;;  %v1907_v7 = vmul.f32 %v8516_v24, %v9421_v6  ;;  %v2224_v44 = vpop.permute.xlu1 %2223 }
 0xa26   :  { %7557 = vmatprep.subr.mxu0 %v8747_v36 }
 0xa27   :  { %7538 = vmatmul.mubr.msk.f32.gmra.mrb[60].mxu0 %vm663_vm5, %v1907_v7 }
 0xa28   :  { %7559 = vmatprep.mubr.msk.f32.mxu0 %vm8750_vm1, %v8747_v36 }
 0xa29   :  { %v2338_v26 = vpop.permute.xlu1 %2337 }
 0xa2d   :  { %7558 = vmatpush3.xpose.msk.msra.mxu0 %vm457_vm2, %v2234_v14  ;;  %v2328_v10 = vpop.permute.xlu1 %2327 }
 0xa2e   :  { %8031 = vmatprep.subr.bf16.mxu0 %v8748_v27 }
 0xa30   :  { %7560 = vmatmul.mubr.msk.f32.vlgmr.msra.gmra.mrb[62].mxu0 %vm457_vm2, %v2224_v44 }
 0xa31   :  { %7562 = vmatprep.mubr.msk.f32.mxu0 %vm8750_vm1, %v8747_v36  ;;  %v2332_v9 = vpop.permute.xlu1 %2331 }
 0xa34   :  { %7563 = vmatmul.mubr.msk.f32.gmra.mrb[64].mxu0 %vm457_vm2, %v2226_v18 }
 0xa35   :  { %7565 = vmatprep.mubr.msk.f32.mxu0 %vm8750_vm1, %v8747_v36 }
 0xa38   :  { %7566 = vmatmul.mubr.msk.f32.gmra.mrb[66].mxu0 %vm457_vm2, %v2228_v19 }
 0xa39   :  { %7589 = vmatprep.mubr.msk.f32.mxu0 %vm8750_vm1, %v8747_v36 }
 0xac9   :  { %v1992_v60 = vpop.f32.mrb[28].mxu1 }
 0xaca   :  { %v7518_v3 = vpop.f32.mrb[29].mxu1  ;;  %7544 = vmatprep.mubr.msk.f32.mxu1 %vm457_vm2, %v1992_v60 }
 0xacd   :  { %v1997_v39 = vpop.f32.mrb[30].mxu1 }
 0xace   :  { %v7521_v6 = vpop.f32.mrb[31].mxu1  ;;  %7545 = vmatmul.mubr.msk.f32.vlgmr.msra.gmra.mrb[22].mxu1 %vm457_vm2, %v1997_v39 }
 0xacf   :  { %8030 = vmatpush3.bf16.xpose.msk.msra.mxu1 %vm9098_vm3, %v8028_v45 }
 0xad0   :  { %7572 = vmatprep.subr.mxu1 %v8747_v36 }
 0xad1   :  { %v2002_v12 = vpop.f32.mrb[32].mxu1 }
 0xad2   :  { %v7524_v61 = vpop.f32.mrb[33].mxu1  ;;  %7547 = vmatprep.mubr.msk.f32.mxu1 %vm457_vm2, %v2002_v12 }
 0xad7   :  { %7573 = vmatpush3.xpose.msk.msra.mxu1 %vm457_vm2, %v2338_v26 }
 0xad8   :  { %8034 = vmatprep.subr.bf16.mxu1 %v8748_v27 }
 0xaf2   :  { %v2090_v28 = vpop.f32.mrb[56].mxu0 }
 0xaf3   :  { %v7533_v34 = vpop.f32.mrb[57].mxu0  ;;  %7548 = vmatmul.mubr.msk.f32.gmra.mrb[24].mxu1 %vm457_vm2, %v2090_v28 }
 0xaf6   :  { %v2095_v42 = vpop.f32.mrb[58].mxu0 }
 0xaf7   :  { %v7536_v43 = vpop.f32.mrb[59].mxu0  ;;  %7550 = vmatprep.mubr.msk.f32.mxu1 %vm457_vm2, %v2095_v42 }
 0xafa   :  { %v2100_v47 = vpop.f32.mrb[60].mxu0 }
 0xafb   :  { %v7539_v49 = vpop.f32.mrb[61].mxu0  ;;  %7551 = vmatmul.mubr.msk.f32.gmra.mrb[26].mxu1 %vm457_vm2, %v2100_v47 }
 0xafc   :  { %7574 = vmatprep.mubr.msk.f32.mxu1 %vm8750_vm1, %v8747_v36 }
 0xaff   :  { %7575 = vmatmul.mubr.msk.f32.vlgmr.msra.gmra.mrb[34].mxu1 %vm457_vm2, %v2328_v10 }
 0xb00   :  { %7577 = vmatprep.mubr.msk.f32.mxu1 %vm8750_vm1, %v8747_v36 }
 0xb03   :  { %v2313_v46 = vpop.f32.mrb[62].mxu0  ;;  %7578 = vmatmul.mubr.msk.f32.gmra.mrb[36].mxu1 %vm457_vm2, %v2330_v35 }
 0xb04   :  { %v2431_v62 = vmul.f32 0.25, %v2313_v46  ;;  %v7561_v54 = vpop.f32.mrb[63].mxu0  ;;  %7580 = vmatprep.mubr.msk.f32.mxu1 %vm8750_vm1, %v8747_v36 }
 0xb06   :  { %v2437_v21 = vadd.f32 %v2431_v62, %v9140_v31 }
 0xb07   :  { %v2318_v40 = vpop.f32.mrb[64].mxu0  ;;  %7581 = vmatmul.mubr.msk.f32.gmra.mrb[38].mxu1 %vm457_vm2, %v2332_v9 }
 0xb08   :  { %v2432_v11 = vmul.f32 0.25, %v2318_v40  ;;  %v7564_v15 = vpop.f32.mrb[65].mxu0  ;;  %v2443_v20 = vsel %vm663_vm5, %v2437_v21, -inf  ;;  %7604 = vmatprep.mubr.msk.f32.mxu1 %vm8750_vm1, %v8747_v36 }
 0xb09   :  { %2444 = vmax.xlane.f32.xlu0 %v2443_v20 }
 0xb0a   :  { %v2438_v52 = vadd.f32 %v2432_v11, %v9140_v31 }
 0xb0b   :  { %v2323_v53 = vpop.f32.mrb[66].mxu0 }
 0xb0c   :  { %v2433_v32 = vmul.f32 0.25, %v2323_v53  ;;  %v7567_v50 = vpop.f32.mrb[67].mxu0  ;;  %v2446_v58 = vsel %vm663_vm5, %v2438_v52, -inf }
 0xb0d   :  { %2447 = vmax.xlane.f32.xlu1 %v2446_v58 }
 0xb0e   :  { %v2439_v63 = vadd.f32 %v2433_v32, %v9140_v31 }
 0xb10   :  { %v2449_v1 = vsel %vm663_vm5, %v2439_v63, -inf }
 0xb11   :  { %2450 = vmax.xlane.f32.xlu0 %v2449_v1 }
 0xb96   :  { %v2445_v33 = vpop.xlane.xlu0 %2444 }
 0xb97   :  { %v2461_v17 = vsub.f32 %v2437_v21, %v2445_v33 }
 0xb99   :  { %v2467_v4 = vmul.f32 1.442695, %v2461_v17 }
 0xb9a   :  { %v2448_v2 = vpop.xlane.xlu1 %2447 }
 0xb9b   :  { %v2462_v41 = vsub.f32 %v2438_v52, %v2448_v2  ;;  %8517 = vpow2.f32 %v2467_v4 }
 0xb9d   :  { %v2469_v24 = vmul.f32 1.442695, %v2462_v41 }
 0xb9e   :  { %v2451_v59 = vpop.xlane.xlu0 %2450 }
 0xb9f   :  { %v2463_v55 = vsub.f32 %v2439_v63, %v2451_v59  ;;  %8519 = vpow2.f32 %v2469_v24 }
 0xba1   :  { %v2471_v7 = vmul.f32 1.442695, %v2463_v55 }
 0xba3   :  { %8521 = vpow2.f32 %v2471_v7 }
 0xba5   :  { %v8518_v61 = vpop.eup %8517 }
 0xba6   :  { %v2479_v42 = vsel %vm663_vm5, %v8518_v61, 0.0 }
 0xba9   :  { %v8520_v28 = vpop.eup %8519 }
 0xbaa   :  { %v2482_v47 = vsel %vm663_vm5, %v8520_v28, 0.0 }
 0xbad   :  { %v9538_v43 = vpop.eup %8521 }
 0xbae   :  { %v2485_v49 = vsel %vm663_vm5, %v9538_v43, 0.0 }
 0xbd2   :  { %v2417_v14 = vpop.f32.mrb[34].mxu1 }
 0xbd3   :  { %v2434_v16 = vmul.f32 0.25, %v2417_v14  ;;  %v7576_v44 = vpop.f32.mrb[35].mxu1 }
 0xbd5   :  { %v2440_v18 = vadd.f32 %v2434_v16, %v9140_v31 }
 0xbd6   :  { %v2422_v19 = vpop.f32.mrb[36].mxu1 }
 0xbd7   :  { %v2435_v51 = vmul.f32 0.25, %v2422_v19  ;;  %v7579_v23 = vpop.f32.mrb[37].mxu1  ;;  %v2452_v60 = vsel %vm663_vm5, %v2440_v18, -inf }
 0xbd8   :  { %2453 = vmax.xlane.f32.xlu0 %v2452_v60 }
 0xbd9   :  { %v2441_v3 = vadd.f32 %v2435_v51, %v9140_v31 }
 0xbda   :  { %v2427_v45 = vpop.f32.mrb[38].mxu1 }
 0xbdb   :  { %v2436_v39 = vmul.f32 0.25, %v2427_v45  ;;  %v7582_v6 = vpop.f32.mrb[39].mxu1  ;;  %v2455_v12 = vsel %vm663_vm5, %v2441_v3, -inf }
 0xbdc   :  { %2456 = vmax.xlane.f32.xlu0 %v2455_v12  ;;  %v446_v12 = vld [vmem:[%s10892_s6 + $0x30] sm:$0xff] }
 0xbdd   :  { %v2442_v26 = vadd.f32 %v2436_v39, %v9140_v31 }
 0xbdf   :  { %v2458_v34 = vsel %vm663_vm5, %v2442_v26, -inf }
 0xbe0   :  { %2459 = vmax.xlane.f32.xlu1 %v2458_v34  ;;  %2480 = vadd.xlane.f32.xlu0 %v2479_v42 }
 0xbe4   :  { %2483 = vadd.xlane.f32.xlu1 %v2482_v47  ;;  %2486 = vadd.xlane.f32.xlu0 %v2485_v49 }
 0xc65   :  { %v2454_v10 = vpop.xlane.xlu0 %2453 }
 0xc66   :  { %v2464_v35 = vsub.f32 %v2440_v18, %v2454_v10 }
 0xc68   :  { %v2473_v46 = vmul.f32 1.442695, %v2464_v35 }
 0xc69   :  { %v2457_v62 = vpop.xlane.xlu0 %2456 }
 0xc6a   :  { %8523 = vpow2.f32 %v2473_v46  ;;  %v2465_v54 = vsub.f32 %v2441_v3, %v2457_v62 }
 0xc6c   :  { %v2475_v9 = vmul.f32 1.442695, %v2465_v54 }
 0xc6d   :  { %v2460_v20 = vpop.xlane.xlu1 %2459  ;;  %v2481_v58 = vpop.xlane.xlu0 %2480 }
 0xc6e   :  { %8525 = vpow2.f32 %v2475_v9  ;;  %v2466_v52 = vsub.f32 %v2442_v26, %v2460_v20 }
 0xc70   :  { %v2477_v53 = vmul.f32 1.442695, %v2466_v52 }
 0xc71   :  { %v2484_v63 = vpop.xlane.xlu1 %2483 }
 0xc72   :  { %8527 = vpow2.f32 %v2477_v53 }
 0xc73   :  { %8529 = vrcp.f32 %v2481_v58 }
 0xc74   :  { %v8524_v21 = vpop.eup %8523  ;;  %8531 = vrcp.f32 %v2484_v63 }
 0xc75   :  { %v2488_v40 = vsel %vm663_vm5, %v8524_v21, 0.0 }
 0xc76   :  { %2489 = vadd.xlane.f32.xlu1 %v2488_v40  ;;  %v6730_v40 = vld [vmem:[%s10893_s7] ss:$0 sm:$0xff] }
 0xc78   :  { %v8526_v11 = vpop.eup %8525 }
 0xc79   :  { %v2491_v15 = vsel %vm663_vm5, %v8526_v11, 0.0 }
 0xc7a   :  { %2492 = vadd.xlane.f32.xlu0 %v2491_v15 }
 0xc7c   :  { %v8528_v32 = vpop.eup %8527 }
 0xc7d   :  { %v2494_v50 = vsel %vm663_vm5, %v8528_v32, 0.0  ;;  %v8530_v7 = vpop.eup %8529 }
 0xc7e   :  { %v8532_v14 = vpop.eup %8531 }
 0xc7f   :  { %v2504_v16 = vmul.f32 %v8532_v14, %v8520_v28 }
 0xc87   :  { %2513 = vrot.lane.b32.xlu1 %v9074_v56, %s10904_s1  ;;  %v2487_v56 = vpop.xlane.xlu0 %2486 }
 0xc88   :  { %8533 = vrcp.f32 %v2487_v56 }
 0xc8b   :  { %8359 = vrot.lane.b32.xlu1 %v9088_v8, %s10904_s1 }
 0xc90   :  { %8354 = vrot.lane.b32.xlu0 %v9061_v48, %s10904_s1 }
 0xc92   :  { %v8534_v44 = vpop.eup %8533 }
 0xc93   :  { %v2505_v18 = vmul.f32 %v8534_v44, %v9538_v43 }
 0xcaf   :  { %2495 = vadd.xlane.f32.xlu1 %v2494_v50 }
 0xcc0   :  { %2611 = vrot.lane.b32.xlu1 %v9081_v5, %s10904_s1  ;;  %v2503_v5 = vmul.f32 %v8530_v7, %v8518_v61  ;;  %v447_v61 = vld [vmem:[%s10892_s6 + $0x38] sm:$0xff] }
 0xcc1   :  { %v8037_v26 = vpack.c.bf16 %v447_v61, %v446_v12  ;;  %v2945_v61 = vld [vmem:[%s10895_s9 + $0x20] sm:$0xff] }
 0xd03   :  { %v2490_v1 = vpop.xlane.xlu1 %2489 }
 0xd04   :  { %8535 = vrcp.f32 %v2490_v1 }
 0xd07   :  { %v2514_v8 = vpop.permute.xlu1 %2513  ;;  %v2493_v33 = vpop.xlane.xlu0 %2492 }
 0xd08   :  { %8537 = vrcp.f32 %v2493_v33 }
 0xd0b   :  { %v8360_v48 = vpop.permute.xlu1 %8359  ;;  %v8355_v17 = vpop.permute.xlu0 %8354 }
 0xd0c   :  { %v8362_v2 = vunpack.i.h.bf16 %v8360_v48  ;;  %v8361_v59 = vunpack.i.l.bf16 %v8360_v48  ;;  %v8357_v41 = vunpack.i.h.bf16 %v8355_v17  ;;  %v8356_v4 = vunpack.i.l.bf16 %v8355_v17 }
 0xd0e   :  { %v8035_v55 = vpack.c.bf16 %v8362_v2, %v8361_v59  ;;  %v8032_v24 = vpack.c.bf16 %v8357_v41, %v8356_v4  ;;  %v8536_v51 = vpop.eup %8535 }
 0xd0f   :  { %v2506_v23 = vmul.f32 %v8536_v51, %v8524_v21  ;;  %v2944_v51 = vld [vmem:[%s10895_s9 + $0x18] sm:$0xff] }
 0xd10   :  { %8033 = vmatpush3.bf16.msra.mxu0 %v8032_v24  ;;  %8036 = vmatpush3.bf16.msra.mxu1 %v8035_v55 }
 0xd11   :  { %7587 = vmatprep.subr.mxu0 %v8747_v36  ;;  %7602 = vmatprep.subr.mxu1 %v8747_v36 }
 0xd12   :  { %v8538_v3 = vpop.eup %8537 }
 0xd13   :  { %v2507_v45 = vmul.f32 %v8538_v3, %v8526_v11  ;;  %v2943_v3 = vld [vmem:[%s10895_s9 + $0x10] sm:$0xff] }
 0xd14   :  { %7588 = vmatpush3.msra.mxu0 %v2514_v8 }
 0xd15   :  { %7590 = vmatmul.mubr.msk.f32.vlgmr.msra.gmra.mrb[68].mxu0 %vm663_vm5, %v2503_v5 }
 0xd16   :  { %7592 = vmatprep.mubr.msk.f32.mxu0 %vm8750_vm1, %v8747_v36 }
 0xd19   :  { %7593 = vmatmul.mubr.msk.f32.gmra.mrb[70].mxu0 %vm663_vm5, %v2504_v16 }
 0xd1a   :  { %7595 = vmatprep.mubr.msk.f32.mxu0 %vm8750_vm1, %v8747_v36 }
 0xd1d   :  { %7596 = vmatmul.mubr.msk.f32.gmra.mrb[72].mxu0 %vm663_vm5, %v2505_v18 }
 0xd1e   :  { %3051 = vmatprep.mubr.f32.mxu0 %v8747_v36 }
 0xd3c   :  { %v2496_v19 = vpop.xlane.xlu1 %2495 }
 0xd3d   :  { %8539 = vrcp.f32 %v2496_v19  ;;  %v2942_v19 = vld [vmem:[%s10895_s9 + $0x8] sm:$0xff] }
 0xd40   :  { %v2612_v60 = vpop.permute.xlu1 %2611 }
 0xd41   :  { %7603 = vmatpush3.msra.mxu1 %v2612_v60  ;;  %v2941_v60 = vld [vmem:[%s10895_s9] sm:$0xff] }
 0xd42   :  { %7605 = vmatmul.mubr.msk.f32.vlgmr.msra.gmra.mrb[40].mxu1 %vm663_vm5, %v2506_v23  ;;  %8038 = vmatprep.subr.bf16.mxu1 %v8037_v26  ;;  %v8041_v23 = vpack.c.bf16 %v2944_v51, %v2942_v19 }
 0xd43   :  { %7607 = vmatprep.mubr.msk.f32.mxu1 %vm8750_vm1, %v8747_v36  ;;  %8040 = vmatpush3.bf16.msra.mxu1 %v8037_v26  ;;  %v2947_v26 = vld [vmem:[%s10895_s9 + $0x30] sm:$0xff] }
 0xd44   :  { %8042 = vmatprep.subr.bf16.mxu0 %v8041_v23 }
 0xd46   :  { %7608 = vmatmul.mubr.msk.f32.gmra.mrb[42].mxu1 %vm663_vm5, %v2507_v45  ;;  %v8043_v45 = vpack.c.bf16 %v2943_v3, %v2941_v60 }
 0xd47   :  { %v8540_v39 = vpop.eup %8539  ;;  %7610 = vmatprep.mubr.msk.f32.mxu1 %vm8750_vm1, %v8747_v36 }
 0xd48   :  { %v2508_v6 = vmul.f32 %v8540_v39, %v8528_v32  ;;  %8044 = vmatpush1.bf16.msra.mxu0 %v8043_v45  ;;  %v2946_v39 = vld [vmem:[%s10895_s9 + $0x28] sm:$0xff] }
 0xd4a   :  { %7611 = vmatmul.mubr.msk.f32.gmra.mrb[44].mxu1 %vm663_vm5, %v2508_v6  ;;  %v2948_v6 = vld [vmem:[%s10895_s9 + $0x38] sm:$0xff] }
 0xd4b   :  { %v8045_v12 = vpack.c.bf16 %v2948_v6, %v2946_v39  ;;  %v193_v39 = vld [vmem:[%s10894_s8] sm:$0x3] }
 0xd4d   :  { %8046 = vmatprep.subr.bf16.mxu0 %v8045_v12  ;;  %v2924_v12 = vrot.slane %v193_v39, %v9021_v57 }
 0xde8   :  { %v2593_v28 = vpop.f32.mrb[68].mxu0 }
 0xde9   :  { %v7591_v34 = vpop.f32.mrb[69].mxu0  ;;  %7617 = vmatprep.mubr.msk.f32.mxu1 %vm457_vm2, %v2593_v28  ;;  %v8047_v28 = vpack.c.bf16 %v2947_v26, %v2945_v61 }
 0xdea   :  { %v2950_v34 = vld [vmem:[%s10895_s9 + $0x48] sm:$0xff] }
 0xdeb   :  { %8048 = vmatpush1.bf16.msra.mxu0 %v8047_v28  ;;  %v2934_v28 = vrot.slane %v193_v39, %v9026_v0  ;;  %v3219_v39 = vld [vmem:[%s10897_s11 + $0xb8] sm:$0xff] }
 0xdec   :  { %v2598_v42 = vpop.f32.mrb[70].mxu0 }
 0xded   :  { %v7594_v43 = vpop.f32.mrb[71].mxu0  ;;  %7618 = vmatmul.mubr.msk.f32.vlgmr.msra.gmra.mrb[22].mxu1 %vm457_vm2, %v2598_v42  ;;  %v2952_v42 = vld [vmem:[%s10895_s9 + $0x58] sm:$0xff] }
 0xdee   :  { %v8049_v43 = vpack.c.bf16 %v2952_v42, %v2950_v34 }
 0xdf0   :  { %v2603_v47 = vpop.f32.mrb[72].mxu0  ;;  %8050 = vmatprep.subr.bf16.mxu0 %v8049_v43 }
 0xdf1   :  { %v7597_v49 = vpop.f32.mrb[73].mxu0  ;;  %7620 = vmatprep.mubr.msk.f32.mxu1 %vm457_vm2, %v2603_v47  ;;  %v2949_v47 = vld [vmem:[%s10895_s9 + $0x40] sm:$0xff] }
 0xdf2   :  { %v2951_v49 = vld [vmem:[%s10895_s9 + $0x50] sm:$0xff] }
 0xe15   :  { %v2691_v10 = vpop.f32.mrb[40].mxu1 }
 0xe16   :  { %v7606_v35 = vpop.f32.mrb[41].mxu1  ;;  %7621 = vmatmul.mubr.msk.f32.gmra.mrb[24].mxu1 %vm457_vm2, %v2691_v10  ;;  %v8051_v10 = vpack.c.bf16 %v2951_v49, %v2949_v47 }
 0xe17   :  { %v2954_v35 = vld [vmem:[%s10895_s9 + $0x68] sm:$0xff] }
 0xe18   :  { %8052 = vmatpush1.bf16.msra.mxu0 %v8051_v10 }
 0xe19   :  { %v2696_v46 = vpop.f32.mrb[42].mxu1 }
 0xe1a   :  { %v7609_v62 = vpop.f32.mrb[43].mxu1  ;;  %7623 = vmatprep.mubr.msk.f32.mxu1 %vm457_vm2, %v2696_v46  ;;  %v2956_v46 = vld [vmem:[%s10895_s9 + $0x78] sm:$0xff] }
 0xe1b   :  { %v8053_v62 = vpack.c.bf16 %v2956_v46, %v2954_v35 }
 0xe1d   :  { %v2701_v54 = vpop.f32.mrb[44].mxu1  ;;  %8054 = vmatprep.subr.bf16.mxu0 %v8053_v62 }
 0xe1e   :  { %v7612_v9 = vpop.f32.mrb[45].mxu1  ;;  %7624 = vmatmul.mubr.msk.f32.gmra.mrb[26].mxu1 %vm457_vm2, %v2701_v54  ;;  %v2953_v54 = vld [vmem:[%s10895_s9 + $0x60] sm:$0xff] }
 0xe1f   :  { %v2955_v9 = vld [vmem:[%s10895_s9 + $0x70] sm:$0xff] }
 0xec0   :  { %v7619_v21 = vpop.f32.mrb[22].mxu1 }
 0xec1   :  { %v2825_v11 = vadd.f32 %v7619_v21, %v8906_v25  ;;  %v2789_v15 = vpop.f32.mrb[23].mxu1  ;;  %v8055_v21 = vpack.c.bf16 %v2955_v9, %v2953_v54 }
 0xec2   :  { %v2824_v20 = vadd.f32 %v2789_v15, %v8898_v22 }
 0xec3   :  { %v9589_v52 = vadd.f32 %v6730_v40, %v2825_v11  ;;  %8056 = vmatpush1.bf16.msra.mxu0 %v8055_v21 }
 0xec4   :  { %v9591_v53 = vadd.f32 %v6730_v40, %v2824_v20 }
 0xec5   :  { %v2846_v32 = vsel %vm74_vm0, %v9589_v52, 0.0 }
 0xec6   :  { %2847 = vadd.xlane.f32.xlu1 %v2846_v32  ;;  %v2843_v50 = vsel %vm74_vm0, %v9591_v53, 0.0 }
 0xec7   :  { %2844 = vadd.xlane.f32.xlu0 %v2843_v50 }
 0xee9   :  { %v7622_v58 = vpop.f32.mrb[24].mxu1 }
 0xeea   :  { %v2799_v63 = vpop.f32.mrb[25].mxu1  ;;  %v2827_v56 = vadd.f32 %v7622_v58, %v8910_v29 }
 0xeeb   :  { %v2826_v25 = vadd.f32 %v2799_v63, %v8912_v30 }
 0xeec   :  { %v9601_v22 = vadd.f32 %v6730_v40, %v2827_v56 }
 0xeed   :  { %v9599_v1 = vadd.f32 %v6730_v40, %v2826_v25 }
 0xeee   :  { %v2852_v59 = vsel %vm74_vm0, %v9601_v22, 0.0 }
 0xeef   :  { %v2849_v8 = vsel %vm74_vm0, %v9599_v1, 0.0 }
 0xef0   :  { %2850 = vadd.xlane.f32.xlu0 %v2849_v8 }
 0xef1   :  { %v7625_v33 = vpop.f32.mrb[26].mxu1 }
 0xef2   :  { %v2829_v48 = vadd.f32 %v7625_v33, %v8924_v37  ;;  %v2809_v17 = vpop.f32.mrb[27].mxu1 }
 0xef3   :  { %v2828_v2 = vadd.f32 %v2809_v17, %v8926_v38 }
 0xef4   :  { %v9609_v29 = vadd.f32 %v6730_v40, %v2829_v48  ;;  %2853 = vadd.xlane.f32.xlu0 %v2852_v59 }
 0xef5   :  { %v9611_v30 = vadd.f32 %v6730_v40, %v2828_v2 }
 0xef6   :  { %v2858_v41 = vsel %vm74_vm0, %v9609_v29, 0.0 }
 0xef7   :  { %2859 = vadd.xlane.f32.xlu1 %v2858_v41  ;;  %v2855_v4 = vsel %vm74_vm0, %v9611_v30, 0.0 }
 0xef8   :  { %2856 = vadd.xlane.f32.xlu0 %v2855_v4 }
 0xf53   :  { %v2848_v37 = vpop.xlane.xlu1 %2847 }
 0xf54   :  { %v2862_v55 = vmul.f32 0.015625, %v2848_v37  ;;  %v2845_v24 = vpop.xlane.xlu0 %2844 }
 0xf55   :  { %v2861_v38 = vmul.f32 0.015625, %v2845_v24  ;;  %v3212_v24 = vld [vmem:[%s10897_s11 + $0x80] sm:$0xff] }
 0xf56   :  { %v9618_v7 = vsub.f32 %v9589_v52, %v2862_v55 }
 0xf57   :  { %v9621_v5 = vsub.f32 %v9591_v53, %v2861_v38  ;;  %v3213_v38 = vld [vmem:[%s10897_s11 + $0x88] sm:$0xff] }
 0xf58   :  { %v2874_v14 = vmul.f32 %v9618_v7, %v9618_v7 }
 0xf59   :  { %v2873_v16 = vmul.f32 %v9621_v5, %v9621_v5 }
 0xf5a   :  { %v2882_v44 = vsel %vm74_vm0, %v2874_v14, 0.0  ;;  %v3196_v14 = vld [vmem:[%s10897_s11] sm:$0xff] }
 0xf5b   :  { %2883 = vadd.xlane.f32.xlu1 %v2882_v44  ;;  %v2879_v18 = vsel %vm74_vm0, %v2873_v16, 0.0  ;;  %v8057_v16 = vpack.c.bf16 %v3213_v38, %v3212_v24  ;;  %v3197_v44 = vld [vmem:[%s10897_s11 + $0x8] sm:$0xff] }
 0xf5c   :  { %2880 = vadd.xlane.f32.xlu0 %v2879_v18  ;;  %v8059_v18 = vpack.c.bf16 %v3197_v44, %v3196_v14  ;;  %v3198_v14 = vld [vmem:[%s10897_s11 + $0x10] sm:$0xff] }
 0xf5d   :  { %8058 = vmatprep.subr.bf16.mxu1 %v8057_v16  ;;  %v3199_v16 = vld [vmem:[%s10897_s11 + $0x18] sm:$0xff] }
 0xf5e   :  { %8060 = vmatpush3.bf16.msra.mxu1 %v8059_v18  ;;  %v8063_v44 = vpack.c.bf16 %v3199_v16, %v3198_v14  ;;  %v3216_v18 = vld [vmem:[%s10897_s11 + $0xa0] sm:$0xff] }
 0xf7d   :  { %v2851_v40 = vpop.xlane.xlu0 %2850 }
 0xf7e   :  { %v2863_v11 = vmul.f32 0.015625, %v2851_v40 }
 0xf80   :  { %v9678_v15 = vsub.f32 %v9599_v1, %v2863_v11 }
 0xf81   :  { %v2854_v20 = vpop.xlane.xlu0 %2853 }
 0xf82   :  { %v2864_v32 = vmul.f32 0.015625, %v2854_v20  ;;  %v2875_v50 = vmul.f32 %v9678_v15, %v9678_v15 }
 0xf84   :  { %v9683_v58 = vsub.f32 %v9601_v22, %v2864_v32  ;;  %v2860_v63 = vpop.xlane.xlu1 %2859  ;;  %v2885_v56 = vsel %vm74_vm0, %v2875_v50, 0.0 }
 0xf85   :  { %v2866_v25 = vmul.f32 0.015625, %v2860_v63  ;;  %2886 = vadd.xlane.f32.xlu0 %v2885_v56  ;;  %v2857_v8 = vpop.xlane.xlu0 %2856 }
 0xf86   :  { %v2865_v33 = vmul.f32 0.015625, %v2857_v8  ;;  %v2876_v48 = vmul.f32 %v9683_v58, %v9683_v58 }
 0xf87   :  { %v9689_v17 = vsub.f32 %v9609_v29, %v2866_v25 }
 0xf88   :  { %v9692_v2 = vsub.f32 %v9611_v30, %v2865_v33  ;;  %v2888_v59 = vsel %vm74_vm0, %v2876_v48, 0.0 }
 0xf89   :  { %2889 = vadd.xlane.f32.xlu1 %v2888_v59  ;;  %v2878_v41 = vmul.f32 %v9689_v17, %v9689_v17 }
 0xf8a   :  { %v2877_v4 = vmul.f32 %v9692_v2, %v9692_v2 }
 0xf8b   :  { %v2894_v37 = vsel %vm74_vm0, %v2878_v41, 0.0 }
 0xf8c   :  { %v2891_v55 = vsel %vm74_vm0, %v2877_v4, 0.0 }
 0xf8d   :  { %2895 = vadd.xlane.f32.xlu1 %v2894_v37  ;;  %2892 = vadd.xlane.f32.xlu0 %v2891_v55 }
 0xfe8   :  { %v2884_v19 = vpop.xlane.xlu1 %2883 }
 0xfe9   :  { %v2898_v51 = vmul.f32 0.015625, %v2884_v19  ;;  %v2881_v23 = vpop.xlane.xlu0 %2880  ;;  %v3217_v19 = vld [vmem:[%s10897_s11 + $0xa8] sm:$0xff] }
 0xfea   :  { %v2897_v60 = vmul.f32 0.015625, %v2881_v23  ;;  %v3200_v23 = vld [vmem:[%s10897_s11 + $0x20] sm:$0xff] }
 0xfeb   :  { %v2904_v3 = vadd.f32 1e-06, %v2898_v51  ;;  %v8065_v51 = vpack.c.bf16 %v3217_v19, %v3216_v18 }
 0xfec   :  { %v2903_v45 = vadd.f32 1e-06, %v2897_v60  ;;  %v3201_v60 = vld [vmem:[%s10897_s11 + $0x28] sm:$0xff] }
 0xfed   :  { %8541 = vrsqrt.f32 %v2904_v3  ;;  %v8067_v3 = vpack.c.bf16 %v3201_v60, %v3200_v23 }
 0xfee   :  { %8543 = vrsqrt.f32 %v2903_v45  ;;  %v3218_v45 = vld [vmem:[%s10897_s11 + $0xb0] sm:$0xff] }
 0xff7   :  { %v8542_v6 = vpop.eup %8541 }
 0xff8   :  { %v8544_v61 = vpop.eup %8543  ;;  %v2916_v34 = vmul.f32 %v8542_v6, %v9618_v7  ;;  %v8069_v6 = vpack.c.bf16 %v3219_v39, %v3218_v45 }
 0xff9   :  { %v2915_v26 = vmul.f32 %v8544_v61, %v9621_v5  ;;  %v3203_v61 = vld [vmem:[%s10897_s11 + $0x38] sm:$0xff] }
 0xffa   :  { %v2926_v47 = vmul.f32 %v2924_v12, %v2916_v34  ;;  %v3221_v34 = vld [vmem:[%s10897_s11 + $0xc8] sm:$0xff] }
 0xffb   :  { %v2925_v42 = vmul.f32 %v2924_v12, %v2915_v26 }
 0xffc   :  { %v2936_v49 = vadd.f32 %v2934_v28, %v2926_v47  ;;  %v3205_v47 = vld [vmem:[%s10897_s11 + $0x48] sm:$0xff] }
 0xffd   :  { %v2935_v43 = vadd.f32 %v2934_v28, %v2925_v42  ;;  %v3204_v42 = vld [vmem:[%s10897_s11 + $0x40] sm:$0xff] }
 0xfff   :  { %6731 = vmatmul.mubr.msk.f32.vlgmr.msra.gmra.mrb[74].mxu0 %vm74_vm0, %v2935_v43 }
0x1000   :  { %3057 = vmatprep.mubr.f32.mxu0 %v8747_v36 }
0x1003   :  { %6732 = vmatmul.mubr.msk.f32.gmra.mrb[76].mxu0 %vm74_vm0, %v2936_v49  ;;  %v3222_v49 = vld [vmem:[%s10897_s11 + $0xd0] sm:$0xff] }
0x1004   :  { %3063 = vmatprep.mubr.f32.mxu0 %v8747_v36 }
0x1012   :  { %v2887_v10 = vpop.xlane.xlu0 %2886 }
0x1013   :  { %v2899_v35 = vmul.f32 0.015625, %v2887_v10  ;;  %v3223_v10 = vld [vmem:[%s10897_s11 + $0xd8] sm:$0xff] }
0x1015   :  { %v2905_v46 = vadd.f32 1e-06, %v2899_v35  ;;  %v8075_v35 = vpack.c.bf16 %v3205_v47, %v3204_v42 }
0x1016   :  { %v2890_v5 = vpop.xlane.xlu1 %2889 }
0x1017   :  { %8545 = vrsqrt.f32 %v2905_v46  ;;  %v2900_v62 = vmul.f32 0.015625, %v2890_v5  ;;  %v8077_v46 = vpack.c.bf16 %v3223_v10, %v3222_v49  ;;  %v3206_v5 = vld [vmem:[%s10897_s11 + $0x50] sm:$0xff] }
0x1019   :  { %v2906_v54 = vadd.f32 1e-06, %v2900_v62  ;;  %v3207_v62 = vld [vmem:[%s10897_s11 + $0x58] sm:$0xff] }
0x101a   :  { %v2896_v7 = vpop.xlane.xlu1 %2895  ;;  %v2893_v9 = vpop.xlane.xlu0 %2892 }
0x101b   :  { %8547 = vrsqrt.f32 %v2906_v54  ;;  %v2902_v21 = vmul.f32 0.015625, %v2896_v7  ;;  %v2901_v40 = vmul.f32 0.015625, %v2893_v9  ;;  %v3224_v54 = vld [vmem:[%s10897_s11 + $0xe0] sm:$0xff]  ;;  %v3225_v7 = vld [vmem:[%s10897_s11 + $0xe8] sm:$0xff]  ;;  %v8079_v9 = vpack.c.bf16 %v3207_v62, %v3206_v5 }
0x101d   :  { %v2908_v11 = vadd.f32 1e-06, %v2902_v21  ;;  %v2907_v20 = vadd.f32 1e-06, %v2901_v40  ;;  %v8081_v21 = vpack.c.bf16 %v3225_v7, %v3224_v54  ;;  %v3208_v40 = vld [vmem:[%s10897_s11 + $0x60] sm:$0xff] }
0x101f   :  { %8549 = vrsqrt.f32 %v2908_v11  ;;  %v3209_v11 = vld [vmem:[%s10897_s11 + $0x68] sm:$0xff] }
0x1020   :  { %8551 = vrsqrt.f32 %v2907_v20  ;;  %v3226_v20 = vld [vmem:[%s10897_s11 + $0xf0] sm:$0xff] }
0x1021   :  { %v8546_v32 = vpop.eup %8545 }
0x1022   :  { %v2917_v50 = vmul.f32 %v8546_v32, %v9678_v15  ;;  %v3227_v32 = vld [vmem:[%s10897_s11 + $0xf8] sm:$0xff] }
0x1024   :  { %v2927_v63 = vmul.f32 %v2924_v12, %v2917_v50  ;;  %v8083_v50 = vpack.c.bf16 %v3209_v11, %v3208_v40 }
0x1025   :  { %v8548_v56 = vpop.eup %8547 }
0x1026   :  { %v2937_v25 = vadd.f32 %v2934_v28, %v2927_v63  ;;  %v2918_v8 = vmul.f32 %v8548_v56, %v9683_v58  ;;  %v8085_v63 = vpack.c.bf16 %v3227_v32, %v3226_v20  ;;  %v3210_v56 = vld [vmem:[%s10897_s11 + $0x70] sm:$0xff] }
0x1028   :  { %6733 = vmatmul.mubr.msk.f32.gmra.mrb[78].mxu0 %vm74_vm0, %v2937_v25  ;;  %v2928_v33 = vmul.f32 %v2924_v12, %v2918_v8  ;;  %v3211_v25 = vld [vmem:[%s10897_s11 + $0x78] sm:$0xff] }
0x1029   :  { %v8550_v48 = vpop.eup %8549  ;;  %3069 = vmatprep.mubr.f32.mxu0 %v8747_v36  ;;  %v8087_v8 = vpack.c.bf16 %v3211_v25, %v3210_v56 }
0x102a   :  { %v8552_v59 = vpop.eup %8551  ;;  %v2938_v41 = vadd.f32 %v2934_v28, %v2928_v33  ;;  %v2920_v37 = vmul.f32 %v8550_v48, %v9689_v17  ;;  %v3214_v17 = vld [vmem:[%s10897_s11 + $0x90] sm:$0xff]  ;;  %v2957_v33 = vld [vmem:[%s10896_s10] sm:$0x3] }
0x102b   :  { %v2919_v4 = vmul.f32 %v8552_v59, %v9692_v2  ;;  %v3215_v2 = vld [vmem:[%s10897_s11 + $0x98] sm:$0xff]  ;;  %v9825_v48 = vrot.slane %v2957_v33, %v9021_v57  ;;  %v9828_v59 = vrot.slane %v2957_v33, %v9026_v0 }
0x102c   :  { %6734 = vmatmul.mubr.msk.f32.gmra.mrb[80].mxu0 %vm74_vm0, %v2938_v41  ;;  %v2930_v24 = vmul.f32 %v2924_v12, %v2920_v37  ;;  %v8061_v38 = vpack.c.bf16 %v3215_v2, %v3214_v17 }
0x102d   :  { %3075 = vmatprep.mubr.f32.mxu0 %v8747_v36  ;;  %v2929_v15 = vmul.f32 %v2924_v12, %v2919_v4  ;;  %v3202_v12 = vld [vmem:[%s10897_s11 + $0x30] sm:$0xff] }
0x102e   :  { %v2940_v58 = vadd.f32 %v2934_v28, %v2930_v24  ;;  %8062 = vmatprep.subr.bf16.mxu1 %v8061_v38  ;;  %v8071_v26 = vpack.c.bf16 %v3203_v61, %v3202_v12 }
0x102f   :  { %v2939_v55 = vadd.f32 %v2934_v28, %v2929_v15  ;;  %8064 = vmatpush3.bf16.msra.mxu1 %v8063_v44  ;;  %v3220_v28 = vld [vmem:[%s10897_s11 + $0xc0] sm:$0xff] }
0x1030   :  { %8066 = vmatprep.subr.bf16.mxu1 %v8065_v51  ;;  %v8073_v43 = vpack.c.bf16 %v3221_v34, %v3220_v28 }
0x1031   :  { %6735 = vmatmul.mubr.msk.f32.gmra.mrb[82].mxu0 %vm74_vm0, %v2939_v55 }
0x1032   :  { %3081 = vmatprep.mubr.f32.mxu0 %v8747_v36 }
0x1033   :  { %8068 = vmatpush3.bf16.msra.mxu1 %v8067_v3 }
0x1034   :  { %8070 = vmatprep.subr.bf16.mxu1 %v8069_v6 }
0x1035   :  { %6736 = vmatmul.mubr.msk.f32.gmra.mrb[84].mxu0 %vm74_vm0, %v2940_v58 }
0x1036   :  { %3556 = vmatprep.mubr.f32.mxu0 %v8747_v36 }
0x1037   :  { %8072 = vmatpush3.bf16.msra.mxu1 %v8071_v26 }
0x1038   :  { %8074 = vmatprep.subr.bf16.mxu1 %v8073_v43 }
0x103b   :  { %8076 = vmatpush3.bf16.msra.mxu1 %v8075_v35 }
0x103c   :  { %8078 = vmatprep.subr.bf16.mxu1 %v8077_v46 }
0x103f   :  { %8080 = vmatpush3.bf16.msra.mxu1 %v8079_v9 }
0x1040   :  { %8082 = vmatprep.subr.bf16.mxu1 %v8081_v21 }
0x1043   :  { %8084 = vmatpush3.bf16.msra.mxu1 %v8083_v50 }
0x1044   :  { %8086 = vmatprep.subr.bf16.mxu1 %v8085_v63 }
0x1047   :  { %8088 = vmatpush3.bf16.msra.mxu1 %v8087_v8 }
0x1048   :  { %8109 = vmatprep.subr.bf16.mxu1 %v8748_v27 }
0x10d2   :  { %v3053_v41 = vpop.f32.mrb[74].mxu0 }
0x10d3   :  { %v3054_v4 = vadd.f32 %v3053_v41, %v9825_v48  ;;  %v3055_v37 = vpop.f32.mrb[75].mxu0 }
0x10d4   :  { %v3056_v15 = vadd.f32 %v3055_v37, %v9828_v59 }
0x10d5   :  { %v3100_v55 = vmul.f32 0.044715, %v3054_v4  ;;  %v3088_v46 = vmul.f32 0.5, %v3054_v4 }
0x10d6   :  { %v3101_v24 = vmul.f32 0.044715, %v3056_v15  ;;  %v3059_v58 = vpop.f32.mrb[76].mxu0  ;;  %v3089_v10 = vmul.f32 0.5, %v3056_v15 }
0x10d7   :  { %v3112_v17 = vmul.f32 %v3100_v55, %v3054_v4  ;;  %v3060_v2 = vadd.f32 %v3059_v58, %v9825_v48  ;;  %v3061_v38 = vpop.f32.mrb[77].mxu0 }
0x10d8   :  { %v3113_v14 = vmul.f32 %v3101_v24, %v3056_v15  ;;  %v3062_v16 = vadd.f32 %v3061_v38, %v9828_v59 }
0x10d9   :  { %v3124_v44 = vmul.f32 %v3112_v17, %v3054_v4  ;;  %v3102_v18 = vmul.f32 0.044715, %v3060_v2  ;;  %v3090_v11 = vmul.f32 0.5, %v3060_v2 }
0x10da   :  { %v3103_v19 = vmul.f32 0.044715, %v3062_v16  ;;  %v3125_v51 = vmul.f32 %v3113_v14, %v3056_v15  ;;  %v3091_v21 = vmul.f32 0.5, %v3062_v16 }
0x10db   :  { %v3136_v23 = vadd.f32 %v3124_v44, %v3054_v4  ;;  %v3114_v60 = vmul.f32 %v3102_v18, %v3060_v2 }
0x10dc   :  { %v3115_v3 = vmul.f32 %v3103_v19, %v3062_v16  ;;  %v3137_v45 = vadd.f32 %v3125_v51, %v3056_v15 }
0x10dd   :  { %v3148_v39 = vmul.f32 0.7978846, %v3136_v23  ;;  %v3126_v6 = vmul.f32 %v3114_v60, %v3060_v2 }
0x10de   :  { %v3149_v12 = vmul.f32 0.7978846, %v3137_v45  ;;  %v3127_v61 = vmul.f32 %v3115_v3, %v3062_v16 }
0x10df   :  { %8553 = vtanh.f32 %v3148_v39  ;;  %v3138_v26 = vadd.f32 %v3126_v6, %v3060_v2 }
0x10e0   :  { %8555 = vtanh.f32 %v3149_v12  ;;  %v3139_v28 = vadd.f32 %v3127_v61, %v3062_v16 }
0x10e1   :  { %v3150_v34 = vmul.f32 0.7978846, %v3138_v26 }
0x10e2   :  { %v3151_v42 = vmul.f32 0.7978846, %v3139_v28 }
0x10e3   :  { %8557 = vtanh.f32 %v3150_v34 }
0x10e4   :  { %8559 = vtanh.f32 %v3151_v42 }
0x10e9   :  { %v8554_v43 = vpop.eup %8553 }
0x10ea   :  { %v8556_v47 = vpop.eup %8555  ;;  %v3172_v49 = vadd.f32 1.0, %v8554_v43 }
0x10eb   :  { %v3173_v35 = vadd.f32 1.0, %v8556_v47 }
0x10ec   :  { %v3184_v7 = vmul.f32 %v3172_v49, %v3088_v46 }
0x10ed   :  { %v8558_v5 = vpop.eup %8557  ;;  %v3185_v62 = vmul.f32 %v3173_v35, %v3089_v10 }
0x10ee   :  { %v8560_v54 = vpop.eup %8559  ;;  %v3174_v9 = vadd.f32 1.0, %v8558_v5 }
0x10ef   :  { %3292 = vmatprep.mubr.f32.mxu1 %v3185_v62  ;;  %v3175_v40 = vadd.f32 1.0, %v8560_v54 }
0x10f0   :  { %3293 = vmatmul.mubr.f32.vlgmr.msra.gmra.mrb[46].mxu1 %v3184_v7  ;;  %v3186_v32 = vmul.f32 %v3174_v9, %v3090_v11 }
0x10f1   :  { %v3187_v20 = vmul.f32 %v3175_v40, %v3091_v21 }
0x10f3   :  { %3297 = vmatprep.mubr.f32.mxu1 %v3187_v20 }
0x10f4   :  { %3298 = vmatmul.mubr.f32.gmra.mrb[48].mxu1 %v3186_v32 }
0x10fb   :  { %v3065_v50 = vpop.f32.mrb[78].mxu0 }
0x10fc   :  { %v9835_v63 = vadd.f32 %v3065_v50, %v9825_v48  ;;  %v3067_v56 = vpop.f32.mrb[79].mxu0 }
0x10fd   :  { %v3068_v25 = vadd.f32 %v3067_v56, %v9828_v59 }
0x10fe   :  { %v3104_v8 = vmul.f32 0.044715, %v9835_v63 }
0x10ff   :  { %v3105_v33 = vmul.f32 0.044715, %v3068_v25  ;;  %v3071_v41 = vpop.f32.mrb[80].mxu0 }
0x1100   :  { %v3116_v4 = vmul.f32 %v3104_v8, %v9835_v63  ;;  %v9841_v37 = vadd.f32 %v3071_v41, %v9825_v48  ;;  %v3073_v15 = vpop.f32.mrb[81].mxu0 }
0x1101   :  { %v3117_v55 = vmul.f32 %v3105_v33, %v3068_v25  ;;  %v9844_v24 = vadd.f32 %v3073_v15, %v9828_v59  ;;  %v3093_v15 = vmul.f32 0.5, %v3068_v25 }
0x1102   :  { %v3106_v58 = vmul.f32 0.044715, %v9841_v37  ;;  %v3128_v17 = vmul.f32 %v3116_v4, %v9835_v63 }
0x1103   :  { %v3107_v2 = vmul.f32 0.044715, %v9844_v24  ;;  %v3129_v38 = vmul.f32 %v3117_v55, %v3068_v25 }
0x1104   :  { %v3118_v14 = vmul.f32 %v3106_v58, %v9841_v37  ;;  %v3077_v16 = vpop.f32.mrb[82].mxu0  ;;  %v3140_v44 = vadd.f32 %v3128_v17, %v9835_v63  ;;  %v3092_v17 = vmul.f32 0.5, %v9835_v63 }
0x1105   :  { %v3119_v18 = vmul.f32 %v3107_v2, %v9844_v24  ;;  %v9853_v19 = vadd.f32 %v3077_v16, %v9825_v48  ;;  %v3079_v51 = vpop.f32.mrb[83].mxu0  ;;  %v3141_v23 = vadd.f32 %v3129_v38, %v3068_v25 }
0x1106   :  { %v9856_v60 = vadd.f32 %v3079_v51, %v9828_v59  ;;  %v3152_v3 = vmul.f32 0.7978846, %v3140_v44  ;;  %v3130_v45 = vmul.f32 %v3118_v14, %v9841_v37 }
0x1107   :  { %v3108_v39 = vmul.f32 0.044715, %v9853_v19  ;;  %v3153_v6 = vmul.f32 0.7978846, %v3141_v23  ;;  %v3131_v12 = vmul.f32 %v3119_v18, %v9844_v24  ;;  %v3095_v18 = vmul.f32 0.5, %v9844_v24 }
0x1108   :  { %v3109_v61 = vmul.f32 0.044715, %v9856_v60  ;;  %v3083_v26 = vpop.f32.mrb[84].mxu0  ;;  %8561 = vtanh.f32 %v3152_v3  ;;  %v3142_v28 = vadd.f32 %v3130_v45, %v9841_v37  ;;  %v3094_v23 = vmul.f32 0.5, %v9841_v37 }
0x1109   :  { %v3120_v34 = vmul.f32 %v3108_v39, %v9853_v19  ;;  %v9865_v42 = vadd.f32 %v3083_v26, %v9825_v48  ;;  %v3085_v43 = vpop.f32.mrb[85].mxu0  ;;  %8563 = vtanh.f32 %v3153_v6  ;;  %v3143_v47 = vadd.f32 %v3131_v12, %v9844_v24 }
0x110a   :  { %v3121_v49 = vmul.f32 %v3109_v61, %v9856_v60  ;;  %v3086_v10 = vadd.f32 %v3085_v43, %v9828_v59  ;;  %v3154_v35 = vmul.f32 0.7978846, %v3142_v28  ;;  %v3097_v6 = vmul.f32 0.5, %v9856_v60 }
0x110b   :  { %v3110_v46 = vmul.f32 0.044715, %v9865_v42  ;;  %v3155_v5 = vmul.f32 0.7978846, %v3143_v47  ;;  %v3132_v62 = vmul.f32 %v3120_v34, %v9853_v19  ;;  %v3096_v61 = vmul.f32 0.5, %v9853_v19 }
0x110c   :  { %v3111_v54 = vmul.f32 0.044715, %v3086_v10  ;;  %8565 = vtanh.f32 %v3154_v35  ;;  %v3133_v7 = vmul.f32 %v3121_v49, %v9856_v60  ;;  %v3099_v47 = vmul.f32 0.5, %v3086_v10 }
0x110d   :  { %v3122_v48 = vmul.f32 %v3110_v46, %v9865_v42  ;;  %8567 = vtanh.f32 %v3155_v5  ;;  %v3144_v9 = vadd.f32 %v3132_v62, %v9853_v19  ;;  %v3098_v49 = vmul.f32 0.5, %v9865_v42  ;;  %v6737_v62 = vld [vmem:[%s10898_s12] ss:$0 sm:$0xff] }
0x110e   :  { %v3123_v21 = vmul.f32 %v3111_v54, %v3086_v10  ;;  %v3145_v40 = vadd.f32 %v3133_v7, %v9856_v60 }
0x110f   :  { %v3156_v11 = vmul.f32 0.7978846, %v3144_v9  ;;  %v3134_v59 = vmul.f32 %v3122_v48, %v9865_v42 }
0x1110   :  { %v3157_v20 = vmul.f32 0.7978846, %v3145_v40  ;;  %v3135_v32 = vmul.f32 %v3123_v21, %v3086_v10 }
0x1111   :  { %8569 = vtanh.f32 %v3156_v11  ;;  %v3146_v50 = vadd.f32 %v3134_v59, %v9865_v42 }
0x1112   :  { %v8562_v56 = vpop.eup %8561  ;;  %8571 = vtanh.f32 %v3157_v20  ;;  %v3147_v8 = vadd.f32 %v3135_v32, %v3086_v10 }
0x1113   :  { %v8564_v33 = vpop.eup %8563  ;;  %v3176_v41 = vadd.f32 1.0, %v8562_v56  ;;  %v3158_v4 = vmul.f32 0.7978846, %v3146_v50 }
0x1114   :  { %v3177_v55 = vadd.f32 1.0, %v8564_v33  ;;  %v3159_v58 = vmul.f32 0.7978846, %v3147_v8 }
0x1115   :  { %8573 = vtanh.f32 %v3158_v4  ;;  %v3188_v16 = vmul.f32 %v3176_v41, %v3092_v17 }
0x1116   :  { %v8566_v2 = vpop.eup %8565  ;;  %v3189_v38 = vmul.f32 %v3177_v55, %v3093_v15  ;;  %8575 = vtanh.f32 %v3159_v58 }
0x1117   :  { %v8568_v14 = vpop.eup %8567  ;;  %v3178_v44 = vadd.f32 1.0, %v8566_v2 }
0x1118   :  { %3302 = vmatprep.mubr.f32.mxu1 %v3189_v38  ;;  %v3179_v51 = vadd.f32 1.0, %v8568_v14 }
0x1119   :  { %3303 = vmatmul.mubr.f32.gmra.mrb[50].mxu1 %v3188_v16  ;;  %v3190_v45 = vmul.f32 %v3178_v44, %v3094_v23 }
0x111a   :  { %v3191_v3 = vmul.f32 %v3179_v51, %v3095_v18 }
0x111b   :  { %v8570_v25 = vpop.eup %8569 }
0x111c   :  { %v8572_v39 = vpop.eup %8571  ;;  %3307 = vmatprep.mubr.f32.mxu1 %v3191_v3  ;;  %v3180_v63 = vadd.f32 1.0, %v8570_v25 }
0x111d   :  { %3308 = vmatmul.mubr.f32.gmra.mrb[52].mxu1 %v3190_v45  ;;  %v3181_v12 = vadd.f32 1.0, %v8572_v39 }
0x111e   :  { %v3192_v24 = vmul.f32 %v3180_v63, %v3096_v61  ;;  %v6741_v61 = vld [vmem:[%s10890_s4 + $0x88] sm:$0xff] }
0x111f   :  { %v8574_v26 = vpop.eup %8573  ;;  %v3193_v28 = vmul.f32 %v3181_v12, %v3097_v6 }
0x1120   :  { %v8576_v34 = vpop.eup %8575  ;;  %v3182_v43 = vadd.f32 1.0, %v8574_v26  ;;  %v6743_v26 = vld [vmem:[%s10890_s4 + $0x98] sm:$0xff] }
0x1121   :  { %3312 = vmatprep.mubr.f32.mxu1 %v3193_v28  ;;  %v3183_v37 = vadd.f32 1.0, %v8576_v34  ;;  %v8089_v28 = vpack.c.bf16 %v6743_v26, %v6741_v61  ;;  %v6740_v34 = vld [vmem:[%s10890_s4 + $0x80] sm:$0xff] }
0x1122   :  { %3313 = vmatmul.mubr.f32.gmra.mrb[54].mxu1 %v3192_v24  ;;  %v3194_v46 = vmul.f32 %v3182_v43, %v3098_v49  ;;  %v6742_v24 = vld [vmem:[%s10890_s4 + $0x90] sm:$0xff]  ;;  %v6738_v61 = vld [vmem:[%s10889_s3 + $0x2] sm:$0x3] }
0x1123   :  { %v3195_v35 = vmul.f32 %v3183_v37, %v3099_v47  ;;  %v8091_v43 = vpack.c.bf16 %v6742_v24, %v6740_v34  ;;  %8090 = vmatprep.subr.bf16.mxu0 %v8089_v28  ;;  %v6745_v47 = vld [vmem:[%s10890_s4 + $0xa8] sm:$0xff]  ;;  %v6747_v37 = vld [vmem:[%s10890_s4 + $0xb8] sm:$0xff]  ;;  %v3427_v26 = vrot.slane %v6738_v61, %v9021_v57  ;;  %v3437_v24 = vrot.slane %v6738_v61, %v9026_v0 }
0x1124   :  { %v8093_v49 = vpack.c.bf16 %v6747_v37, %v6745_v47 }
0x1125   :  { %3317 = vmatprep.mubr.f32.mxu1 %v3195_v35  ;;  %8092 = vmatpush1.bf16.msra.mxu0 %v8091_v43  ;;  %v6744_v35 = vld [vmem:[%s10890_s4 + $0xa0] sm:$0xff] }
0x1126   :  { %3318 = vmatmul.mubr.f32.gmra.mrb[56].mxu1 %v3194_v46  ;;  %v6746_v46 = vld [vmem:[%s10890_s4 + $0xb0] sm:$0xff]  ;;  %8094 = vmatprep.subr.bf16.mxu0 %v8093_v49 }
0x1127   :  { %7647 = vmatprep.mubr.msk.f32.mxu1 %vm8750_vm1, %v8747_v36 }
0x11c3   :  { %v7104_v60 = vpop.f32.mrb[46].mxu1 }
0x11c4   :  { %v7105_v19 = vpop.f32.mrb[47].mxu1 }
0x11c5   :  { %v7106_v5 = vadd.f32 %v7105_v19, %v7104_v60  ;;  %v8095_v60 = vpack.c.bf16 %v6746_v46, %v6744_v35  ;;  %v6749_v19 = vld [vmem:[%s10890_s4 + $0xc8] sm:$0xff] }
0x11c7   :  { %v3323_v10 = vadd.f32 %v7106_v5, %v9591_v53  ;;  %v7107_v54 = vpop.f32.mrb[48].mxu1  ;;  %8096 = vmatpush1.bf16.msra.mxu0 %v8095_v60  ;;  %v6751_v5 = vld [vmem:[%s10890_s4 + $0xd8] sm:$0xff] }
0x11c8   :  { %v7108_v7 = vpop.f32.mrb[49].mxu1 }
0x11c9   :  { %v9890_v48 = vadd.f32 %v6737_v62, %v3323_v10  ;;  %v7109_v42 = vadd.f32 %v7108_v7, %v7107_v54  ;;  %v6748_v10 = vld [vmem:[%s10890_s4 + $0xc0] sm:$0xff]  ;;  %v6750_v54 = vld [vmem:[%s10890_s4 + $0xd0] sm:$0xff] }
0x11ca   :  { %v8099_v7 = vpack.c.bf16 %v6750_v54, %v6748_v10 }
0x11cb   :  { %v3324_v9 = vadd.f32 %v7109_v42, %v9589_v52  ;;  %v3346_v21 = vsel %vm74_vm0, %v9890_v48, 0.0  ;;  %v6753_v42 = vld [vmem:[%s10890_s4 + $0xe8] sm:$0xff] }
0x11cc   :  { %3347 = vadd.xlane.f32.xlu0 %v3346_v21 }
0x11cd   :  { %v9895_v40 = vadd.f32 %v6737_v62, %v3324_v9  ;;  %v6755_v9 = vld [vmem:[%s10890_s4 + $0xf8] sm:$0xff] }
0x11ce   :  { %v8101_v21 = vpack.c.bf16 %v6755_v9, %v6753_v42 }
0x11cf   :  { %v3349_v11 = vsel %vm74_vm0, %v9895_v40, 0.0 }
0x11d0   :  { %3350 = vadd.xlane.f32.xlu1 %v3349_v11  ;;  %v6752_v11 = vld [vmem:[%s10890_s4 + $0xe0] sm:$0xff] }
0x11ec   :  { %v7110_v59 = vpop.f32.mrb[50].mxu1 }
0x11ed   :  { %v7111_v20 = vpop.f32.mrb[51].mxu1 }
0x11ee   :  { %v7112_v53 = vadd.f32 %v7111_v20, %v7110_v59  ;;  %v6754_v59 = vld [vmem:[%s10890_s4 + $0xf0] sm:$0xff] }
0x11ef   :  { %v8103_v20 = vpack.c.bf16 %v6754_v59, %v6752_v11 }
0x11f0   :  { %v3325_v32 = vadd.f32 %v7112_v53, %v9599_v1  ;;  %v7113_v50 = vpop.f32.mrb[52].mxu1 }
0x11f1   :  { %v7114_v56 = vpop.f32.mrb[53].mxu1 }
0x11f2   :  { %v9900_v8 = vadd.f32 %v6737_v62, %v3325_v32  ;;  %v7115_v52 = vadd.f32 %v7114_v56, %v7113_v50 }
0x11f4   :  { %v3326_v33 = vadd.f32 %v7115_v52, %v9601_v22  ;;  %v3352_v41 = vsel %vm74_vm0, %v9900_v8, 0.0 }
0x11f5   :  { %v7116_v4 = vpop.f32.mrb[54].mxu1  ;;  %3353 = vadd.xlane.f32.xlu0 %v3352_v41 }
0x11f6   :  { %v9905_v15 = vadd.f32 %v6737_v62, %v3326_v33  ;;  %v7117_v55 = vpop.f32.mrb[55].mxu1 }
0x11f7   :  { %v7118_v58 = vadd.f32 %v7117_v55, %v7116_v4 }
0x11f8   :  { %v3355_v17 = vsel %vm74_vm0, %v9905_v15, 0.0 }
0x11f9   :  { %v3327_v1 = vadd.f32 %v7118_v58, %v9611_v30  ;;  %v7119_v2 = vpop.f32.mrb[56].mxu1  ;;  %3356 = vadd.xlane.f32.xlu1 %v3355_v17 }
0x11fa   :  { %v7120_v38 = vpop.f32.mrb[57].mxu1 }
0x11fb   :  { %v9910_v14 = vadd.f32 %v6737_v62, %v3327_v1  ;;  %v7121_v22 = vadd.f32 %v7120_v38, %v7119_v2 }
0x11fd   :  { %v3328_v16 = vadd.f32 %v7121_v22, %v9609_v29  ;;  %v3358_v44 = vsel %vm74_vm0, %v9910_v14, 0.0 }
0x11fe   :  { %3359 = vadd.xlane.f32.xlu0 %v3358_v44 }
0x11ff   :  { %v9915_v18 = vadd.f32 %v6737_v62, %v3328_v16  ;;  %v8097_v62 = vpack.c.bf16 %v6751_v5, %v6749_v19 }
0x1201   :  { %v3361_v51 = vsel %vm74_vm0, %v9915_v18, 0.0  ;;  %8098 = vmatprep.subr.bf16.mxu0 %v8097_v62 }
0x1202   :  { %3362 = vadd.xlane.f32.xlu1 %v3361_v51  ;;  %8100 = vmatpush1.bf16.msra.mxu0 %v8099_v7 }
0x1203   :  { %8102 = vmatprep.subr.bf16.mxu0 %v8101_v21 }
0x1206   :  { %8104 = vmatpush1.bf16.msra.mxu0 %v8103_v20 }
0x1207   :  { %8105 = vmatprep.subr.bf16.mxu0 %v8748_v27 }
0x1259   :  { %v3348_v23 = vpop.xlane.xlu0 %3347 }
0x125a   :  { %v3364_v30 = vmul.f32 0.015625, %v3348_v23 }
0x125c   :  { %v9920_v3 = vsub.f32 %v9890_v48, %v3364_v30 }
0x125d   :  { %v3351_v25 = vpop.xlane.xlu1 %3350 }
0x125e   :  { %v3365_v45 = vmul.f32 0.015625, %v3351_v25  ;;  %v3376_v29 = vmul.f32 %v9920_v3, %v9920_v3 }
0x1260   :  { %v9925_v39 = vsub.f32 %v9895_v40, %v3365_v45  ;;  %v3382_v63 = vsel %vm74_vm0, %v3376_v29, 0.0 }
0x1261   :  { %3383 = vadd.xlane.f32.xlu0 %v3382_v63 }
0x1262   :  { %v3377_v6 = vmul.f32 %v9925_v39, %v9925_v39 }
0x1264   :  { %v3385_v12 = vsel %vm74_vm0, %v3377_v6, 0.0 }
0x1265   :  { %3386 = vadd.xlane.f32.xlu1 %v3385_v12 }
0x1282   :  { %v3354_v53 = vpop.xlane.xlu0 %3353 }
0x1283   :  { %v3366_v32 = vmul.f32 0.015625, %v3354_v53 }
0x1285   :  { %v3372_v50 = vsub.f32 %v9900_v8, %v3366_v32 }
0x1286   :  { %v3357_v56 = vpop.xlane.xlu1 %3356 }
0x1287   :  { %v3367_v52 = vmul.f32 0.015625, %v3357_v56  ;;  %v3378_v33 = vmul.f32 %v3372_v50, %v3372_v50 }
0x1289   :  { %v3373_v41 = vsub.f32 %v9905_v15, %v3367_v52  ;;  %v3388_v4 = vsel %vm74_vm0, %v3378_v33, 0.0 }
0x128a   :  { %3389 = vadd.xlane.f32.xlu0 %v3388_v4 }
0x128b   :  { %v3360_v55 = vpop.xlane.xlu0 %3359  ;;  %v3379_v58 = vmul.f32 %v3373_v41, %v3373_v41 }
0x128c   :  { %v3368_v17 = vmul.f32 0.015625, %v3360_v55 }
0x128d   :  { %v3391_v1 = vsel %vm74_vm0, %v3379_v58, 0.0 }
0x128e   :  { %v3374_v2 = vsub.f32 %v9910_v14, %v3368_v17  ;;  %3392 = vadd.xlane.f32.xlu1 %v3391_v1 }
0x128f   :  { %v3363_v38 = vpop.xlane.xlu1 %3362 }
0x1290   :  { %v3369_v22 = vmul.f32 0.015625, %v3363_v38  ;;  %v3380_v16 = vmul.f32 %v3374_v2, %v3374_v2 }
0x1292   :  { %v3375_v44 = vsub.f32 %v9915_v18, %v3369_v22  ;;  %v3394_v51 = vsel %vm74_vm0, %v3380_v16, 0.0 }
0x1293   :  { %3395 = vadd.xlane.f32.xlu0 %v3394_v51 }
0x1294   :  { %v3381_v23 = vmul.f32 %v3375_v44, %v3375_v44 }
0x1296   :  { %v3397_v30 = vsel %vm74_vm0, %v3381_v23, 0.0 }
0x1297   :  { %3398 = vadd.xlane.f32.xlu1 %v3397_v30 }
0x12ee   :  { %v3384_v25 = vpop.xlane.xlu0 %3383 }
0x12ef   :  { %v3400_v45 = vmul.f32 0.015625, %v3384_v25 }
0x12f1   :  { %v3406_v29 = vadd.f32 1e-06, %v3400_v45 }
0x12f2   :  { %v3387_v63 = vpop.xlane.xlu1 %3386 }
0x12f3   :  { %8577 = vrsqrt.f32 %v3406_v29  ;;  %v3401_v6 = vmul.f32 0.015625, %v3387_v63 }
0x12f5   :  { %v3407_v12 = vadd.f32 1e-06, %v3401_v6 }
0x12f7   :  { %8579 = vrsqrt.f32 %v3407_v12 }
0x12fd   :  { %v8578_v28 = vpop.eup %8577 }
0x12fe   :  { %v3418_v34 = vmul.f32 %v8578_v28, %v9920_v3 }
0x1300   :  { %v3428_v43 = vmul.f32 %v3427_v26, %v3418_v34 }
0x1301   :  { %v8580_v47 = vpop.eup %8579 }
0x1302   :  { %v3438_v37 = vadd.f32 %v3437_v24, %v3428_v43  ;;  %v3419_v49 = vmul.f32 %v8580_v47, %v9925_v39 }
0x1304   :  { %6757 = vmatmul.mubr.msk.f32.vlgmr.msra.gmra.mrb[86].mxu0 %vm74_vm0, %v3438_v37  ;;  %v3429_v35 = vmul.f32 %v3427_v26, %v3419_v49 }
0x1305   :  { %3562 = vmatprep.mubr.f32.mxu0 %v8747_v36 }
0x1306   :  { %v3439_v46 = vadd.f32 %v3437_v24, %v3429_v35 }
0x1308   :  { %6758 = vmatmul.mubr.msk.f32.gmra.mrb[88].mxu0 %vm74_vm0, %v3439_v46 }
0x1309   :  { %3568 = vmatprep.mubr.f32.mxu0 %v8747_v36 }
0x1317   :  { %v3390_v60 = vpop.xlane.xlu0 %3389 }
0x1318   :  { %v3402_v19 = vmul.f32 0.015625, %v3390_v60 }
0x131a   :  { %v3408_v3 = vadd.f32 1e-06, %v3402_v19 }
0x131b   :  { %v3393_v5 = vpop.xlane.xlu1 %3392 }
0x131c   :  { %8581 = vrsqrt.f32 %v3408_v3  ;;  %v3403_v62 = vmul.f32 0.015625, %v3393_v5 }
0x131e   :  { %v3409_v10 = vadd.f32 1e-06, %v3403_v62 }
0x1320   :  { %8583 = vrsqrt.f32 %v3409_v10  ;;  %v3396_v54 = vpop.xlane.xlu0 %3395 }
0x1321   :  { %v3404_v39 = vmul.f32 0.015625, %v3396_v54 }
0x1323   :  { %v3410_v7 = vadd.f32 1e-06, %v3404_v39 }
0x1324   :  { %v3399_v42 = vpop.xlane.xlu1 %3398 }
0x1325   :  { %8585 = vrsqrt.f32 %v3410_v7  ;;  %v3405_v9 = vmul.f32 0.015625, %v3399_v42 }
0x1326   :  { %v8582_v21 = vpop.eup %8581 }
0x1327   :  { %v3411_v11 = vadd.f32 1e-06, %v3405_v9  ;;  %v3420_v59 = vmul.f32 %v8582_v21, %v3372_v50 }
0x1329   :  { %8587 = vrsqrt.f32 %v3411_v11  ;;  %v3430_v20 = vmul.f32 %v3427_v26, %v3420_v59 }
0x132a   :  { %v8584_v53 = vpop.eup %8583 }
0x132b   :  { %v3440_v32 = vadd.f32 %v3437_v24, %v3430_v20  ;;  %v3421_v56 = vmul.f32 %v8584_v53, %v3373_v41 }
0x132d   :  { %6759 = vmatmul.mubr.msk.f32.gmra.mrb[90].mxu0 %vm74_vm0, %v3440_v32  ;;  %v3431_v52 = vmul.f32 %v3427_v26, %v3421_v56 }
0x132e   :  { %3574 = vmatprep.mubr.f32.mxu0 %v8747_v36 }
0x132f   :  { %v8586_v33 = vpop.eup %8585  ;;  %v3441_v4 = vadd.f32 %v3437_v24, %v3431_v52 }
0x1330   :  { %v3422_v55 = vmul.f32 %v8586_v33, %v3374_v2  ;;  %v6756_v2 = vld [vmem:[%s10891_s5 + $0x2] sm:$0x3]  ;;  %s6614_s5 = sshll.u32 %s8758_s28, 4  ;;  %s6615_s5 = int_to_ptr.vmem [resolvable:$true] %s6614_s5 }
0x1331   :  { %6760 = vmatmul.mubr.msk.f32.gmra.mrb[92].mxu0 %vm74_vm0, %v3441_v4  ;;  %v10012_v51 = vrot.slane %v6756_v2, %v9026_v0  ;;  %p8728_p1 = scmp.lt.s32.totalorder %s6615_s5, %s6615_s5 }
0x1332   :  { %3580 = vmatprep.mubr.f32.mxu0 %v8747_v36  ;;  %v3432_v58 = vmul.f32 %v3427_v26, %v3422_v55 }
0x1333   :  { %v8588_v17 = vpop.eup %8587 }
0x1334   :  { %v3442_v50 = vadd.f32 %v3437_v24, %v3432_v58  ;;  %v3423_v1 = vmul.f32 %v8588_v17, %v3375_v44 }
0x1336   :  { %6761 = vmatmul.mubr.msk.f32.gmra.mrb[94].mxu0 %vm74_vm0, %v3442_v50  ;;  %v3433_v38 = vmul.f32 %v3427_v26, %v3423_v1  ;;  %v3467_v26 = vrot.slane %v6756_v2, %v9021_v57 }
0x1337   :  { %3586 = vmatprep.mubr.f32.mxu0 %v8747_v36 }
0x1338   :  { %v3443_v41 = vadd.f32 %v3437_v24, %v3433_v38 }
0x133a   :  { %6762 = vmatmul.mubr.msk.f32.gmra.mrb[96].mxu0 %vm74_vm0, %v3443_v41 }
0x133b   :  { %7632 = vmatprep.mubr.msk.f32.mxu0 %vm8750_vm1, %v8747_v36 }
0x13d7   :  { %v3558_v22 = vpop.f32.mrb[86].mxu0 }
0x13d8   :  { %v3560_v16 = vpop.f32.mrb[87].mxu0  ;;  %v10037_v62 = vadd.f32 %v3558_v22, %v3467_v26 }
0x13d9   :  { %v3561_v30 = vadd.f32 %v3560_v16, %v10012_v51 }
0x13db   :  { %v3564_v44 = vpop.f32.mrb[88].mxu0 }
0x13dc   :  { %v3566_v23 = vpop.f32.mrb[89].mxu0  ;;  %v10031_v19 = vadd.f32 %v3564_v44, %v3467_v26 }
0x13dd   :  { %v3567_v25 = vadd.f32 %v3566_v23, %v10012_v51 }
0x13de   :  { %v10043_v10 = vpack.i.bf16 %v10031_v19, %v10037_v62 }
0x13df   :  { %v8114_v45 = vpack.c.bf16 %v3567_v25, %v3561_v30  ;;  %v10016_v29 = vpack.i.bf16 %v3567_v25, %v3561_v30 }
0x1400   :  { %v3570_v63 = vpop.f32.mrb[90].mxu0 }
0x1401   :  { %v3572_v6 = vpop.f32.mrb[91].mxu0  ;;  %v10047_v54 = vadd.f32 %v3570_v63, %v3467_v26 }
0x1402   :  { %v10083_v52 = vadd.f32 %v3572_v6, %v10012_v51 }
0x1404   :  { %v3576_v12 = vpop.f32.mrb[92].mxu0 }
0x1405   :  { %v3578_v61 = vpop.f32.mrb[93].mxu0  ;;  %v10019_v34 = vadd.f32 %v3576_v12, %v3467_v26 }
0x1406   :  { %v3579_v47 = vadd.f32 %v3578_v61, %v10012_v51 }
0x1409   :  { %v3582_v28 = vpop.f32.mrb[94].mxu0 }
0x140a   :  { %v10021_v24 = vadd.f32 %v3582_v28, %v3467_v26  ;;  %v3584_v43 = vpop.f32.mrb[95].mxu0 }
0x140b   :  { %v3585_v37 = vadd.f32 %v3584_v43, %v10012_v51 }
0x140c   :  { %v10027_v49 = vpack.i.bf16 %v10021_v24, %v10019_v34 }
0x140d   :  { %v3588_v35 = vpop.f32.mrb[96].mxu0  ;;  %v8117_v46 = vpack.c.bf16 %v3585_v37, %v3579_v47  ;;  %v10029_v60 = vpack.i.bf16 %v3585_v37, %v3579_v47 }
0x140e   :  { %v10033_v3 = vadd.f32 %v3588_v35, %v3467_v26  ;;  %v3590_v5 = vpop.f32.mrb[97].mxu0  ;;  %8364 = vrot.lane.b32.xlu0 %v10027_v49, %s8749_s0 }
0x140f   :  { %v10065_v56 = vadd.f32 %v3590_v5, %v10012_v51 }
0x1410   :  { %3710 = vrot.lane.b32.xlu1 %v10033_v3, %s8749_s0 }
0x1414   :  { %8369 = vrot.lane.b32.xlu1 %v10043_v10, %s8749_s0 }
0x1418   :  { %3609 = vrot.lane.b32.xlu1 %v10047_v54, %s8749_s0  ;;  %s8723_s0 = scalar_lea.vmem %s6615_s5, 32 }
0x1419   :  { %p8724_p0 = scmp.ne.s32.totalorder %s6615_s5, %s8723_s0  ;;  %p8729_p2 = scmp.lt.s32.totalorder %s8723_s0, %s8723_s0 }
0x141b   :  { %p8730_p3 = por %p8729_p2, %p8728_p1 }
0x141d   :  { %p8731_p4 = pnand %p8730_p3, %p8724_p0 }
0x1480   :  { %v8365_v39 = vpop.permute.xlu0 %8364 }
0x1481   :  { %v8367_v7 = vunpack.i.h.bf16 %v8365_v39  ;;  %v8366_v42 = vunpack.i.l.bf16 %v8365_v39 }
0x1482   :  { %v3711_v9 = vpop.permute.xlu1 %3710 }
0x1483   :  { %v8110_v21 = vpack.c.bf16 %v8367_v7, %v8366_v42 }
0x1485   :  { %8112 = vmatpush3.bf16.xpose.msk.msra.mxu1 %vm9098_vm3, %v8110_v21 }
0x1486   :  { %v8370_v11 = vpop.permute.xlu1 %8369  ;;  %7645 = vmatprep.subr.mxu1 %v8747_v36 }
0x1487   :  { %v8372_v59 = vunpack.i.h.bf16 %v8370_v11  ;;  %v8371_v20 = vunpack.i.l.bf16 %v8370_v11 }
0x1489   :  { %v8106_v53 = vpack.c.bf16 %v8372_v59, %v8371_v20 }
0x148a   :  { %v3610_v32 = vpop.permute.xlu1 %3609 }
0x148b   :  { %8108 = vmatpush3.bf16.xpose.msk.msra.mxu0 %vm9098_vm3, %v8106_v53 }
0x148c   :  { %7630 = vmatprep.subr.mxu0 %v8747_v36 }
0x148d   :  { %7646 = vmatpush3.xpose.msk.msra.mxu1 %vm457_vm2, %v3711_v9 }
0x148e   :  { %8116 = vmatprep.subr.bf16.mxu1 %v8748_v27 }
0x1490   :  { %7648 = vmatmul.mubr.msk.f32.vlgmr.msra.gmra.mrb[58].mxu1 %vm457_vm2, %v10019_v34 }
0x1491   :  { %8118 = vmatpush3.bf16.msra.mxu1 %v8117_v46  ;;  %7650 = vmatprep.mubr.msk.f32.mxu1 %vm8750_vm1, %v8747_v36 }
0x1492   :  { %7675 = vmatprep.subr.mxu1 %v8747_v36 }
0x1493   :  { %7631 = vmatpush3.xpose.msk.msra.mxu0 %vm457_vm2, %v3610_v32 }
0x1494   :  { %7651 = vmatmul.mubr.msk.f32.gmra.mrb[60].mxu1 %vm457_vm2, %v10021_v24  ;;  %8113 = vmatprep.subr.bf16.mxu0 %v8748_v27 }
0x1495   :  { %7676 = vmatpush3.msra.mxu1 %v10065_v56  ;;  %7653 = vmatprep.mubr.msk.f32.mxu1 %vm8750_vm1, %v8747_v36 }
0x1496   :  { %7633 = vmatmul.mubr.msk.f32.vlgmr.msra.gmra.mrb[98].mxu0 %vm457_vm2, %v10037_v62  ;;  %8123 = vmatprep.subr.bf16.mxu1 %v8748_v27 }
0x1497   :  { %8115 = vmatpush3.bf16.msra.mxu0 %v8114_v45  ;;  %7635 = vmatprep.mubr.msk.f32.mxu0 %vm8750_vm1, %v8747_v36 }
0x1498   :  { %7654 = vmatmul.mubr.msk.f32.gmra.mrb[62].mxu1 %vm457_vm2, %v10033_v3  ;;  %7660 = vmatprep.subr.mxu0 %v8747_v36 }
0x1499   :  { %7677 = vmatprep.mubr.msk.f32.mxu1 %vm8750_vm1, %v8747_v36 }
0x149a   :  { %7636 = vmatmul.mubr.msk.f32.gmra.mrb[100].mxu0 %vm457_vm2, %v10031_v19 }
0x149b   :  { %7661 = vmatpush3.msra.mxu0 %v10083_v52  ;;  %7638 = vmatprep.mubr.msk.f32.mxu0 %vm8750_vm1, %v8747_v36 }
0x149c   :  { %8119 = vmatprep.subr.bf16.mxu0 %v8748_v27 }
0x149e   :  { %7639 = vmatmul.mubr.msk.f32.gmra.mrb[102].mxu0 %vm457_vm2, %v10047_v54 }
0x149f   :  { %7662 = vmatprep.mubr.msk.f32.mxu0 %vm8750_vm1, %v8747_v36 }
0x1563   :  { %v3790_v33 = vpop.f32.mrb[58].mxu1 }
0x1564   :  { %v3807_v4 = vmul.f32 0.25, %v3790_v33  ;;  %v7649_v55 = vpop.f32.mrb[59].mxu1 }
0x1566   :  { %v3813_v58 = vadd.f32 %v3807_v4, %v9140_v31 }
0x1567   :  { %v3795_v17 = vpop.f32.mrb[60].mxu1 }
0x1568   :  { %v3808_v50 = vmul.f32 0.25, %v3795_v17  ;;  %v7652_v1 = vpop.f32.mrb[61].mxu1  ;;  %v3825_v38 = vsel %vm663_vm5, %v3813_v58, -inf }
0x1569   :  { %v3689_v41 = vpop.f32.mrb[98].mxu0  ;;  %3826 = vmax.xlane.f32.xlu0 %v3825_v38 }
0x156a   :  { %v3814_v2 = vadd.f32 %v3808_v50, %v9140_v31  ;;  %v7634_v22 = vpop.f32.mrb[99].mxu0  ;;  %v3804_v59 = vmul.f32 0.25, %v3689_v41 }
0x156b   :  { %v3800_v16 = vpop.f32.mrb[62].mxu1 }
0x156c   :  { %v3809_v51 = vmul.f32 0.25, %v3800_v16  ;;  %v7655_v44 = vpop.f32.mrb[63].mxu1  ;;  %v3828_v23 = vsel %vm663_vm5, %v3814_v2, -inf  ;;  %v3810_v53 = vadd.f32 %v3804_v59, %v9140_v31 }
0x156d   :  { %v3694_v30 = vpop.f32.mrb[100].mxu0  ;;  %3829 = vmax.xlane.f32.xlu1 %v3828_v23 }
0x156e   :  { %v3815_v25 = vadd.f32 %v3809_v51, %v9140_v31  ;;  %v7637_v45 = vpop.f32.mrb[101].mxu0  ;;  %v3805_v20 = vmul.f32 0.25, %v3694_v30 }
0x1570   :  { %v3831_v63 = vsel %vm663_vm5, %v3815_v25, -inf  ;;  %v3811_v32 = vadd.f32 %v3805_v20, %v9140_v31 }
0x1571   :  { %v3699_v6 = vpop.f32.mrb[102].mxu0  ;;  %3832 = vmax.xlane.f32.xlu0 %v3831_v63 }
0x1572   :  { %v7640_v12 = vpop.f32.mrb[103].mxu0  ;;  %v3806_v33 = vmul.f32 0.25, %v3699_v6  ;;  %v3819_v55 = vsel %vm663_vm5, %v3811_v32, -inf }
0x1574   :  { %v3812_v4 = vadd.f32 %v3806_v33, %v9140_v31 }
0x1576   :  { %v3822_v17 = vsel %vm663_vm5, %v3812_v4, -inf }
0x157e   :  { %4174 = vrot.lane.b32.xlu1 %v10033_v3, %s8752_s17 }
0x1582   :  { %4164 = vrot.lane.b32.xlu1 %v10019_v34, %s8753_s18 }
0x15f6   :  { %v3827_v61 = vpop.xlane.xlu0 %3826 }
0x15f7   :  { %v3837_v26 = vsub.f32 %v3813_v58, %v3827_v61  ;;  %v3816_v58 = vsel %vm663_vm5, %v3810_v53, -inf }
0x15f9   :  { %v3846_v28 = vmul.f32 1.442695, %v3837_v26 }
0x15fa   :  { %v3830_v43 = vpop.xlane.xlu1 %3829 }
0x15fb   :  { %8589 = vpow2.f32 %v3846_v28  ;;  %v3838_v47 = vsub.f32 %v3814_v2, %v3830_v43 }
0x15fd   :  { %v3848_v37 = vmul.f32 1.442695, %v3838_v47 }
0x15fe   :  { %v3833_v35 = vpop.xlane.xlu0 %3832  ;;  %v4175_v50 = vpop.permute.xlu1 %4174 }
0x15ff   :  { %8591 = vpow2.f32 %v3848_v37  ;;  %v3839_v46 = vsub.f32 %v3815_v25, %v3833_v35 }
0x1601   :  { %v3850_v5 = vmul.f32 1.442695, %v3839_v46 }
0x1602   :  { %v4165_v38 = vpop.permute.xlu1 %4164 }
0x1603   :  { %8593 = vpow2.f32 %v3850_v5 }
0x1605   :  { %v8590_v39 = vpop.eup %8589 }
0x1606   :  { %v3861_v7 = vsel %vm663_vm5, %v8590_v39, 0.0 }
0x1607   :  { %3862 = vadd.xlane.f32.xlu0 %v3861_v7 }
0x1609   :  { %v8592_v42 = vpop.eup %8591 }
0x160a   :  { %v3864_v9 = vsel %vm663_vm5, %v8592_v42, 0.0 }
0x160b   :  { %3865 = vadd.xlane.f32.xlu0 %v3864_v9 }
0x160d   :  { %v8594_v21 = vpop.eup %8593 }
0x160e   :  { %v3867_v11 = vsel %vm663_vm5, %v8594_v21, 0.0 }
0x160f   :  { %3868 = vadd.xlane.f32.xlu1 %v3867_v11 }
0x1620   :  { %4166 = vrot.lane.b32.xlu1 %v10021_v24, %s8753_s18 }
0x1621   :  { %8374 = vrot.lane.b32.xlu0 %v10027_v49, %s8752_s17 }
0x1625   :  { %4168 = vrot.lane.b32.xlu0 %v10033_v3, %s8753_s18 }
0x1644   :  { %3820 = vmax.xlane.f32.xlu0 %v3819_v55  ;;  %3817 = vmax.xlane.f32.xlu1 %v3816_v58 }
0x1648   :  { %3823 = vmax.xlane.f32.xlu0 %v3822_v17 }
0x1694   :  { %v3863_v1 = vpop.xlane.xlu0 %3862 }
0x1695   :  { %8595 = vrcp.f32 %v3863_v1 }
0x1698   :  { %v3866_v41 = vpop.xlane.xlu0 %3865 }
0x1699   :  { %8597 = vrcp.f32 %v3866_v41 }
0x169c   :  { %v3869_v2 = vpop.xlane.xlu1 %3868  ;;  %v8375_v22 = vpop.permute.xlu0 %8374 }
0x169d   :  { %8599 = vrcp.f32 %v3869_v2  ;;  %v8377_v16 = vunpack.i.h.bf16 %v8375_v22  ;;  %v8376_v51 = vunpack.i.l.bf16 %v8375_v22 }
0x169f   :  { %v8596_v44 = vpop.eup %8595  ;;  %v8124_v23 = vpack.c.bf16 %v8377_v16, %v8376_v51 }
0x16a0   :  { %v3879_v30 = vmul.f32 %v8596_v44, %v8590_v39  ;;  %v4167_v12 = vpop.permute.xlu1 %4166  ;;  %v4169_v61 = vpop.permute.xlu0 %4168 }
0x16a2   :  { %7678 = vmatmul.mubr.msk.f32.vlgmr.msra.gmra.mrb[64].mxu1 %vm663_vm5, %v3879_v30 }
0x16a3   :  { %v8598_v25 = vpop.eup %8597  ;;  %8126 = vmatpush3.bf16.xpose.msk.msra.mxu1 %vm9098_vm3, %v8124_v23  ;;  %7680 = vmatprep.mubr.msk.f32.mxu1 %vm8750_vm1, %v8747_v36 }
0x16a4   :  { %v3880_v45 = vmul.f32 %v8598_v25, %v8592_v42  ;;  %7705 = vmatprep.subr.mxu1 %v8747_v36 }
0x16a6   :  { %7681 = vmatmul.mubr.msk.f32.gmra.mrb[66].mxu1 %vm663_vm5, %v3880_v45 }
0x16a7   :  { %v8600_v63 = vpop.eup %8599  ;;  %7683 = vmatprep.mubr.msk.f32.mxu1 %vm8750_vm1, %v8747_v36 }
0x16a8   :  { %v3881_v6 = vmul.f32 %v8600_v63, %v8594_v21 }
0x16aa   :  { %7684 = vmatmul.mubr.msk.f32.gmra.mrb[68].mxu1 %vm663_vm5, %v3881_v6 }
0x16ab   :  { %7706 = vmatpush3.xpose.msk.msra.mxu1 %vm457_vm2, %v4175_v50  ;;  %7707 = vmatprep.mubr.msk.f32.mxu1 %vm8750_vm1, %v8747_v36 }
0x16ac   :  { %8130 = vmatprep.subr.bf16.mxu1 %v8748_v27 }
0x16ae   :  { %7708 = vmatmul.mubr.msk.f32.vlgmr.msra.gmra.mrb[70].mxu1 %vm457_vm2, %v4165_v38 }
0x16af   :  { %7710 = vmatprep.mubr.msk.f32.mxu1 %vm8750_vm1, %v8747_v36 }
0x16b2   :  { %7711 = vmatmul.mubr.msk.f32.gmra.mrb[72].mxu1 %vm457_vm2, %v4167_v12 }
0x16b3   :  { %7713 = vmatprep.mubr.msk.f32.mxu1 %vm8750_vm1, %v8747_v36 }
0x16b6   :  { %7714 = vmatmul.mubr.msk.f32.gmra.mrb[74].mxu1 %vm457_vm2, %v4169_v61 }
0x16b7   :  { %7737 = vmatprep.mubr.msk.f32.mxu1 %vm8750_vm1, %v8747_v36 }
0x16d1   :  { %v3818_v26 = vpop.xlane.xlu1 %3817  ;;  %v3821_v28 = vpop.xlane.xlu0 %3820 }
0x16d2   :  { %v3834_v43 = vsub.f32 %v3810_v53, %v3818_v26  ;;  %v3835_v47 = vsub.f32 %v3811_v32, %v3821_v28 }
0x16d4   :  { %v3840_v37 = vmul.f32 1.442695, %v3834_v43  ;;  %v3842_v35 = vmul.f32 1.442695, %v3835_v47 }
0x16d5   :  { %v3824_v46 = vpop.xlane.xlu0 %3823 }
0x16d6   :  { %8601 = vpow2.f32 %v3840_v37  ;;  %v3836_v5 = vsub.f32 %v3812_v4, %v3824_v46 }
0x16d7   :  { %8603 = vpow2.f32 %v3842_v35 }
0x16d8   :  { %v3844_v39 = vmul.f32 1.442695, %v3836_v5 }
0x16da   :  { %8605 = vpow2.f32 %v3844_v39 }
0x16e0   :  { %v8602_v7 = vpop.eup %8601 }
0x16e1   :  { %v8604_v42 = vpop.eup %8603  ;;  %v3852_v9 = vsel %vm663_vm5, %v8602_v7, 0.0 }
0x16e2   :  { %3853 = vadd.xlane.f32.xlu0 %v3852_v9  ;;  %v3855_v21 = vsel %vm663_vm5, %v8604_v42, 0.0 }
0x16e3   :  { %3856 = vadd.xlane.f32.xlu1 %v3855_v21 }
0x16e4   :  { %v8606_v11 = vpop.eup %8605 }
0x16e5   :  { %v3858_v59 = vsel %vm663_vm5, %v8606_v11, 0.0 }
0x16e6   :  { %3859 = vadd.xlane.f32.xlu0 %v3858_v59 }
0x16f4   :  { %8379 = vrot.lane.b32.xlu1 %v10043_v10, %s8752_s17 }
0x16f8   :  { %4060 = vrot.lane.b32.xlu1 %v10037_v62, %s8753_s18 }
0x16fc   :  { %4062 = vrot.lane.b32.xlu1 %v10031_v19, %s8753_s18  ;;  %4070 = vrot.lane.b32.xlu0 %v10047_v54, %s8752_s17 }
0x1700   :  { %4064 = vrot.lane.b32.xlu1 %v10047_v54, %s8753_s18 }
0x176f   :  { %v3854_v20 = vpop.xlane.xlu0 %3853 }
0x1770   :  { %v3857_v53 = vpop.xlane.xlu1 %3856  ;;  %8607 = vrcp.f32 %v3854_v20 }
0x1771   :  { %8609 = vrcp.f32 %v3857_v53 }
0x1773   :  { %v3860_v32 = vpop.xlane.xlu0 %3859 }
0x1774   :  { %v8380_v33 = vpop.permute.xlu1 %8379  ;;  %8611 = vrcp.f32 %v3860_v32 }
0x1775   :  { %v10158_v4 = vpop.f32.mrb[64].mxu1  ;;  %v8382_v58 = vunpack.i.h.bf16 %v8380_v33  ;;  %v8381_v17 = vunpack.i.l.bf16 %v8380_v33 }
0x1776   :  { %v7679_v55 = vpop.f32.mrb[65].mxu1 }
0x1777   :  { %v8120_v22 = vpack.c.bf16 %v8382_v58, %v8381_v17  ;;  %v4071_v61 = vpop.permute.xlu0 %4070 }
0x1778   :  { %v4061_v6 = vpop.permute.xlu1 %4060 }
0x1779   :  { %v10160_v50 = vpop.f32.mrb[66].mxu1 }
0x177a   :  { %v8608_v1 = vpop.eup %8607  ;;  %v7682_v38 = vpop.f32.mrb[67].mxu1 }
0x177b   :  { %v3876_v41 = vmul.f32 %v8608_v1, %v8602_v7  ;;  %v8610_v2 = vpop.eup %8609 }
0x177c   :  { %v3877_v44 = vmul.f32 %v8610_v2, %v8604_v42  ;;  %v4063_v46 = vpop.permute.xlu1 %4062 }
0x177d   :  { %7663 = vmatmul.mubr.msk.f32.vlgmr.msra.gmra.mrb[104].mxu0 %vm663_vm5, %v3876_v41  ;;  %v10163_v16 = vpop.f32.mrb[68].mxu1 }
0x177e   :  { %8122 = vmatpush3.bf16.xpose.msk.msra.mxu0 %vm9098_vm3, %v8120_v22  ;;  %v7685_v51 = vpop.f32.mrb[69].mxu1  ;;  %7665 = vmatprep.mubr.msk.f32.mxu0 %vm8750_vm1, %v8747_v36  ;;  %v8612_v23 = vpop.eup %8611 }
0x177f   :  { %7690 = vmatprep.subr.mxu0 %v8747_v36  ;;  %v3878_v63 = vmul.f32 %v8612_v23, %v8606_v11 }
0x1780   :  { %v4065_v21 = vpop.permute.xlu1 %4064 }
0x1781   :  { %7666 = vmatmul.mubr.msk.f32.gmra.mrb[106].mxu0 %vm663_vm5, %v3877_v44  ;;  %v4254_v30 = vpop.f32.mrb[70].mxu1 }
0x1782   :  { %v4271_v25 = vmul.f32 0.25, %v4254_v30  ;;  %v7709_v45 = vpop.f32.mrb[71].mxu1  ;;  %7668 = vmatprep.mubr.msk.f32.mxu0 %vm8750_vm1, %v8747_v36 }
0x1784   :  { %v4277_v12 = vadd.f32 %v4271_v25, %v9140_v31 }
0x1785   :  { %7669 = vmatmul.mubr.msk.f32.gmra.mrb[108].mxu0 %vm663_vm5, %v3878_v63  ;;  %v4259_v26 = vpop.f32.mrb[72].mxu1 }
0x1786   :  { %7691 = vmatpush3.xpose.msk.msra.mxu0 %vm457_vm2, %v4071_v61  ;;  %v4272_v28 = vmul.f32 0.25, %v4259_v26  ;;  %v7712_v43 = vpop.f32.mrb[73].mxu1  ;;  %v4289_v47 = vsel %vm663_vm5, %v4277_v12, -inf  ;;  %7692 = vmatprep.mubr.msk.f32.mxu0 %vm8750_vm1, %v8747_v36 }
0x1787   :  { %4290 = vmax.xlane.f32.xlu0 %v4289_v47  ;;  %8127 = vmatprep.subr.bf16.mxu0 %v8748_v27 }
0x1788   :  { %v4278_v37 = vadd.f32 %v4272_v28, %v9140_v31 }
0x1789   :  { %7693 = vmatmul.mubr.msk.f32.vlgmr.msra.gmra.mrb[110].mxu0 %vm457_vm2, %v4061_v6  ;;  %v4264_v35 = vpop.f32.mrb[74].mxu1 }
0x178a   :  { %v4273_v5 = vmul.f32 0.25, %v4264_v35  ;;  %v7715_v39 = vpop.f32.mrb[75].mxu1  ;;  %v4292_v7 = vsel %vm663_vm5, %v4278_v37, -inf  ;;  %7695 = vmatprep.mubr.msk.f32.mxu0 %vm8750_vm1, %v8747_v36 }
0x178b   :  { %4293 = vmax.xlane.f32.xlu1 %v4292_v7 }
0x178c   :  { %v4279_v42 = vadd.f32 %v4273_v5, %v9140_v31 }
0x178d   :  { %7696 = vmatmul.mubr.msk.f32.gmra.mrb[112].mxu0 %vm457_vm2, %v4063_v46 }
0x178e   :  { %v4295_v9 = vsel %vm663_vm5, %v4279_v42, -inf  ;;  %7698 = vmatprep.mubr.msk.f32.mxu0 %vm8750_vm1, %v8747_v36 }
0x178f   :  { %4296 = vmax.xlane.f32.xlu0 %v4295_v9 }
0x1791   :  { %7699 = vmatmul.mubr.msk.f32.gmra.mrb[114].mxu0 %vm457_vm2, %v4065_v21 }
0x1792   :  { %7722 = vmatprep.mubr.msk.f32.mxu0 %vm8750_vm1, %v8747_v36 }
0x179c   :  { %4454 = vrot.lane.b32.xlu1 %v10065_v56, %s8753_s18 }
0x17a0   :  { %8389 = vrot.lane.b32.xlu1 %v10043_v10, %s8754_s19 }
0x17a4   :  { %4784 = vrot.lane.b32.xlu1 %v10047_v54, %s8754_s19 }
0x1814   :  { %v4291_v11 = vpop.xlane.xlu0 %4290 }
0x1815   :  { %v4301_v59 = vsub.f32 %v4277_v12, %v4291_v11 }
0x1817   :  { %v4310_v20 = vmul.f32 1.442695, %v4301_v59 }
0x1818   :  { %v4294_v53 = vpop.xlane.xlu1 %4293 }
0x1819   :  { %8613 = vpow2.f32 %v4310_v20  ;;  %v4302_v32 = vsub.f32 %v4278_v37, %v4294_v53 }
0x181b   :  { %v4312_v33 = vmul.f32 1.442695, %v4302_v32 }
0x181c   :  { %v4297_v55 = vpop.xlane.xlu0 %4296  ;;  %v4455_v21 = vpop.permute.xlu1 %4454 }
0x181d   :  { %8615 = vpow2.f32 %v4312_v33  ;;  %v4303_v58 = vsub.f32 %v4279_v42, %v4297_v55 }
0x181f   :  { %v4314_v17 = vmul.f32 1.442695, %v4303_v58 }
0x1820   :  { %v8390_v11 = vpop.permute.xlu1 %8389 }
0x1821   :  { %8617 = vpow2.f32 %v4314_v17 }
0x1823   :  { %v8614_v1 = vpop.eup %8613 }
0x1824   :  { %v4325_v38 = vsel %vm663_vm5, %v8614_v1, 0.0  ;;  %v4785_v20 = vpop.permute.xlu1 %4784 }
0x1825   :  { %4326 = vadd.xlane.f32.xlu0 %v4325_v38 }
0x1827   :  { %v10200_v41 = vpop.eup %8615 }
0x1828   :  { %v4328_v2 = vsel %vm663_vm5, %v10200_v41, 0.0 }
0x1829   :  { %4329 = vadd.xlane.f32.xlu0 %v4328_v2 }
0x182b   :  { %v10204_v22 = vpop.eup %8617 }
0x182c   :  { %v4331_v51 = vsel %vm663_vm5, %v10204_v22, 0.0 }
0x182d   :  { %4332 = vadd.xlane.f32.xlu1 %v4331_v51 }
0x183e   :  { %4774 = vrot.lane.b32.xlu1 %v10037_v62, %s8755_s21 }
0x183f   :  { %8384 = vrot.lane.b32.xlu0 %v10029_v60, %s8753_s18 }
0x1842   :  { %4778 = vrot.lane.b32.xlu1 %v10047_v54, %s8755_s21 }
0x1843   :  { %8394 = vrot.lane.b32.xlu0 %v10027_v49, %s8754_s19 }
0x1846   :  { %4878 = vrot.lane.b32.xlu1 %v10019_v34, %s8755_s21 }
0x1847   :  { %4776 = vrot.lane.b32.xlu0 %v10031_v19, %s8755_s21 }
0x184a   :  { %4882 = vrot.lane.b32.xlu1 %v10033_v3, %s8755_s21 }
0x184b   :  { %4888 = vrot.lane.b32.xlu0 %v10033_v3, %s8754_s19 }
0x184f   :  { %4880 = vrot.lane.b32.xlu0 %v10021_v24, %s8755_s21 }
0x1850   :  { %v10226_v44 = vpop.f32.mrb[104].mxu0 }
0x1851   :  { %v7664_v23 = vpop.f32.mrb[105].mxu0 }
0x1852   :  { %v8392_v23 = vunpack.i.h.bf16 %v8390_v11 }
0x1854   :  { %v10228_v30 = vpop.f32.mrb[106].mxu0 }
0x1855   :  { %v7667_v25 = vpop.f32.mrb[107].mxu0 }
0x1856   :  { %v8391_v25 = vunpack.i.l.bf16 %v8390_v11 }
0x1858   :  { %v10230_v45 = vpop.f32.mrb[108].mxu0 }
0x1859   :  { %v7670_v63 = vpop.f32.mrb[109].mxu0 }
0x185c   :  { %v4150_v6 = vpop.f32.mrb[110].mxu0 }
0x185d   :  { %v7694_v12 = vpop.f32.mrb[111].mxu0  ;;  %v4268_v43 = vmul.f32 0.25, %v4150_v6 }
0x185e   :  { %v8142_v12 = vpack.c.bf16 %v8392_v23, %v8391_v25 }
0x185f   :  { %v10233_v35 = vadd.f32 %v4268_v43, %v9140_v31 }
0x1860   :  { %v4155_v61 = vpop.f32.mrb[112].mxu0 }
0x1861   :  { %v7697_v26 = vpop.f32.mrb[113].mxu0  ;;  %v4269_v47 = vmul.f32 0.25, %v4155_v61  ;;  %v4280_v7 = vsel %vm663_vm5, %v10233_v35, -inf }
0x1863   :  { %v10236_v46 = vadd.f32 %v4269_v47, %v9140_v31 }
0x1864   :  { %v4160_v28 = vpop.f32.mrb[114].mxu0 }
0x1865   :  { %v7700_v37 = vpop.f32.mrb[115].mxu0  ;;  %v4270_v5 = vmul.f32 0.25, %v4160_v28  ;;  %v4283_v42 = vsel %vm663_vm5, %v10236_v46, -inf }
0x1867   :  { %v10239_v39 = vadd.f32 %v4270_v5, %v9140_v31 }
0x1869   :  { %v4286_v9 = vsel %vm663_vm5, %v10239_v39, -inf }
0x186e   :  { %4281 = vmax.xlane.f32.xlu0 %v4280_v7  ;;  %4284 = vmax.xlane.f32.xlu1 %v4283_v42 }
0x1872   :  { %4287 = vmax.xlane.f32.xlu0 %v4286_v9 }
0x18b2   :  { %v4327_v59 = vpop.xlane.xlu0 %4326 }
0x18b3   :  { %8619 = vrcp.f32 %v4327_v59 }
0x18b6   :  { %v4330_v53 = vpop.xlane.xlu0 %4329 }
0x18b7   :  { %8621 = vrcp.f32 %v4330_v53 }
0x18ba   :  { %v4333_v32 = vpop.xlane.xlu1 %4332  ;;  %v8385_v33 = vpop.permute.xlu0 %8384 }
0x18bb   :  { %v8387_v55 = vunpack.i.h.bf16 %v8385_v33  ;;  %v8386_v58 = vunpack.i.l.bf16 %v8385_v33  ;;  %8623 = vrcp.f32 %v4333_v32 }
0x18bd   :  { %v8131_v17 = vpack.c.bf16 %v8387_v55, %v8386_v58  ;;  %v8620_v38 = vpop.eup %8619 }
0x18be   :  { %v4343_v2 = vmul.f32 %v8620_v38, %v8614_v1  ;;  %v8395_v61 = vpop.permute.xlu0 %8394  ;;  %v4775_v28 = vpop.permute.xlu1 %4774 }
0x18bf   :  { %8132 = vmatpush3.bf16.msra.mxu1 %v8131_v17  ;;  %v8396_v26 = vunpack.i.l.bf16 %v8395_v61 }
0x18c0   :  { %7735 = vmatprep.subr.mxu1 %v8747_v36 }
0x18c1   :  { %v8622_v51 = vpop.eup %8621 }
0x18c2   :  { %v4344_v63 = vmul.f32 %v8622_v51, %v10200_v41  ;;  %v8397_v41 = vunpack.i.h.bf16 %v8395_v61  ;;  %v4779_v47 = vpop.permute.xlu1 %4778 }
0x18c3   :  { %7736 = vmatpush3.msra.mxu1 %v4455_v21 }
0x18c4   :  { %7738 = vmatmul.mubr.msk.f32.vlgmr.msra.gmra.mrb[76].mxu1 %vm663_vm5, %v4343_v2  ;;  %8141 = vmatprep.subr.bf16.mxu1 %v8748_v27  ;;  %v8146_v43 = vpack.c.bf16 %v8397_v41, %v8396_v26 }
0x18c5   :  { %7740 = vmatprep.mubr.msk.f32.mxu1 %vm8750_vm1, %v8747_v36  ;;  %v8624_v6 = vpop.eup %8623 }
0x18c6   :  { %v4345_v1 = vmul.f32 %v8624_v6, %v10204_v22  ;;  %v4777_v22 = vpop.permute.xlu0 %4776  ;;  %v4879_v5 = vpop.permute.xlu1 %4878 }
0x18c8   :  { %7741 = vmatmul.mubr.msk.f32.gmra.mrb[78].mxu1 %vm663_vm5, %v4344_v63 }
0x18c9   :  { %7743 = vmatprep.mubr.msk.f32.mxu1 %vm8750_vm1, %v8747_v36 }
0x18ca   :  { %8144 = vmatpush3.bf16.xpose.msk.msra.mxu1 %vm9098_vm3, %v8142_v12  ;;  %v4889_v37 = vpop.permute.xlu0 %4888  ;;  %v4883_v42 = vpop.permute.xlu1 %4882 }
0x18cb   :  { %7776 = vmatprep.subr.mxu1 %v8747_v36 }
0x18cc   :  { %7744 = vmatmul.mubr.msk.f32.gmra.mrb[80].mxu1 %vm663_vm5, %v4345_v1 }
0x18cd   :  { %7778 = vmatprep.mubr.msk.f32.mxu1 %vm8750_vm1, %v8747_v36 }
0x18ce   :  { %v4881_v7 = vpop.permute.xlu0 %4880 }
0x18d2   :  { %7777 = vmatpush3.xpose.msk.msra.mxu1 %vm457_vm2, %v4785_v20 }
0x18d3   :  { %8145 = vmatprep.subr.bf16.mxu1 %v8748_v27 }
0x18d5   :  { %7779 = vmatmul.mubr.msk.f32.vlgmr.msra.gmra.mrb[82].mxu1 %vm457_vm2, %v4775_v28 }
0x18d6   :  { %8148 = vmatpush3.bf16.xpose.msk.msra.mxu1 %vm9098_vm3, %v8146_v43  ;;  %7781 = vmatprep.mubr.msk.f32.mxu1 %vm8750_vm1, %v8747_v36 }
0x18d7   :  { %7791 = vmatprep.subr.mxu1 %v8747_v36 }
0x18d9   :  { %7782 = vmatmul.mubr.msk.f32.gmra.mrb[84].mxu1 %vm457_vm2, %v4777_v22 }
0x18da   :  { %7784 = vmatprep.mubr.msk.f32.mxu1 %vm8750_vm1, %v8747_v36 }
0x18dd   :  { %7785 = vmatmul.mubr.msk.f32.gmra.mrb[86].mxu1 %vm457_vm2, %v4779_v47 }
0x18de   :  { %7792 = vmatpush3.xpose.msk.msra.mxu1 %vm457_vm2, %v4889_v37  ;;  %7793 = vmatprep.mubr.msk.f32.mxu1 %vm8750_vm1, %v8747_v36 }
0x18df   :  { %8152 = vmatprep.subr.bf16.mxu1 %v8748_v27 }
0x18e1   :  { %7794 = vmatmul.mubr.msk.f32.vlgmr.msra.gmra.mrb[88].mxu1 %vm457_vm2, %v4879_v5 }
0x18e2   :  { %7796 = vmatprep.mubr.msk.f32.mxu1 %vm8750_vm1, %v8747_v36 }
0x18e5   :  { %7797 = vmatmul.mubr.msk.f32.gmra.mrb[90].mxu1 %vm457_vm2, %v4881_v7 }
0x18e6   :  { %7799 = vmatprep.mubr.msk.f32.mxu1 %vm8750_vm1, %v8747_v36 }
0x18e9   :  { %7800 = vmatmul.mubr.msk.f32.gmra.mrb[92].mxu1 %vm457_vm2, %v4883_v42 }
0x18ea   :  { %7823 = vmatprep.mubr.msk.f32.mxu1 %vm8750_vm1, %v8747_v36 }
0x18fb   :  { %v4285_v9 = vpop.xlane.xlu1 %4284  ;;  %v4282_v21 = vpop.xlane.xlu0 %4281 }
0x18fc   :  { %v4299_v11 = vsub.f32 %v10236_v46, %v4285_v9  ;;  %v4298_v59 = vsub.f32 %v10233_v35, %v4282_v21 }
0x18fe   :  { %v4304_v20 = vmul.f32 1.442695, %v4298_v59  ;;  %v4306_v53 = vmul.f32 1.442695, %v4299_v11 }
0x18ff   :  { %v4288_v32 = vpop.xlane.xlu0 %4287 }
0x1900   :  { %v4300_v33 = vsub.f32 %v10239_v39, %v4288_v32  ;;  %8625 = vpow2.f32 %v4304_v20 }
0x1901   :  { %8627 = vpow2.f32 %v4306_v53 }
0x1902   :  { %v4308_v55 = vmul.f32 1.442695, %v4300_v33 }
0x1904   :  { %8629 = vpow2.f32 %v4308_v55 }
0x190a   :  { %v8626_v58 = vpop.eup %8625 }
0x190b   :  { %v4316_v17 = vsel %vm663_vm5, %v8626_v58, 0.0  ;;  %v8628_v38 = vpop.eup %8627 }
0x190c   :  { %4317 = vadd.xlane.f32.xlu0 %v4316_v17  ;;  %v4319_v46 = vsel %vm663_vm5, %v8628_v38, 0.0 }
0x190e   :  { %v8630_v2 = vpop.eup %8629 }
0x190f   :  { %v4322_v51 = vsel %vm663_vm5, %v8630_v2, 0.0 }
0x1910   :  { %4323 = vadd.xlane.f32.xlu1 %v4322_v51  ;;  %4320 = vadd.xlane.f32.xlu0 %v4319_v46 }
0x1921   :  { %4353 = vrot.lane.b32.xlu1 %v10083_v52, %s8753_s18 }
0x1926   :  { %8399 = vrot.lane.b32.xlu0 %v10016_v29, %s8753_s18 }
0x1997   :  { %v10298_v35 = vpop.f32.mrb[76].mxu1 }
0x1998   :  { %v7739_v39 = vpop.f32.mrb[77].mxu1 }
0x1999   :  { %v4318_v23 = vpop.xlane.xlu0 %4317 }
0x199a   :  { %8631 = vrcp.f32 %v4318_v23 }
0x199b   :  { %v10300_v25 = vpop.f32.mrb[78].mxu1 }
0x199c   :  { %v7742_v63 = vpop.f32.mrb[79].mxu1 }
0x199d   :  { %v4321_v6 = vpop.xlane.xlu0 %4320  ;;  %v4324_v61 = vpop.xlane.xlu1 %4323 }
0x199e   :  { %8633 = vrcp.f32 %v4321_v6 }
0x199f   :  { %v10302_v12 = vpop.f32.mrb[80].mxu1  ;;  %8635 = vrcp.f32 %v4324_v61 }
0x19a0   :  { %v7745_v1 = vpop.f32.mrb[81].mxu1 }
0x19a1   :  { %v8400_v41 = vpop.permute.xlu0 %8399  ;;  %v4354_v42 = vpop.permute.xlu1 %4353 }
0x19a2   :  { %v8402_v26 = vunpack.i.h.bf16 %v8400_v41  ;;  %v8401_v28 = vunpack.i.l.bf16 %v8400_v41 }
0x19a4   :  { %v8128_v43 = vpack.c.bf16 %v8402_v26, %v8401_v28  ;;  %v8632_v22 = vpop.eup %8631 }
0x19a5   :  { %v4340_v7 = vmul.f32 %v8632_v22, %v8626_v58 }
0x19a6   :  { %8129 = vmatpush3.bf16.msra.mxu0 %v8128_v43 }
0x19a7   :  { %7720 = vmatprep.subr.mxu0 %v8747_v36 }
0x19a8   :  { %v4864_v47 = vpop.f32.mrb[82].mxu1  ;;  %v8634_v9 = vpop.eup %8633 }
0x19a9   :  { %v4982_v37 = vmul.f32 0.25, %v4864_v47  ;;  %v7780_v5 = vpop.f32.mrb[83].mxu1  ;;  %v4341_v32 = vmul.f32 %v8634_v9, %v8628_v38  ;;  %v8636_v33 = vpop.eup %8635  ;;  %v6765_v9 = vld [vmem:[%s10892_s6 + $0x50] sm:$0xff] }
0x19aa   :  { %7721 = vmatpush3.msra.mxu0 %v4354_v42  ;;  %v4342_v39 = vmul.f32 %v8636_v33, %v8630_v2 }
0x19ab   :  { %v4988_v21 = vadd.f32 %v4982_v37, %v9140_v31  ;;  %7723 = vmatmul.mubr.msk.f32.vlgmr.msra.gmra.mrb[116].mxu0 %vm663_vm5, %v4340_v7 }
0x19ac   :  { %v4869_v11 = vpop.f32.mrb[84].mxu1  ;;  %7725 = vmatprep.mubr.msk.f32.mxu0 %vm8750_vm1, %v8747_v36 }
0x19ad   :  { %v4983_v59 = vmul.f32 0.25, %v4869_v11  ;;  %v7783_v20 = vpop.f32.mrb[85].mxu1  ;;  %v4994_v53 = vsel %vm663_vm5, %v4988_v21, -inf  ;;  %v6766_v11 = vld [vmem:[%s10892_s6 + $0x58] sm:$0xff] }
0x19ae   :  { %4995 = vmax.xlane.f32.xlu1 %v4994_v53  ;;  %v6763_v20 = vld [vmem:[%s10892_s6 + $0x40] sm:$0xff]  ;;  %v6764_v53 = vld [vmem:[%s10892_s6 + $0x48] sm:$0xff] }
0x19af   :  { %v4989_v55 = vadd.f32 %v4983_v59, %v9140_v31  ;;  %7726 = vmatmul.mubr.msk.f32.gmra.mrb[118].mxu0 %vm663_vm5, %v4341_v32  ;;  %v8133_v59 = vpack.c.bf16 %v6766_v11, %v6765_v9  ;;  %v8137_v32 = vpack.c.bf16 %v6764_v53, %v6763_v20 }
0x19b0   :  { %v4874_v58 = vpop.f32.mrb[86].mxu1  ;;  %7728 = vmatprep.mubr.msk.f32.mxu0 %vm8750_vm1, %v8747_v36 }
0x19b1   :  { %v4984_v17 = vmul.f32 0.25, %v4874_v58  ;;  %v7786_v51 = vpop.f32.mrb[87].mxu1  ;;  %v4997_v46 = vsel %vm663_vm5, %v4989_v55, -inf  ;;  %8134 = vmatprep.subr.bf16.mxu0 %v8133_v59 }
0x19b2   :  { %4998 = vmax.xlane.f32.xlu0 %v4997_v46  ;;  %8136 = vmatpush3.bf16.msra.mxu0 %v8133_v59 }
0x19b3   :  { %v4990_v23 = vadd.f32 %v4984_v17, %v9140_v31  ;;  %7729 = vmatmul.mubr.msk.f32.gmra.mrb[120].mxu0 %vm663_vm5, %v4342_v39  ;;  %8138 = vmatprep.subr.bf16.mxu0 %v8137_v32 }
0x19b4   :  { %v4968_v38 = vpop.f32.mrb[88].mxu1 }
0x19b5   :  { %v4985_v63 = vmul.f32 0.25, %v4968_v38  ;;  %v7795_v6 = vpop.f32.mrb[89].mxu1  ;;  %v5000_v1 = vsel %vm663_vm5, %v4990_v23, -inf }
0x19b6   :  { %5001 = vmax.xlane.f32.xlu1 %v5000_v1 }
0x19b7   :  { %v4991_v61 = vadd.f32 %v4985_v63, %v9140_v31 }
0x19b8   :  { %v4973_v41 = vpop.f32.mrb[90].mxu1 }
0x19b9   :  { %v4986_v26 = vmul.f32 0.25, %v4973_v41  ;;  %v7798_v28 = vpop.f32.mrb[91].mxu1  ;;  %v5003_v43 = vsel %vm663_vm5, %v4991_v61, -inf }
0x19ba   :  { %5004 = vmax.xlane.f32.xlu0 %v5003_v43 }
0x19bb   :  { %v4992_v2 = vadd.f32 %v4986_v26, %v9140_v31 }
0x19bc   :  { %v4978_v22 = vpop.f32.mrb[92].mxu1 }
0x19bd   :  { %v4987_v47 = vmul.f32 0.25, %v4978_v22  ;;  %v7801_v37 = vpop.f32.mrb[93].mxu1  ;;  %v5006_v5 = vsel %vm663_vm5, %v4992_v2, -inf }
0x19be   :  { %5007 = vmax.xlane.f32.xlu0 %v5006_v5 }
0x19bf   :  { %v4993_v7 = vadd.f32 %v4987_v47, %v9140_v31 }
0x19c1   :  { %v5009_v42 = vsel %vm663_vm5, %v4993_v7, -inf }
0x19c2   :  { %5010 = vmax.xlane.f32.xlu1 %v5009_v42 }
0x1a3b   :  { %v4996_v33 = vpop.xlane.xlu1 %4995 }
0x1a3c   :  { %v5012_v58 = vsub.f32 %v4988_v21, %v4996_v33 }
0x1a3e   :  { %v5018_v17 = vmul.f32 1.442695, %v5012_v58 }
0x1a3f   :  { %v4999_v51 = vpop.xlane.xlu0 %4998 }
0x1a40   :  { %8637 = vpow2.f32 %v5018_v17  ;;  %v5013_v46 = vsub.f32 %v4989_v55, %v4999_v51 }
0x1a42   :  { %v5020_v39 = vmul.f32 1.442695, %v5013_v46 }
0x1a43   :  { %v5002_v38 = vpop.xlane.xlu1 %5001 }
0x1a44   :  { %8639 = vpow2.f32 %v5020_v39  ;;  %v5014_v63 = vsub.f32 %v4990_v23, %v5002_v38 }
0x1a46   :  { %v5022_v6 = vmul.f32 1.442695, %v5014_v63 }
0x1a47   :  { %v5005_v1 = vpop.xlane.xlu0 %5004 }
0x1a48   :  { %8641 = vpow2.f32 %v5022_v6  ;;  %v5015_v41 = vsub.f32 %v4991_v61, %v5005_v1 }
0x1a4a   :  { %v10336_v26 = vpop.eup %8637  ;;  %v5024_v28 = vmul.f32 1.442695, %v5015_v41 }
0x1a4b   :  { %v5008_v43 = vpop.xlane.xlu0 %5007  ;;  %v5030_v22 = vsel %vm663_vm5, %v10336_v26, 0.0 }
0x1a4c   :  { %8643 = vpow2.f32 %v5024_v28  ;;  %v5016_v21 = vsub.f32 %v4992_v2, %v5008_v43  ;;  %5031 = vadd.xlane.f32.xlu0 %v5030_v22 }
0x1a4e   :  { %v10340_v47 = vpop.eup %8639  ;;  %v5026_v55 = vmul.f32 1.442695, %v5016_v21 }
0x1a4f   :  { %v5033_v23 = vsel %vm663_vm5, %v10340_v47, 0.0  ;;  %v5011_v11 = vpop.xlane.xlu1 %5010 }
0x1a50   :  { %8645 = vpow2.f32 %v5026_v55  ;;  %5034 = vadd.xlane.f32.xlu1 %v5033_v23  ;;  %v5017_v59 = vsub.f32 %v4993_v7, %v5011_v11 }
0x1a52   :  { %v10344_v37 = vpop.eup %8641  ;;  %v5028_v20 = vmul.f32 1.442695, %v5017_v59 }
0x1a53   :  { %v5036_v61 = vsel %vm663_vm5, %v10344_v37, 0.0 }
0x1a54   :  { %5037 = vadd.xlane.f32.xlu1 %v5036_v61  ;;  %8647 = vpow2.f32 %v5028_v20 }
0x1a56   :  { %v10348_v5 = vpop.eup %8643 }
0x1a57   :  { %v5039_v2 = vsel %vm663_vm5, %v10348_v5, 0.0 }
0x1a58   :  { %5040 = vadd.xlane.f32.xlu0 %v5039_v2 }
0x1a5a   :  { %v10352_v42 = vpop.eup %8645 }
0x1a5b   :  { %v5042_v9 = vsel %vm663_vm5, %v10352_v42, 0.0 }
0x1a5c   :  { %5043 = vadd.xlane.f32.xlu0 %v5042_v9 }
0x1a65   :  { %8409 = vrot.lane.b32.xlu1 %v10029_v60, %s8755_s21 }
0x1a69   :  { %5064 = vrot.lane.b32.xlu1 %v10083_v52, %s8755_s21 }
0x1a72   :  { %8404 = vrot.lane.b32.xlu0 %v10016_v29, %s8755_s21 }
0x1a76   :  { %8414 = vrot.lane.b32.xlu0 %v10043_v10, %s8756_s29  ;;  %v10376_v10 = vpop.eup %8647 }
0x1a77   :  { %v5045_v7 = vsel %vm663_vm5, %v10376_v10, 0.0 }
0x1a7a   :  { %8419 = vrot.lane.b32.xlu0 %v10027_v49, %s8756_s29 }
0x1a7e   :  { %5377 = vrot.lane.b32.xlu0 %v10031_v19, %s10910_s23  ;;  %v4433_v53 = vpop.f32.mrb[116].mxu0 }
0x1a7f   :  { %v7724_v33 = vpop.f32.mrb[117].mxu0  ;;  %7750 = vmatprep.mubr.msk.f32.mxu0 %vm457_vm2, %v4433_v53 }
0x1a82   :  { %5379 = vrot.lane.b32.xlu0 %v10047_v54, %s10910_s23  ;;  %v4438_v58 = vpop.f32.mrb[118].mxu0 }
0x1a83   :  { %v7727_v17 = vpop.f32.mrb[119].mxu0  ;;  %7751 = vmatmul.mubr.msk.f32.vlgmr.msra.gmra.mrb[122].mxu0 %vm457_vm2, %v4438_v58 }
0x1a84   :  { %8140 = vmatpush3.bf16.msra.mxu0 %v8137_v32  ;;  %v6768_v32 = vld [vmem:[%s10892_s6 + $0x68] sm:$0xff] }
0x1a85   :  { %8149 = vmatprep.subr.bf16.mxu0 %v8748_v27 }
0x1a86   :  { %5481 = vrot.lane.b32.xlu0 %v10021_v24, %s10910_s23  ;;  %v4443_v49 = vpop.f32.mrb[120].mxu0 }
0x1a87   :  { %v7730_v19 = vpop.f32.mrb[121].mxu0  ;;  %7753 = vmatprep.mubr.msk.f32.mxu0 %vm457_vm2, %v4443_v49 }
0x1a88   :  { %7754 = vmatmul.mubr.msk.f32.gmra.mrb[124].mxu0 %vm457_vm2, %v10298_v35 }
0x1a89   :  { %7756 = vmatprep.mubr.msk.f32.mxu0 %vm457_vm2, %v10300_v25 }
0x1a8c   :  { %7757 = vmatmul.mubr.msk.f32.gmra.mrb[126].mxu0 %vm457_vm2, %v10302_v12 }
0x1a8d   :  { %5046 = vadd.xlane.f32.xlu1 %v5045_v7  ;;  %7763 = vmatprep.mubr.msk.f32.mxu0 %vm457_vm2, %v10226_v44 }
0x1a90   :  { %7764 = vmatmul.mubr.msk.f32.vlgmr.msra.gmra.mrb[122].mxu0 %vm457_vm2, %v10228_v30 }
0x1a91   :  { %7766 = vmatprep.mubr.msk.f32.mxu0 %vm457_vm2, %v10230_v45 }
0x1a94   :  { %7767 = vmatmul.mubr.msk.f32.gmra.mrb[124].mxu0 %vm457_vm2, %v10158_v4 }
0x1a95   :  { %7769 = vmatprep.mubr.msk.f32.mxu0 %vm457_vm2, %v10160_v50 }
0x1a98   :  { %7770 = vmatmul.mubr.msk.f32.gmra.mrb[126].mxu0 %vm457_vm2, %v10163_v16 }
0x1a99   :  { %7808 = vmatprep.mubr.msk.f32.mxu0 %vm8750_vm1, %v8747_v36 }
0x1a9e   :  { %5162 = vrot.lane.b32.xlu1 %v10065_v56, %s8755_s21 }
0x1aa2   :  { %5385 = vrot.lane.b32.xlu1 %v10047_v54, %s8756_s29 }
0x1aa6   :  { %5375 = vrot.lane.b32.xlu1 %v10037_v62, %s10910_s23 }
0x1aaa   :  { %5489 = vrot.lane.b32.xlu1 %v10033_v3, %s8756_s29 }
0x1aae   :  { %5479 = vrot.lane.b32.xlu1 %v10019_v34, %s10910_s23 }
0x1ab2   :  { %5483 = vrot.lane.b32.xlu1 %v10033_v3, %s10910_s23  ;;  %v6767_v3 = vld [vmem:[%s10892_s6 + $0x60] sm:$0xff] }
0x1ab3   :  { %v8155_v46 = vpack.c.bf16 %v6768_v32, %v6767_v3 }
0x1ad9   :  { %v5032_v4 = vpop.xlane.xlu0 %5031 }
0x1ada   :  { %8649 = vrcp.f32 %v5032_v4 }
0x1add   :  { %v5035_v24 = vpop.xlane.xlu1 %5034 }
0x1ade   :  { %8651 = vrcp.f32 %v5035_v24 }
0x1ae1   :  { %v5038_v50 = vpop.xlane.xlu1 %5037 }
0x1ae2   :  { %8653 = vrcp.f32 %v5038_v50 }
0x1ae4   :  { %v8650_v51 = vpop.eup %8649 }
0x1ae5   :  { %v5041_v16 = vpop.xlane.xlu0 %5040  ;;  %v8410_v44 = vpop.permute.xlu1 %8409  ;;  %v5054_v39 = vmul.f32 %v8650_v51, %v10336_v26 }
0x1ae6   :  { %v8412_v30 = vunpack.i.h.bf16 %v8410_v44  ;;  %v8411_v45 = vunpack.i.l.bf16 %v8410_v44  ;;  %8655 = vrcp.f32 %v5041_v16 }
0x1ae8   :  { %v8153_v54 = vpack.c.bf16 %v8412_v30, %v8411_v45  ;;  %v8652_v63 = vpop.eup %8651 }
0x1ae9   :  { %v5044_v35 = vpop.xlane.xlu0 %5043  ;;  %v5065_v38 = vpop.permute.xlu1 %5064  ;;  %v5055_v6 = vmul.f32 %v8652_v63, %v10340_v47 }
0x1aea   :  { %8154 = vmatpush3.bf16.msra.mxu1 %v8153_v54  ;;  %8657 = vrcp.f32 %v5044_v35 }
0x1aeb   :  { %7821 = vmatprep.subr.mxu1 %v8747_v36 }
0x1aec   :  { %v8654_v1 = vpop.eup %8653 }
0x1aed   :  { %v8405_v62 = vpop.permute.xlu0 %8404  ;;  %v5056_v41 = vmul.f32 %v8654_v1, %v10344_v37 }
0x1aee   :  { %v8407_v25 = vunpack.i.h.bf16 %v8405_v62  ;;  %v8406_v34 = vunpack.i.l.bf16 %v8405_v62 }
0x1af0   :  { %v8150_v12 = vpack.c.bf16 %v8407_v25, %v8406_v34  ;;  %v8656_v28 = vpop.eup %8655 }
0x1af1   :  { %v8415_v43 = vpop.permute.xlu0 %8414  ;;  %v5057_v22 = vmul.f32 %v8656_v28, %v10348_v5 }
0x1af2   :  { %8151 = vmatpush3.bf16.msra.mxu0 %v8150_v12  ;;  %v8417_v55 = vunpack.i.h.bf16 %v8415_v43  ;;  %v8416_v23 = vunpack.i.l.bf16 %v8415_v43 }
0x1af3   :  { %7806 = vmatprep.subr.mxu0 %v8747_v36 }
0x1af4   :  { %v8658_v47 = vpop.eup %8657  ;;  %v8160_v61 = vpack.c.bf16 %v8417_v55, %v8416_v23 }
0x1af5   :  { %v5058_v37 = vmul.f32 %v8658_v47, %v10352_v42  ;;  %v8420_v9 = vpop.permute.xlu0 %8419 }
0x1af6   :  { %7807 = vmatpush3.msra.mxu0 %v5065_v38  ;;  %v8422_v53 = vunpack.i.h.bf16 %v8420_v9  ;;  %v8421_v33 = vunpack.i.l.bf16 %v8420_v9 }
0x1af7   :  { %7809 = vmatmul.mubr.msk.f32.vlgmr.msra.gmra.mrb[128].mxu0 %vm663_vm5, %v5054_v39  ;;  %8156 = vmatprep.subr.bf16.mxu0 %v8155_v46 }
0x1af8   :  { %7811 = vmatprep.mubr.msk.f32.mxu0 %vm8750_vm1, %v8747_v36  ;;  %8158 = vmatpush3.bf16.msra.mxu0 %v8155_v46  ;;  %v8164_v49 = vpack.c.bf16 %v8422_v53, %v8421_v33 }
0x1af9   :  { %8163 = vmatprep.subr.bf16.mxu0 %v8748_v27  ;;  %v5378_v59 = vpop.permute.xlu0 %5377 }
0x1afb   :  { %7812 = vmatmul.mubr.msk.f32.gmra.mrb[130].mxu0 %vm663_vm5, %v5055_v6 }
0x1afc   :  { %7814 = vmatprep.mubr.msk.f32.mxu0 %vm8750_vm1, %v8747_v36 }
0x1afd   :  { %v5380_v20 = vpop.permute.xlu0 %5379 }
0x1aff   :  { %7815 = vmatmul.mubr.msk.f32.gmra.mrb[132].mxu0 %vm663_vm5, %v5056_v41 }
0x1b01   :  { %v5482_v35 = vpop.permute.xlu0 %5481 }
0x1b1a   :  { %v5047_v26 = vpop.xlane.xlu1 %5046 }
0x1b1b   :  { %8659 = vrcp.f32 %v5047_v26 }
0x1b1e   :  { %v5163_v21 = vpop.permute.xlu1 %5162 }
0x1b1f   :  { %7822 = vmatpush3.msra.mxu1 %v5163_v21 }
0x1b20   :  { %7824 = vmatmul.mubr.msk.f32.vlgmr.msra.gmra.mrb[94].mxu1 %vm663_vm5, %v5057_v22  ;;  %8159 = vmatprep.subr.bf16.mxu1 %v8748_v27 }
0x1b21   :  { %7826 = vmatprep.mubr.msk.f32.mxu1 %vm8750_vm1, %v8747_v36 }
0x1b22   :  { %v5386_v42 = vpop.permute.xlu1 %5385 }
0x1b24   :  { %7827 = vmatmul.mubr.msk.f32.gmra.mrb[96].mxu1 %vm663_vm5, %v5058_v37 }
0x1b25   :  { %v8660_v2 = vpop.eup %8659  ;;  %7829 = vmatprep.mubr.msk.f32.mxu1 %vm8750_vm1, %v8747_v36 }
0x1b26   :  { %8162 = vmatpush3.bf16.xpose.msk.msra.mxu1 %vm9098_vm3, %v8160_v61  ;;  %v5059_v5 = vmul.f32 %v8660_v2, %v10376_v10  ;;  %v5376_v11 = vpop.permute.xlu1 %5375 }
0x1b27   :  { %7849 = vmatprep.subr.mxu1 %v8747_v36 }
0x1b28   :  { %7830 = vmatmul.mubr.msk.f32.gmra.mrb[98].mxu1 %vm663_vm5, %v5059_v5 }
0x1b29   :  { %7851 = vmatprep.mubr.msk.f32.mxu1 %vm8750_vm1, %v8747_v36 }
0x1b2a   :  { %v5490_v4 = vpop.permute.xlu1 %5489 }
0x1b2e   :  { %7850 = vmatpush3.xpose.msk.msra.mxu1 %vm457_vm2, %v5386_v42  ;;  %v5480_v54 = vpop.permute.xlu1 %5479 }
0x1b2f   :  { %8167 = vmatprep.subr.bf16.mxu1 %v8748_v27 }
0x1b31   :  { %7852 = vmatmul.mubr.msk.f32.vlgmr.msra.gmra.mrb[100].mxu1 %vm457_vm2, %v5376_v11 }
0x1b32   :  { %7854 = vmatprep.mubr.msk.f32.mxu1 %vm8750_vm1, %v8747_v36  ;;  %v5484_v12 = vpop.permute.xlu1 %5483 }
0x1b35   :  { %7855 = vmatmul.mubr.msk.f32.gmra.mrb[102].mxu1 %vm457_vm2, %v5378_v59 }
0x1b36   :  { %7857 = vmatprep.mubr.msk.f32.mxu1 %vm8750_vm1, %v8747_v36 }
0x1b39   :  { %7858 = vmatmul.mubr.msk.f32.gmra.mrb[104].mxu1 %vm457_vm2, %v5380_v20 }
0x1b3a   :  { %7881 = vmatprep.mubr.msk.f32.mxu1 %vm8750_vm1, %v8747_v36 }
0x1bca   :  { %v5144_v58 = vpop.f32.mrb[128].mxu0 }
0x1bcb   :  { %v7810_v17 = vpop.f32.mrb[129].mxu0  ;;  %7836 = vmatprep.mubr.msk.f32.mxu0 %vm457_vm2, %v5144_v58 }
0x1bce   :  { %v5149_v19 = vpop.f32.mrb[130].mxu0 }
0x1bcf   :  { %v7813_v10 = vpop.f32.mrb[131].mxu0  ;;  %7837 = vmatmul.mubr.msk.f32.vlgmr.msra.gmra.mrb[122].mxu0 %vm457_vm2, %v5149_v19 }
0x1bd0   :  { %8166 = vmatpush3.bf16.xpose.msk.msra.mxu0 %vm9098_vm3, %v8164_v49 }
0x1bd1   :  { %7864 = vmatprep.subr.mxu0 %v8747_v36 }
0x1bd2   :  { %v5154_v7 = vpop.f32.mrb[132].mxu0 }
0x1bd3   :  { %v7816_v24 = vpop.f32.mrb[133].mxu0  ;;  %7839 = vmatprep.mubr.msk.f32.mxu0 %vm457_vm2, %v5154_v7 }
0x1bd8   :  { %7865 = vmatpush3.xpose.msk.msra.mxu0 %vm457_vm2, %v5490_v4 }
0x1bd9   :  { %8170 = vmatprep.subr.bf16.mxu0 %v8748_v27 }
0x1bf3   :  { %v5242_v50 = vpop.f32.mrb[94].mxu1 }
0x1bf4   :  { %v7825_v16 = vpop.f32.mrb[95].mxu1  ;;  %7840 = vmatmul.mubr.msk.f32.gmra.mrb[124].mxu0 %vm457_vm2, %v5242_v50 }
0x1bf7   :  { %v5247_v44 = vpop.f32.mrb[96].mxu1 }
0x1bf8   :  { %v7828_v30 = vpop.f32.mrb[97].mxu1  ;;  %7842 = vmatprep.mubr.msk.f32.mxu0 %vm457_vm2, %v5247_v44 }
0x1bfb   :  { %v5252_v13 = vpop.f32.mrb[98].mxu1 }
0x1bfc   :  { %v7831_v45 = vpop.f32.mrb[99].mxu1  ;;  %7843 = vmatmul.mubr.msk.f32.gmra.mrb[126].mxu0 %vm457_vm2, %v5252_v13 }
0x1bfd   :  { %7866 = vmatprep.mubr.msk.f32.mxu0 %vm8750_vm1, %v8747_v36 }
0x1c00   :  { %7867 = vmatmul.mubr.msk.f32.vlgmr.msra.gmra.mrb[134].mxu0 %vm457_vm2, %v5480_v54 }
0x1c01   :  { %7869 = vmatprep.mubr.msk.f32.mxu0 %vm8750_vm1, %v8747_v36 }
0x1c04   :  { %v5465_v62 = vpop.f32.mrb[100].mxu1  ;;  %7870 = vmatmul.mubr.msk.f32.gmra.mrb[136].mxu0 %vm457_vm2, %v5482_v35 }
0x1c05   :  { %v5583_v25 = vmul.f32 0.25, %v5465_v62  ;;  %v7853_v34 = vpop.f32.mrb[101].mxu1  ;;  %7872 = vmatprep.mubr.msk.f32.mxu0 %vm8750_vm1, %v8747_v36 }
0x1c07   :  { %v5589_v3 = vadd.f32 %v5583_v25, %v9140_v31 }
0x1c08   :  { %v5470_v32 = vpop.f32.mrb[102].mxu1  ;;  %7873 = vmatmul.mubr.msk.f32.gmra.mrb[138].mxu0 %vm457_vm2, %v5484_v12 }
0x1c09   :  { %v5584_v51 = vmul.f32 0.25, %v5470_v32  ;;  %v7856_v46 = vpop.f32.mrb[103].mxu1  ;;  %v5595_v39 = vsel %vm663_vm5, %v5589_v3, -inf  ;;  %7896 = vmatprep.mubr.msk.f32.mxu0 %vm8750_vm1, %v8747_v36 }
0x1c0a   :  { %5596 = vmax.xlane.f32.xlu0 %v5595_v39 }
0x1c0b   :  { %v5590_v38 = vadd.f32 %v5584_v51, %v9140_v31 }
0x1c0c   :  { %v5475_v63 = vpop.f32.mrb[104].mxu1 }
0x1c0d   :  { %v5585_v6 = vmul.f32 0.25, %v5475_v63  ;;  %v7859_v1 = vpop.f32.mrb[105].mxu1  ;;  %v5598_v41 = vsel %vm663_vm5, %v5590_v38, -inf }
0x1c0e   :  { %5599 = vmax.xlane.f32.xlu1 %v5598_v41 }
0x1c0f   :  { %v5591_v26 = vadd.f32 %v5585_v6, %v9140_v31 }
0x1c11   :  { %v5601_v28 = vsel %vm663_vm5, %v5591_v26, -inf }
0x1c12   :  { %5602 = vmax.xlane.f32.xlu0 %v5601_v28 }
0x1c97   :  { %v5597_v43 = vpop.xlane.xlu0 %5596 }
0x1c98   :  { %v5613_v22 = vsub.f32 %v5589_v3, %v5597_v43 }
0x1c9a   :  { %v5619_v23 = vmul.f32 1.442695, %v5613_v22 }
0x1c9b   :  { %v5600_v21 = vpop.xlane.xlu1 %5599 }
0x1c9c   :  { %v5614_v55 = vsub.f32 %v5590_v38, %v5600_v21  ;;  %8661 = vpow2.f32 %v5619_v23 }
0x1c9e   :  { %v5621_v61 = vmul.f32 1.442695, %v5614_v55 }
0x1c9f   :  { %v5603_v47 = vpop.xlane.xlu0 %5602 }
0x1ca0   :  { %v5615_v37 = vsub.f32 %v5591_v26, %v5603_v47  ;;  %8663 = vpow2.f32 %v5621_v61 }
0x1ca2   :  { %v5623_v2 = vmul.f32 1.442695, %v5615_v37 }
0x1ca4   :  { %8665 = vpow2.f32 %v5623_v2 }
0x1ca6   :  { %v8662_v7 = vpop.eup %8661 }
0x1ca7   :  { %v5631_v16 = vsel %vm663_vm5, %v8662_v7, 0.0 }
0x1caa   :  { %v8664_v4 = vpop.eup %8663 }
0x1cab   :  { %v5634_v30 = vsel %vm663_vm5, %v8664_v4, 0.0 }
0x1cae   :  { %v10493_v44 = vpop.eup %8665 }
0x1caf   :  { %v5637_v13 = vsel %vm663_vm5, %v10493_v44, 0.0 }
0x1cd3   :  { %v5569_v5 = vpop.f32.mrb[134].mxu0 }
0x1cd4   :  { %v5586_v42 = vmul.f32 0.25, %v5569_v5  ;;  %v7868_v9 = vpop.f32.mrb[135].mxu0 }
0x1cd6   :  { %v5592_v11 = vadd.f32 %v5586_v42, %v9140_v31 }
0x1cd7   :  { %v5574_v59 = vpop.f32.mrb[136].mxu0 }
0x1cd8   :  { %v5587_v20 = vmul.f32 0.25, %v5574_v59  ;;  %v7871_v53 = vpop.f32.mrb[137].mxu0  ;;  %v5604_v33 = vsel %vm663_vm5, %v5592_v11, -inf }
0x1cd9   :  { %5605 = vmax.xlane.f32.xlu0 %v5604_v33 }
0x1cda   :  { %v5593_v58 = vadd.f32 %v5587_v20, %v9140_v31 }
0x1cdb   :  { %v5579_v17 = vpop.f32.mrb[138].mxu0 }
0x1cdc   :  { %v5588_v49 = vmul.f32 0.25, %v5579_v17  ;;  %v7874_v19 = vpop.f32.mrb[139].mxu0  ;;  %v5607_v10 = vsel %vm663_vm5, %v5593_v58, -inf }
0x1cdd   :  { %5608 = vmax.xlane.f32.xlu0 %v5607_v10  ;;  %v6770_v19 = vld [vmem:[%s10892_s6 + $0x78] sm:$0xff] }
0x1cde   :  { %v5594_v24 = vadd.f32 %v5588_v49, %v9140_v31  ;;  %v6769_v49 = vld [vmem:[%s10892_s6 + $0x70] sm:$0xff] }
0x1cdf   :  { %v8173_v10 = vpack.c.bf16 %v6770_v19, %v6769_v49  ;;  %v6875_v49 = vld [vmem:[%s10895_s9 + $0xb0] sm:$0xff] }
0x1ce0   :  { %v5610_v50 = vsel %vm663_vm5, %v5594_v24, -inf }
0x1ce1   :  { %5611 = vmax.xlane.f32.xlu1 %v5610_v50  ;;  %5632 = vadd.xlane.f32.xlu0 %v5631_v16 }
0x1ce5   :  { %5635 = vadd.xlane.f32.xlu1 %v5634_v30  ;;  %5638 = vadd.xlane.f32.xlu0 %v5637_v13 }
0x1d66   :  { %v5606_v45 = vpop.xlane.xlu0 %5605 }
0x1d67   :  { %v5616_v54 = vsub.f32 %v5592_v11, %v5606_v45 }
0x1d69   :  { %v5625_v35 = vmul.f32 1.442695, %v5616_v54 }
0x1d6a   :  { %v5609_v31 = vpop.xlane.xlu0 %5608 }
0x1d6b   :  { %8667 = vpow2.f32 %v5625_v35  ;;  %v5617_v62 = vsub.f32 %v5593_v58, %v5609_v31 }
0x1d6d   :  { %v5627_v25 = vmul.f32 1.442695, %v5617_v62 }
0x1d6e   :  { %v5612_v51 = vpop.xlane.xlu1 %5611  ;;  %v5633_v6 = vpop.xlane.xlu0 %5632 }
0x1d6f   :  { %8669 = vpow2.f32 %v5627_v25  ;;  %v5618_v46 = vsub.f32 %v5594_v24, %v5612_v51  ;;  %v6868_v25 = vld [vmem:[%s10893_s7 + $0x1] ss:$0 sm:$0xff] }
0x1d71   :  { %v5629_v39 = vmul.f32 1.442695, %v5618_v46 }
0x1d72   :  { %v5636_v1 = vpop.xlane.xlu1 %5635 }
0x1d73   :  { %8671 = vpow2.f32 %v5629_v39 }
0x1d74   :  { %8673 = vrcp.f32 %v5633_v6 }
0x1d75   :  { %v8668_v34 = vpop.eup %8667  ;;  %8675 = vrcp.f32 %v5636_v1 }
0x1d76   :  { %v5640_v12 = vsel %vm663_vm5, %v8668_v34, 0.0 }
0x1d77   :  { %5641 = vadd.xlane.f32.xlu1 %v5640_v12 }
0x1d79   :  { %v8670_v3 = vpop.eup %8669 }
0x1d7a   :  { %v5643_v32 = vsel %vm663_vm5, %v8670_v3, 0.0 }
0x1d7b   :  { %5644 = vadd.xlane.f32.xlu0 %v5643_v32 }
0x1d7d   :  { %v8672_v38 = vpop.eup %8671 }
0x1d7e   :  { %v5646_v63 = vsel %vm663_vm5, %v8672_v38, 0.0  ;;  %v8674_v37 = vpop.eup %8673 }
0x1d7f   :  { %v8676_v61 = vpop.eup %8675 }
0x1d80   :  { %v5656_v2 = vmul.f32 %v8676_v61, %v8664_v4 }
0x1d88   :  { %5665 = vrot.lane.b32.xlu1 %v10083_v52, %s10910_s23  ;;  %v5639_v52 = vpop.xlane.xlu0 %5638 }
0x1d89   :  { %8677 = vrcp.f32 %v5639_v52 }
0x1d8c   :  { %8429 = vrot.lane.b32.xlu1 %v10029_v60, %s10910_s23 }
0x1d91   :  { %8424 = vrot.lane.b32.xlu0 %v10016_v29, %s10910_s23 }
0x1d93   :  { %v8678_v5 = vpop.eup %8677 }
0x1d94   :  { %v5657_v42 = vmul.f32 %v8678_v5, %v10493_v44  ;;  %v6870_v5 = vld [vmem:[%s10895_s9 + $0x88] sm:$0xff] }
0x1db0   :  { %5647 = vadd.xlane.f32.xlu1 %v5646_v63 }
0x1dc1   :  { %5763 = vrot.lane.b32.xlu1 %v10065_v56, %s10910_s23  ;;  %v5655_v56 = vmul.f32 %v8674_v37, %v8662_v7 }
0x1e04   :  { %v5642_v41 = vpop.xlane.xlu1 %5641 }
0x1e05   :  { %8679 = vrcp.f32 %v5642_v41 }
0x1e08   :  { %v5666_v60 = vpop.permute.xlu1 %5665  ;;  %v5645_v26 = vpop.xlane.xlu0 %5644 }
0x1e09   :  { %8681 = vrcp.f32 %v5645_v26 }
0x1e0c   :  { %v8430_v29 = vpop.permute.xlu1 %8429  ;;  %v8425_v28 = vpop.permute.xlu0 %8424 }
0x1e0d   :  { %v8432_v43 = vunpack.i.h.bf16 %v8430_v29  ;;  %v8431_v22 = vunpack.i.l.bf16 %v8430_v29  ;;  %v8427_v21 = vunpack.i.h.bf16 %v8425_v28  ;;  %v8426_v47 = vunpack.i.l.bf16 %v8425_v28 }
0x1e0f   :  { %v8171_v55 = vpack.c.bf16 %v8432_v43, %v8431_v22  ;;  %v8168_v23 = vpack.c.bf16 %v8427_v21, %v8426_v47  ;;  %v8680_v11 = vpop.eup %8679 }
0x1e10   :  { %v5658_v59 = vmul.f32 %v8680_v11, %v8668_v34  ;;  %v6869_v11 = vld [vmem:[%s10895_s9 + $0x80] sm:$0xff] }
0x1e11   :  { %8169 = vmatpush3.bf16.msra.mxu1 %v8168_v23  ;;  %8172 = vmatpush3.bf16.msra.mxu0 %v8171_v55 }
0x1e12   :  { %7879 = vmatprep.subr.mxu1 %v8747_v36  ;;  %7894 = vmatprep.subr.mxu0 %v8747_v36 }
0x1e13   :  { %v8682_v53 = vpop.eup %8681 }
0x1e14   :  { %v5659_v33 = vmul.f32 %v8682_v53, %v8670_v3  ;;  %v6874_v53 = vld [vmem:[%s10895_s9 + $0xa8] sm:$0xff] }
0x1e15   :  { %7880 = vmatpush3.msra.mxu1 %v5666_v60 }
0x1e16   :  { %7882 = vmatmul.mubr.msk.f32.vlgmr.msra.gmra.mrb[106].mxu1 %vm663_vm5, %v5655_v56 }
0x1e17   :  { %7884 = vmatprep.mubr.msk.f32.mxu1 %vm8750_vm1, %v8747_v36 }
0x1e1a   :  { %7885 = vmatmul.mubr.msk.f32.gmra.mrb[108].mxu1 %vm663_vm5, %v5656_v2 }
0x1e1b   :  { %7887 = vmatprep.mubr.msk.f32.mxu1 %vm8750_vm1, %v8747_v36 }
0x1e1e   :  { %7888 = vmatmul.mubr.msk.f32.gmra.mrb[110].mxu1 %vm663_vm5, %v5657_v42  ;;  %v6872_v42 = vld [vmem:[%s10895_s9 + $0x98] sm:$0xff] }
0x1e1f   :  { %6206 = vmatprep.mubr.f32.mxu1 %v8747_v36 }
0x1e3d   :  { %v5648_v9 = vpop.xlane.xlu1 %5647 }
0x1e3e   :  { %8683 = vrcp.f32 %v5648_v9  ;;  %v8177_v9 = vpack.c.bf16 %v6872_v42, %v6870_v5 }
0x1e40   :  { %8178 = vmatprep.subr.bf16.mxu1 %v8177_v9 }
0x1e41   :  { %v5764_v20 = vpop.permute.xlu1 %5763 }
0x1e42   :  { %7895 = vmatpush3.msra.mxu0 %v5764_v20 }
0x1e43   :  { %7897 = vmatmul.mubr.msk.f32.vlgmr.msra.gmra.mrb[140].mxu0 %vm663_vm5, %v5658_v59  ;;  %8174 = vmatprep.subr.bf16.mxu0 %v8173_v10  ;;  %v6871_v59 = vld [vmem:[%s10895_s9 + $0x90] sm:$0xff] }
0x1e44   :  { %7899 = vmatprep.mubr.msk.f32.mxu0 %vm8750_vm1, %v8747_v36  ;;  %8176 = vmatpush3.bf16.msra.mxu0 %v8173_v10  ;;  %v8179_v20 = vpack.c.bf16 %v6871_v59, %v6869_v11  ;;  %v6878_v10 = vld [vmem:[%s10895_s9 + $0xc8] sm:$0xff]  ;;  %v6892_v59 = vld [vmem:[%s10897_s11 + $0x100] sm:$0xff] }
0x1e45   :  { %8225 = vmatprep.subr.bf16.mxu0 %v8748_v27 }
0x1e46   :  { %8180 = vmatpush1.bf16.msra.mxu1 %v8179_v20  ;;  %v6893_v20 = vld [vmem:[%s10897_s11 + $0x108] sm:$0xff] }
0x1e47   :  { %7900 = vmatmul.mubr.msk.f32.gmra.mrb[142].mxu0 %vm663_vm5, %v5659_v33  ;;  %v6876_v33 = vld [vmem:[%s10895_s9 + $0xb8] sm:$0xff] }
0x1e48   :  { %v8684_v58 = vpop.eup %8683  ;;  %7902 = vmatprep.mubr.msk.f32.mxu0 %vm8750_vm1, %v8747_v36 }
0x1e49   :  { %v5660_v17 = vmul.f32 %v8684_v58, %v8672_v38  ;;  %v8181_v58 = vpack.c.bf16 %v6876_v33, %v6874_v53  ;;  %v8195_v33 = vpack.c.bf16 %v6893_v20, %v6892_v59  ;;  %v6919_v59 = vld [vmem:[%s10897_s11 + $0x1d8] sm:$0xff] }
0x1e4b   :  { %7903 = vmatmul.mubr.msk.f32.gmra.mrb[144].mxu0 %vm663_vm5, %v5660_v17  ;;  %v6873_v17 = vld [vmem:[%s10895_s9 + $0xa0] sm:$0xff]  ;;  %8182 = vmatprep.subr.bf16.mxu1 %v8181_v58 }
0x1e4c   :  { %v8183_v19 = vpack.c.bf16 %v6875_v49, %v6873_v17 }
0x1e4e   :  { %8184 = vmatpush1.bf16.msra.mxu1 %v8183_v19 }
0x1ee9   :  { %v5745_v7 = vpop.f32.mrb[106].mxu1 }
0x1eea   :  { %v7883_v24 = vpop.f32.mrb[107].mxu1  ;;  %7909 = vmatprep.mubr.msk.f32.mxu0 %vm457_vm2, %v5745_v7  ;;  %v6880_v7 = vld [vmem:[%s10895_s9 + $0xd8] sm:$0xff] }
0x1eeb   :  { %v8185_v24 = vpack.c.bf16 %v6880_v7, %v6878_v10 }
0x1eed   :  { %v5750_v4 = vpop.f32.mrb[108].mxu1  ;;  %8186 = vmatprep.subr.bf16.mxu1 %v8185_v24 }
0x1eee   :  { %v7886_v50 = vpop.f32.mrb[109].mxu1  ;;  %7910 = vmatmul.mubr.msk.f32.vlgmr.msra.gmra.mrb[122].mxu0 %vm457_vm2, %v5750_v4  ;;  %v6877_v4 = vld [vmem:[%s10895_s9 + $0xc0] sm:$0xff] }
0x1eef   :  { %v6879_v50 = vld [vmem:[%s10895_s9 + $0xd0] sm:$0xff] }
0x1ef1   :  { %v5755_v16 = vpop.f32.mrb[110].mxu1 }
0x1ef2   :  { %v7889_v44 = vpop.f32.mrb[111].mxu1  ;;  %7912 = vmatprep.mubr.msk.f32.mxu0 %vm457_vm2, %v5755_v16  ;;  %v8187_v16 = vpack.c.bf16 %v6879_v50, %v6877_v4 }
0x1ef3   :  { %v6882_v44 = vld [vmem:[%s10895_s9 + $0xe8] sm:$0xff] }
0x1ef4   :  { %8188 = vmatpush1.bf16.msra.mxu1 %v8187_v16 }
0x1f16   :  { %v5843_v30 = vpop.f32.mrb[140].mxu0 }
0x1f17   :  { %v7898_v13 = vpop.f32.mrb[141].mxu0  ;;  %7913 = vmatmul.mubr.msk.f32.gmra.mrb[124].mxu0 %vm457_vm2, %v5843_v30  ;;  %v6884_v30 = vld [vmem:[%s10895_s9 + $0xf8] sm:$0xff] }
0x1f18   :  { %v8189_v13 = vpack.c.bf16 %v6884_v30, %v6882_v44 }
0x1f1a   :  { %v5848_v45 = vpop.f32.mrb[142].mxu0  ;;  %8190 = vmatprep.subr.bf16.mxu1 %v8189_v13 }
0x1f1b   :  { %v7901_v54 = vpop.f32.mrb[143].mxu0  ;;  %7915 = vmatprep.mubr.msk.f32.mxu0 %vm457_vm2, %v5848_v45  ;;  %v6881_v45 = vld [vmem:[%s10895_s9 + $0xe0] sm:$0xff] }
0x1f1c   :  { %v6883_v54 = vld [vmem:[%s10895_s9 + $0xf0] sm:$0xff] }
0x1f1e   :  { %v5853_v35 = vpop.f32.mrb[144].mxu0 }
0x1f1f   :  { %v7904_v31 = vpop.f32.mrb[145].mxu0  ;;  %7916 = vmatmul.mubr.msk.f32.gmra.mrb[126].mxu0 %vm457_vm2, %v5853_v35  ;;  %v8191_v35 = vpack.c.bf16 %v6883_v54, %v6881_v45 }
0x1f20   :  { %7934 = vmatprep.mubr.msk.f32.mxu0 %vm8750_vm1, %v8747_v36 }
0x1f21   :  { %8192 = vmatpush1.bf16.msra.mxu1 %v8191_v35 }
0x1fc1   :  { %v7911_v62 = vpop.f32.mrb[122].mxu0 }
0x1fc2   :  { %v5977_v34 = vadd.f32 %v7911_v62, %v9895_v40  ;;  %v5941_v12 = vpop.f32.mrb[123].mxu0 }
0x1fc3   :  { %v5976_v3 = vadd.f32 %v5941_v12, %v9890_v48 }
0x1fc4   :  { %v5991_v32 = vadd.f32 %v6868_v25, %v5977_v34 }
0x1fc5   :  { %v5990_v51 = vadd.f32 %v6868_v25, %v5976_v3 }
0x1fc6   :  { %v5999_v46 = vsel %vm74_vm0, %v5991_v32, 0.0 }
0x1fc7   :  { %6000 = vadd.xlane.f32.xlu1 %v5999_v46  ;;  %v5996_v39 = vsel %vm74_vm0, %v5990_v51, 0.0 }
0x1fc8   :  { %5997 = vadd.xlane.f32.xlu0 %v5996_v39 }
0x1fea   :  { %v7914_v38 = vpop.f32.mrb[124].mxu0 }
0x1feb   :  { %v5951_v63 = vpop.f32.mrb[125].mxu0  ;;  %v5979_v6 = vadd.f32 %v7914_v38, %v9905_v15 }
0x1fec   :  { %v5978_v1 = vadd.f32 %v5951_v63, %v9900_v8 }
0x1fed   :  { %v10553_v40 = vadd.f32 %v6868_v25, %v5979_v6 }
0x1fee   :  { %v10551_v52 = vadd.f32 %v6868_v25, %v5978_v1 }
0x1fef   :  { %v6005_v28 = vsel %vm74_vm0, %v10553_v40, 0.0 }
0x1ff0   :  { %v6002_v48 = vsel %vm74_vm0, %v10551_v52, 0.0 }
0x1ff1   :  { %6003 = vadd.xlane.f32.xlu0 %v6002_v48 }
0x1ff2   :  { %v7917_v41 = vpop.f32.mrb[126].mxu0 }
0x1ff3   :  { %v5981_v60 = vadd.f32 %v7917_v41, %v9915_v18  ;;  %v5961_v26 = vpop.f32.mrb[127].mxu0 }
0x1ff4   :  { %v5980_v29 = vadd.f32 %v5961_v26, %v9910_v14 }
0x1ff5   :  { %v10561_v15 = vadd.f32 %v6868_v25, %v5981_v60  ;;  %6006 = vadd.xlane.f32.xlu0 %v6005_v28  ;;  %v6908_v28 = vld [vmem:[%s10897_s11 + $0x180] sm:$0xff] }
0x1ff6   :  { %v10563_v8 = vadd.f32 %v6868_v25, %v5980_v29 }
0x1ff7   :  { %v6011_v43 = vsel %vm74_vm0, %v10561_v15, 0.0 }
0x1ff8   :  { %6012 = vadd.xlane.f32.xlu1 %v6011_v43  ;;  %v6008_v22 = vsel %vm74_vm0, %v10563_v8, 0.0 }
0x1ff9   :  { %6009 = vadd.xlane.f32.xlu0 %v6008_v22 }
0x2054   :  { %v6001_v18 = vpop.xlane.xlu1 %6000 }
0x2055   :  { %v6015_v21 = vmul.f32 0.015625, %v6001_v18  ;;  %v5998_v47 = vpop.xlane.xlu0 %5997 }
0x2056   :  { %v6014_v14 = vmul.f32 0.015625, %v5998_v47 }
0x2057   :  { %v10569_v55 = vsub.f32 %v5991_v32, %v6015_v21 }
0x2058   :  { %v10571_v23 = vsub.f32 %v5990_v51, %v6014_v14 }
0x2059   :  { %v6027_v37 = vmul.f32 %v10569_v55, %v10569_v55 }
0x205a   :  { %v6026_v56 = vmul.f32 %v10571_v23, %v10571_v23 }
0x205b   :  { %v6035_v61 = vsel %vm74_vm0, %v6027_v37, 0.0 }
0x205c   :  { %6036 = vadd.xlane.f32.xlu1 %v6035_v61  ;;  %v6032_v2 = vsel %vm74_vm0, %v6026_v56, 0.0  ;;  %v6739_v56 = vld [vmem:[%s10894_s8 + $0x2] sm:$0x3] }
0x205d   :  { %6033 = vadd.xlane.f32.xlu0 %v6032_v2  ;;  %v6077_v2 = vrot.slane %v6739_v56, %v9021_v57  ;;  %v6087_v42 = vrot.slane %v6739_v56, %v9026_v0 }
0x207e   :  { %v6004_v31 = vpop.xlane.xlu0 %6003 }
0x207f   :  { %v6016_v62 = vmul.f32 0.015625, %v6004_v31 }
0x2081   :  { %v10628_v25 = vsub.f32 %v10551_v52, %v6016_v62 }
0x2082   :  { %v6007_v34 = vpop.xlane.xlu0 %6006 }
0x2083   :  { %v6017_v12 = vmul.f32 0.015625, %v6007_v34  ;;  %v6028_v3 = vmul.f32 %v10628_v25, %v10628_v25 }
0x2085   :  { %v10633_v32 = vsub.f32 %v10553_v40, %v6017_v12  ;;  %v6013_v51 = vpop.xlane.xlu1 %6012  ;;  %v6038_v46 = vsel %vm74_vm0, %v6028_v3, 0.0 }
0x2086   :  { %v6019_v39 = vmul.f32 0.015625, %v6013_v51  ;;  %6039 = vadd.xlane.f32.xlu0 %v6038_v46  ;;  %v6010_v38 = vpop.xlane.xlu0 %6009 }
0x2087   :  { %v6018_v63 = vmul.f32 0.015625, %v6010_v38  ;;  %v6029_v6 = vmul.f32 %v10633_v32, %v10633_v32 }
0x2088   :  { %v10639_v1 = vsub.f32 %v10561_v15, %v6019_v39 }
0x2089   :  { %v10642_v48 = vsub.f32 %v10563_v8, %v6018_v63  ;;  %v6041_v41 = vsel %vm74_vm0, %v6029_v6, 0.0  ;;  %v6909_v8 = vld [vmem:[%s10897_s11 + $0x188] sm:$0xff] }
0x208a   :  { %6042 = vadd.xlane.f32.xlu1 %v6041_v41  ;;  %v6031_v40 = vmul.f32 %v10639_v1, %v10639_v1  ;;  %v8193_v43 = vpack.c.bf16 %v6909_v8, %v6908_v28  ;;  %v6896_v8 = vld [vmem:[%s10897_s11 + $0x120] sm:$0xff] }
0x208b   :  { %v6030_v60 = vmul.f32 %v10642_v48, %v10642_v48 }
0x208c   :  { %v6047_v26 = vsel %vm74_vm0, %v6031_v40, 0.0  ;;  %8194 = vmatprep.subr.bf16.mxu1 %v8193_v43  ;;  %v6894_v40 = vld [vmem:[%s10897_s11 + $0x110] sm:$0xff]  ;;  %v6897_v43 = vld [vmem:[%s10897_s11 + $0x128] sm:$0xff] }
0x208d   :  { %v6044_v29 = vsel %vm74_vm0, %v6030_v60, 0.0 }
0x208e   :  { %6048 = vadd.xlane.f32.xlu1 %v6047_v26  ;;  %6045 = vadd.xlane.f32.xlu0 %v6044_v29  ;;  %v6912_v26 = vld [vmem:[%s10897_s11 + $0x1a0] sm:$0xff]  ;;  %v6913_v29 = vld [vmem:[%s10897_s11 + $0x1a8] sm:$0xff] }
0x208f   :  { %v8201_v28 = vpack.c.bf16 %v6913_v29, %v6912_v26 }
0x20e9   :  { %v6037_v22 = vpop.xlane.xlu1 %6036 }
0x20ea   :  { %v6051_v18 = vmul.f32 0.015625, %v6037_v22  ;;  %v6034_v21 = vpop.xlane.xlu0 %6033  ;;  %v8203_v22 = vpack.c.bf16 %v6897_v43, %v6896_v8 }
0x20eb   :  { %v6050_v47 = vmul.f32 0.015625, %v6034_v21  ;;  %v6915_v21 = vld [vmem:[%s10897_s11 + $0x1b8] sm:$0xff] }
0x20ec   :  { %v6057_v14 = vadd.f32 1e-06, %v6051_v18  ;;  %v6914_v18 = vld [vmem:[%s10897_s11 + $0x1b0] sm:$0xff] }
0x20ed   :  { %v6056_v37 = vadd.f32 1e-06, %v6050_v47  ;;  %v8205_v47 = vpack.c.bf16 %v6915_v21, %v6914_v18 }
0x20ee   :  { %8685 = vrsqrt.f32 %v6057_v14  ;;  %v6898_v14 = vld [vmem:[%s10897_s11 + $0x130] sm:$0xff] }
0x20ef   :  { %8687 = vrsqrt.f32 %v6056_v37  ;;  %v6899_v37 = vld [vmem:[%s10897_s11 + $0x138] sm:$0xff] }
0x20f0   :  { %v8207_v56 = vpack.c.bf16 %v6899_v37, %v6898_v14 }
0x20f8   :  { %v8686_v61 = vpop.eup %8685 }
0x20f9   :  { %v8688_v5 = vpop.eup %8687  ;;  %v6069_v11 = vmul.f32 %v8686_v61, %v10569_v55  ;;  %v6916_v61 = vld [vmem:[%s10897_s11 + $0x1c0] sm:$0xff] }
0x20fa   :  { %v6068_v9 = vmul.f32 %v8688_v5, %v10571_v23  ;;  %v6900_v5 = vld [vmem:[%s10897_s11 + $0x140] sm:$0xff] }
0x20fb   :  { %v6079_v17 = vmul.f32 %v6077_v2, %v6069_v11  ;;  %v6918_v11 = vld [vmem:[%s10897_s11 + $0x1d0] sm:$0xff] }
0x20fc   :  { %v6078_v53 = vmul.f32 %v6077_v2, %v6068_v9  ;;  %v6901_v9 = vld [vmem:[%s10897_s11 + $0x148] sm:$0xff] }
0x20fd   :  { %v6089_v23 = vadd.f32 %v6087_v42, %v6079_v17  ;;  %v8211_v20 = vpack.c.bf16 %v6901_v9, %v6900_v5  ;;  %v6920_v17 = vld [vmem:[%s10897_s11 + $0x1e0] sm:$0xff] }
0x20fe   :  { %v6088_v58 = vadd.f32 %v6087_v42, %v6078_v53  ;;  %v8213_v53 = vpack.c.bf16 %v6919_v59, %v6918_v11 }
0x2100   :  { %6886 = vmatmul.mubr.msk.f32.vlgmr.msra.gmra.mrb[112].mxu1 %vm74_vm0, %v6088_v58  ;;  %v6903_v58 = vld [vmem:[%s10897_s11 + $0x158] sm:$0xff] }
0x2101   :  { %6212 = vmatprep.mubr.f32.mxu1 %v8747_v36  ;;  %8196 = vmatpush3.bf16.msra.mxu1 %v8195_v33  ;;  %v6902_v33 = vld [vmem:[%s10897_s11 + $0x150] sm:$0xff] }
0x2104   :  { %6887 = vmatmul.mubr.msk.f32.gmra.mrb[114].mxu1 %vm74_vm0, %v6089_v23  ;;  %v6921_v23 = vld [vmem:[%s10897_s11 + $0x1e8] sm:$0xff] }
0x2105   :  { %6218 = vmatprep.mubr.f32.mxu1 %v8747_v36 }
0x2113   :  { %v6040_v55 = vpop.xlane.xlu0 %6039 }
0x2114   :  { %v6052_v49 = vmul.f32 0.015625, %v6040_v55  ;;  %v8215_v55 = vpack.c.bf16 %v6903_v58, %v6902_v33 }
0x2116   :  { %v6058_v19 = vadd.f32 1e-06, %v6052_v49  ;;  %v8217_v49 = vpack.c.bf16 %v6921_v23, %v6920_v17 }
0x2117   :  { %v6043_v10 = vpop.xlane.xlu1 %6042 }
0x2118   :  { %8689 = vrsqrt.f32 %v6058_v19  ;;  %v6053_v7 = vmul.f32 0.015625, %v6043_v10  ;;  %v6904_v19 = vld [vmem:[%s10897_s11 + $0x160] sm:$0xff]  ;;  %v6905_v10 = vld [vmem:[%s10897_s11 + $0x168] sm:$0xff] }
0x211a   :  { %v6059_v24 = vadd.f32 1e-06, %v6053_v7  ;;  %v6922_v7 = vld [vmem:[%s10897_s11 + $0x1f0] sm:$0xff] }
0x211b   :  { %v6049_v4 = vpop.xlane.xlu1 %6048  ;;  %v6046_v50 = vpop.xlane.xlu0 %6045 }
0x211c   :  { %8691 = vrsqrt.f32 %v6059_v24  ;;  %v6055_v16 = vmul.f32 0.015625, %v6049_v4  ;;  %v6054_v44 = vmul.f32 0.015625, %v6046_v50  ;;  %v6923_v24 = vld [vmem:[%s10897_s11 + $0x1f8] sm:$0xff]  ;;  %v8219_v4 = vpack.c.bf16 %v6905_v10, %v6904_v19 }
0x211d   :  { %v8221_v50 = vpack.c.bf16 %v6923_v24, %v6922_v7 }
0x211e   :  { %v6061_v30 = vadd.f32 1e-06, %v6055_v16  ;;  %v6060_v13 = vadd.f32 1e-06, %v6054_v44  ;;  %v6906_v16 = vld [vmem:[%s10897_s11 + $0x170] sm:$0xff]  ;;  %v6907_v44 = vld [vmem:[%s10897_s11 + $0x178] sm:$0xff] }
0x2120   :  { %8693 = vrsqrt.f32 %v6061_v30  ;;  %v8223_v30 = vpack.c.bf16 %v6907_v44, %v6906_v16 }
0x2121   :  { %8695 = vrsqrt.f32 %v6060_v13  ;;  %v6885_v13 = vld [vmem:[%s10896_s10 + $0x2] sm:$0x3] }
0x2122   :  { %v8690_v45 = vpop.eup %8689 }
0x2123   :  { %v6070_v54 = vmul.f32 %v8690_v45, %v10628_v25  ;;  %v10773_v45 = vrot.slane %v6885_v13, %v9021_v57 }
0x2125   :  { %v6080_v35 = vmul.f32 %v6077_v2, %v6070_v54  ;;  %v10776_v54 = vrot.slane %v6885_v13, %v9026_v0 }
0x2126   :  { %v8692_v31 = vpop.eup %8691 }
0x2127   :  { %v6090_v62 = vadd.f32 %v6087_v42, %v6080_v35  ;;  %v6071_v34 = vmul.f32 %v8692_v31, %v10633_v32 }
0x2129   :  { %6888 = vmatmul.mubr.msk.f32.gmra.mrb[116].mxu1 %vm74_vm0, %v6090_v62  ;;  %v6081_v12 = vmul.f32 %v6077_v2, %v6071_v34 }
0x212a   :  { %v8694_v3 = vpop.eup %8693  ;;  %6224 = vmatprep.mubr.f32.mxu1 %v8747_v36 }
0x212b   :  { %v8696_v51 = vpop.eup %8695  ;;  %v6091_v46 = vadd.f32 %v6087_v42, %v6081_v12  ;;  %v6073_v38 = vmul.f32 %v8694_v3, %v10639_v1  ;;  %v6911_v1 = vld [vmem:[%s10897_s11 + $0x198] sm:$0xff] }
0x212c   :  { %v6072_v39 = vmul.f32 %v8696_v51, %v10642_v48  ;;  %v6910_v48 = vld [vmem:[%s10897_s11 + $0x190] sm:$0xff] }
0x212d   :  { %6889 = vmatmul.mubr.msk.f32.gmra.mrb[118].mxu1 %vm74_vm0, %v6091_v46  ;;  %v6083_v6 = vmul.f32 %v6077_v2, %v6073_v38  ;;  %v8197_v41 = vpack.c.bf16 %v6911_v1, %v6910_v48 }
0x212e   :  { %6230 = vmatprep.mubr.f32.mxu1 %v8747_v36  ;;  %v6082_v25 = vmul.f32 %v6077_v2, %v6072_v39  ;;  %v6917_v2 = vld [vmem:[%s10897_s11 + $0x1c8] sm:$0xff] }
0x212f   :  { %v6093_v32 = vadd.f32 %v6087_v42, %v6083_v6  ;;  %8198 = vmatprep.subr.bf16.mxu1 %v8197_v41 }
0x2130   :  { %v6092_v63 = vadd.f32 %v6087_v42, %v6082_v25  ;;  %v8209_v42 = vpack.c.bf16 %v6917_v2, %v6916_v61 }
0x2132   :  { %6890 = vmatmul.mubr.msk.f32.gmra.mrb[120].mxu1 %vm74_vm0, %v6092_v63 }
0x2133   :  { %6236 = vmatprep.mubr.f32.mxu1 %v8747_v36  ;;  %v6895_v36 = vld [vmem:[%s10897_s11 + $0x118] sm:$0xff] }
0x2134   :  { %v8199_v60 = vpack.c.bf16 %v6895_v36, %v6894_v40 }
0x2136   :  { %6891 = vmatmul.mubr.msk.f32.gmra.mrb[122].mxu1 %vm74_vm0, %v6093_v32 }
0x2137   :  { %8200 = vmatpush3.bf16.msra.mxu1 %v8199_v60 }
0x2138   :  { %8202 = vmatprep.subr.bf16.mxu1 %v8201_v28 }
0x213b   :  { %8204 = vmatpush3.bf16.msra.mxu1 %v8203_v22 }
0x213c   :  { %8206 = vmatprep.subr.bf16.mxu1 %v8205_v47 }
0x213f   :  { %8208 = vmatpush3.bf16.msra.mxu1 %v8207_v56 }
0x2140   :  { %8210 = vmatprep.subr.bf16.mxu1 %v8209_v42 }
0x2143   :  { %8212 = vmatpush3.bf16.msra.mxu1 %v8211_v20 }
0x2144   :  { %8214 = vmatprep.subr.bf16.mxu1 %v8213_v53 }
0x2147   :  { %8216 = vmatpush3.bf16.msra.mxu1 %v8215_v55 }
0x2148   :  { %8218 = vmatprep.subr.bf16.mxu1 %v8217_v49 }
0x214b   :  { %8220 = vmatpush3.bf16.msra.mxu1 %v8219_v4 }
0x214c   :  { %8222 = vmatprep.subr.bf16.mxu1 %v8221_v50 }
0x214f   :  { %8224 = vmatpush3.bf16.msra.mxu1 %v8223_v30 }
0x21d3   :  { %v6208_v35 = vpop.f32.mrb[112].mxu1 }
0x21d4   :  { %v6209_v31 = vadd.f32 %v6208_v35, %v10773_v45  ;;  %v6210_v62 = vpop.f32.mrb[113].mxu1 }
0x21d5   :  { %v6211_v34 = vadd.f32 %v6210_v62, %v10776_v54 }
0x21d6   :  { %v6255_v12 = vmul.f32 0.044715, %v6209_v31  ;;  %v6243_v56 = vmul.f32 0.5, %v6209_v31 }
0x21d7   :  { %v6256_v3 = vmul.f32 0.044715, %v6211_v34  ;;  %v6214_v51 = vpop.f32.mrb[114].mxu1  ;;  %v6244_v14 = vmul.f32 0.5, %v6211_v34 }
0x21d8   :  { %v6267_v46 = vmul.f32 %v6255_v12, %v6209_v31  ;;  %v6215_v39 = vadd.f32 %v6214_v51, %v10773_v45  ;;  %v6216_v38 = vpop.f32.mrb[115].mxu1 }
0x21d9   :  { %v6268_v25 = vmul.f32 %v6256_v3, %v6211_v34  ;;  %v6217_v57 = vadd.f32 %v6216_v38, %v10776_v54 }
0x21da   :  { %v6279_v63 = vmul.f32 %v6267_v46, %v6209_v31  ;;  %v6257_v6 = vmul.f32 0.044715, %v6215_v39  ;;  %v6245_v20 = vmul.f32 0.5, %v6215_v39 }
0x21db   :  { %v6258_v0 = vmul.f32 0.044715, %v6217_v57  ;;  %v6280_v32 = vmul.f32 %v6268_v25, %v6211_v34  ;;  %v6246_v11 = vmul.f32 0.5, %v6217_v57 }
0x21dc   :  { %v6291_v48 = vadd.f32 %v6279_v63, %v6209_v31  ;;  %v6269_v1 = vmul.f32 %v6257_v6, %v6215_v39 }
0x21dd   :  { %v6270_v41 = vmul.f32 %v6258_v0, %v6217_v57  ;;  %v6292_v40 = vadd.f32 %v6280_v32, %v6211_v34 }
0x21de   :  { %v6303_v36 = vmul.f32 0.7978846, %v6291_v48  ;;  %v6281_v60 = vmul.f32 %v6269_v1, %v6215_v39 }
0x21df   :  { %v6304_v26 = vmul.f32 0.7978846, %v6292_v40  ;;  %v6282_v29 = vmul.f32 %v6270_v41, %v6217_v57 }
0x21e0   :  { %8697 = vtanh.f32 %v6303_v36  ;;  %v6293_v28 = vadd.f32 %v6281_v60, %v6215_v39 }
0x21e1   :  { %8699 = vtanh.f32 %v6304_v26  ;;  %v6294_v8 = vadd.f32 %v6282_v29, %v6217_v57 }
0x21e2   :  { %v6305_v43 = vmul.f32 0.7978846, %v6293_v28 }
0x21e3   :  { %v6306_v22 = vmul.f32 0.7978846, %v6294_v8 }
0x21e4   :  { %8701 = vtanh.f32 %v6305_v43 }
0x21e5   :  { %8703 = vtanh.f32 %v6306_v22 }
0x21ea   :  { %v8698_v18 = vpop.eup %8697 }
0x21eb   :  { %v8700_v21 = vpop.eup %8699  ;;  %v6327_v47 = vadd.f32 1.0, %v8698_v18 }
0x21ec   :  { %v6328_v37 = vadd.f32 1.0, %v8700_v21 }
0x21ed   :  { %v6339_v42 = vmul.f32 %v6327_v47, %v6243_v56 }
0x21ee   :  { %v8702_v61 = vpop.eup %8701  ;;  %v6340_v2 = vmul.f32 %v6328_v37, %v6244_v14 }
0x21ef   :  { %v8704_v5 = vpop.eup %8703  ;;  %v6329_v9 = vadd.f32 1.0, %v8702_v61 }
0x21f0   :  { %6448 = vmatprep.mubr.f32.mxu1 %v6340_v2  ;;  %v6330_v59 = vadd.f32 1.0, %v8704_v5 }
0x21f1   :  { %6449 = vmatmul.mubr.f32.vlgmr.msra.gmra.mrb[124].mxu1 %v6339_v42  ;;  %v6341_v33 = vmul.f32 %v6329_v9, %v6245_v20 }
0x21f2   :  { %v6342_v53 = vmul.f32 %v6330_v59, %v6246_v11 }
0x21f4   :  { %6452 = vmatprep.mubr.f32.mxu1 %v6342_v53 }
0x21f5   :  { %6453 = vmatmul.mubr.f32.gmra.mrb[126].mxu1 %v6341_v33 }
0x21fc   :  { %v6220_v58 = vpop.f32.mrb[116].mxu1 }
0x21fd   :  { %v10783_v17 = vadd.f32 %v6220_v58, %v10773_v45  ;;  %v6222_v23 = vpop.f32.mrb[117].mxu1 }
0x21fe   :  { %v6223_v55 = vadd.f32 %v6222_v23, %v10776_v54 }
0x21ff   :  { %v6259_v49 = vmul.f32 0.044715, %v10783_v17  ;;  %v6247_v58 = vmul.f32 0.5, %v10783_v17 }
0x2200   :  { %v6260_v19 = vmul.f32 0.044715, %v6223_v55  ;;  %v6226_v10 = vpop.f32.mrb[118].mxu1  ;;  %v6248_v20 = vmul.f32 0.5, %v6223_v55 }
0x2201   :  { %v6271_v7 = vmul.f32 %v6259_v49, %v10783_v17  ;;  %v10789_v24 = vadd.f32 %v6226_v10, %v10773_v45  ;;  %v6228_v4 = vpop.f32.mrb[119].mxu1 }
0x2202   :  { %v6272_v50 = vmul.f32 %v6260_v19, %v6223_v55  ;;  %v10792_v16 = vadd.f32 %v6228_v4, %v10776_v54 }
0x2203   :  { %v6261_v44 = vmul.f32 0.044715, %v10789_v24  ;;  %v6283_v30 = vmul.f32 %v6271_v7, %v10783_v17 }
0x2204   :  { %v6262_v13 = vmul.f32 0.044715, %v10792_v16  ;;  %v6284_v35 = vmul.f32 %v6272_v50, %v6223_v55  ;;  %v6250_v4 = vmul.f32 0.5, %v10792_v16 }
0x2205   :  { %v6273_v31 = vmul.f32 %v6261_v44, %v10789_v24  ;;  %v6232_v62 = vpop.f32.mrb[120].mxu1  ;;  %v6295_v34 = vadd.f32 %v6283_v30, %v10783_v17  ;;  %v6249_v44 = vmul.f32 0.5, %v10789_v24 }
0x2206   :  { %v6274_v12 = vmul.f32 %v6262_v13, %v10792_v16  ;;  %v10801_v3 = vadd.f32 %v6232_v62, %v10773_v45  ;;  %v6234_v51 = vpop.f32.mrb[121].mxu1  ;;  %v6296_v46 = vadd.f32 %v6284_v35, %v6223_v55 }
0x2207   :  { %v10804_v39 = vadd.f32 %v6234_v51, %v10776_v54  ;;  %v6307_v38 = vmul.f32 0.7978846, %v6295_v34  ;;  %v6285_v25 = vmul.f32 %v6273_v31, %v10789_v24 }
0x2208   :  { %v6263_v57 = vmul.f32 0.044715, %v10801_v3  ;;  %v6308_v63 = vmul.f32 0.7978846, %v6296_v46  ;;  %v6286_v6 = vmul.f32 %v6274_v12, %v10792_v16  ;;  %v6251_v34 = vmul.f32 0.5, %v10801_v3 }
0x2209   :  { %v6264_v0 = vmul.f32 0.044715, %v10804_v39  ;;  %v6238_v32 = vpop.f32.mrb[122].mxu1  ;;  %8705 = vtanh.f32 %v6307_v38  ;;  %v6297_v48 = vadd.f32 %v6285_v25, %v10789_v24  ;;  %v6252_v31 = vmul.f32 0.5, %v10804_v39 }
0x220a   :  { %v6275_v1 = vmul.f32 %v6263_v57, %v10801_v3  ;;  %v10813_v41 = vadd.f32 %v6238_v32, %v10773_v45  ;;  %v6240_v40 = vpop.f32.mrb[123].mxu1  ;;  %8707 = vtanh.f32 %v6308_v63  ;;  %v6298_v36 = vadd.f32 %v6286_v6, %v10792_v16 }
0x220b   :  { %v6276_v60 = vmul.f32 %v6264_v0, %v10804_v39  ;;  %v6241_v26 = vadd.f32 %v6240_v40, %v10776_v54  ;;  %v6309_v29 = vmul.f32 0.7978846, %v6297_v48 }
0x220c   :  { %v6265_v28 = vmul.f32 0.044715, %v10813_v41  ;;  %v6310_v8 = vmul.f32 0.7978846, %v6298_v36  ;;  %v6287_v43 = vmul.f32 %v6275_v1, %v10801_v3  ;;  %v6253_v57 = vmul.f32 0.5, %v10813_v41 }
0x220d   :  { %v6266_v22 = vmul.f32 0.044715, %v6241_v26  ;;  %8709 = vtanh.f32 %v6309_v29  ;;  %v6288_v18 = vmul.f32 %v6276_v60, %v10804_v39  ;;  %v6254_v25 = vmul.f32 0.5, %v6241_v26 }
0x220e   :  { %v6277_v45 = vmul.f32 %v6265_v28, %v10813_v41  ;;  %8711 = vtanh.f32 %v6310_v8  ;;  %v6299_v21 = vadd.f32 %v6287_v43, %v10801_v3 }
0x220f   :  { %v6278_v47 = vmul.f32 %v6266_v22, %v6241_v26  ;;  %v6300_v14 = vadd.f32 %v6288_v18, %v10804_v39  ;;  %v6925_v18 = vld [vmem:[%s10898_s12 + $0x1] ss:$0 sm:$0xff] }
0x2210   :  { %v6311_v37 = vmul.f32 0.7978846, %v6299_v21  ;;  %v6289_v54 = vmul.f32 %v6277_v45, %v10813_v41 }
0x2211   :  { %v6312_v56 = vmul.f32 0.7978846, %v6300_v14  ;;  %v6290_v61 = vmul.f32 %v6278_v47, %v6241_v26 }
0x2212   :  { %8713 = vtanh.f32 %v6311_v37  ;;  %v6301_v2 = vadd.f32 %v6289_v54, %v10813_v41 }
0x2213   :  { %v8706_v5 = vpop.eup %8705  ;;  %8715 = vtanh.f32 %v6312_v56  ;;  %v6302_v42 = vadd.f32 %v6290_v61, %v6241_v26 }
0x2214   :  { %v8708_v9 = vpop.eup %8707  ;;  %v6331_v11 = vadd.f32 1.0, %v8706_v5  ;;  %v6313_v59 = vmul.f32 0.7978846, %v6301_v2 }
0x2215   :  { %v6332_v53 = vadd.f32 1.0, %v8708_v9  ;;  %v6314_v33 = vmul.f32 0.7978846, %v6302_v42  ;;  %v6520_v9 = vld [vmem:[%s10900_s14 + $0x10] sm:$0xff] }
0x2216   :  { %8717 = vtanh.f32 %v6313_v59  ;;  %v6343_v10 = vmul.f32 %v6331_v11, %v6247_v58  ;;  %v6521_v11 = vld [vmem:[%s10900_s14 + $0x18] sm:$0xff]  ;;  %v6524_v58 = vld [vmem:[%s10900_s14 + $0x30] sm:$0xff] }
0x2217   :  { %v8710_v23 = vpop.eup %8709  ;;  %v6344_v49 = vmul.f32 %v6332_v53, %v6248_v20  ;;  %8719 = vtanh.f32 %v6314_v33  ;;  %v8229_v59 = vpack.c.bf16 %v6521_v11, %v6520_v9  ;;  %v6522_v20 = vld [vmem:[%s10900_s14 + $0x20] sm:$0xff]  ;;  %v6523_v53 = vld [vmem:[%s10900_s14 + $0x28] sm:$0xff] }
0x2218   :  { %v8712_v19 = vpop.eup %8711  ;;  %v6333_v7 = vadd.f32 1.0, %v8710_v23  ;;  %v8232_v33 = vpack.c.bf16 %v6523_v53, %v6522_v20  ;;  %v6525_v23 = vld [vmem:[%s10900_s14 + $0x38] sm:$0xff] }
0x2219   :  { %6456 = vmatprep.mubr.f32.mxu1 %v6344_v49  ;;  %v6334_v50 = vadd.f32 1.0, %v8712_v19  ;;  %v8235_v49 = vpack.c.bf16 %v6525_v23, %v6524_v58 }
0x221a   :  { %6457 = vmatmul.mubr.f32.gmra.mrb[128].mxu1 %v6343_v10  ;;  %v6345_v13 = vmul.f32 %v6333_v7, %v6249_v44  ;;  %v6927_v44 = vld [vmem:[%s10899_s13 + $0x1] ss:$0 sm:$0xff] }
0x221b   :  { %v6346_v30 = vmul.f32 %v6334_v50, %v6250_v4  ;;  %v6926_v50 = vld [vmem:[%s10899_s13] ss:$0 sm:$0xff] }
0x221c   :  { %v8714_v55 = vpop.eup %8713 }
0x221d   :  { %v8716_v35 = vpop.eup %8715  ;;  %6461 = vmatprep.mubr.f32.mxu1 %v6346_v30  ;;  %v6335_v17 = vadd.f32 1.0, %v8714_v55 }
0x221e   :  { %6462 = vmatmul.mubr.f32.gmra.mrb[130].mxu1 %v6345_v13  ;;  %v6336_v62 = vadd.f32 1.0, %v8716_v35  ;;  %v6928_v13 = vld [vmem:[%s10901_s15] ss:$0 sm:$0xff] }
0x221f   :  { %v6347_v16 = vmul.f32 %v6335_v17, %v6251_v34 }
0x2220   :  { %v8718_v12 = vpop.eup %8717  ;;  %v6348_v51 = vmul.f32 %v6336_v62, %v6252_v31 }
0x2221   :  { %v8720_v46 = vpop.eup %8719  ;;  %v6337_v38 = vadd.f32 1.0, %v8718_v12 }
0x2222   :  { %6465 = vmatprep.mubr.f32.mxu1 %v6348_v51  ;;  %v6338_v24 = vadd.f32 1.0, %v8720_v46 }
0x2223   :  { %6466 = vmatmul.mubr.f32.gmra.mrb[132].mxu1 %v6347_v16  ;;  %v6349_v6 = vmul.f32 %v6337_v38, %v6253_v57 }
0x2224   :  { %v6350_v63 = vmul.f32 %v6338_v24, %v6254_v25 }
0x2226   :  { %6469 = vmatprep.mubr.f32.mxu1 %v6350_v63 }
0x2227   :  { %6470 = vmatmul.mubr.f32.gmra.mrb[134].mxu1 %v6349_v6 }
0x22c4   :  { %v7282_v0 = vpop.f32.mrb[124].mxu1 }
0x22c5   :  { %v7283_v39 = vpop.f32.mrb[125].mxu1 }
0x22c8   :  { %v7285_v32 = vpop.f32.mrb[126].mxu1 }
0x22c9   :  { %v7286_v48 = vpop.f32.mrb[127].mxu1 }
0x22ed   :  { %v7288_v3 = vpop.f32.mrb[128].mxu1 }
0x22ee   :  { %v7289_v1 = vpop.f32.mrb[129].mxu1 }
0x22ef   :  { %v7290_v40 = vadd.f32 %v7289_v1, %v7288_v3 }
0x22f1   :  { %v7291_v36 = vpop.f32.mrb[130].mxu1  ;;  %v6475_v41 = vadd.f32 %v7290_v40, %v10551_v52  ;;  %v6518_v52 = vld [vmem:[%s10900_s14] sm:$0xff] }
0x22f2   :  { %v7292_v60 = vpop.f32.mrb[131].mxu1 }
0x22f3   :  { %v6485_v21 = vadd.f32 %v6925_v18, %v6475_v41 }
0x22f6   :  { %v7294_v29 = vpop.f32.mrb[132].mxu1 }
0x22f7   :  { %v7295_v28 = vpop.f32.mrb[133].mxu1 }
0x22fa   :  { %v7297_v26 = vpop.f32.mrb[134].mxu1 }
0x22fb   :  { %v7298_v8 = vpop.f32.mrb[135].mxu1 }
0x22fc   :  { %v7299_v43 = vadd.f32 %v7298_v8, %v7297_v26 }
0x22fe   :  { %v6476_v22 = vadd.f32 %v7299_v43, %v10561_v15  ;;  %v6519_v15 = vld [vmem:[%s10900_s14 + $0x8] sm:$0xff] }
0x22ff   :  { %v8226_v42 = vpack.c.bf16 %v6519_v15, %v6518_v52 }
0x2300   :  { %v6486_v45 = vadd.f32 %v6925_v18, %v6476_v22 }
0x2301   :  { %8227 = vmatpush3.bf16.msra.mxu0 %v8226_v42 }
0x2302   :  { %v6488_v47 = vrot.slane %v6486_v45, 7  ;;  %8228 = vmatprep.subr.bf16.mxu0 %v8748_v27 }
0x2304   :  { %v6491_v14 = vsel %vm6490_vm6, %v6485_v21, %v6488_v47 }
0x2305   :  { %v6495_v37 = vsel %vm6494_vm7, %v6491_v14, 0.0  ;;  %8230 = vmatpush3.bf16.msra.mxu0 %v8229_v59 }
0x2306   :  { %6496 = vadd.xlane.f32.xlu0 %v6495_v37  ;;  %8231 = vmatprep.subr.bf16.mxu0 %v8748_v27 }
0x2309   :  { %8233 = vmatpush3.bf16.msra.mxu0 %v8232_v33 }
0x230a   :  { %8234 = vmatprep.subr.bf16.mxu0 %v8748_v27 }
0x230d   :  { %8236 = vmatpush3.bf16.msra.mxu0 %v8235_v49 }
0x2393   :  { %v6497_v54 = vpop.xlane.xlu0 %6496 }
0x2394   :  { %v6498_v56 = vmul.f32 0.015625, %v6497_v54 }
0x2396   :  { %v6499_v61 = vsub.f32 %v6491_v14, %v6498_v56 }
0x2398   :  { %v6500_v2 = vmul.f32 %v6499_v61, %v6499_v61 }
0x239a   :  { %v6501_v5 = vsel %vm6494_vm7, %v6500_v2, 0.0 }
0x239b   :  { %6502 = vadd.xlane.f32.xlu1 %v6501_v5 }
0x2428   :  { %v6503_v19 = vpop.xlane.xlu1 %6502 }
0x2429   :  { %v6504_v10 = vmul.f32 0.015625, %v6503_v19 }
0x242b   :  { %v6505_v7 = vadd.f32 1e-06, %v6504_v10 }
0x242d   :  { %8721 = vrsqrt.f32 %v6505_v7 }
0x2437   :  { %v8722_v4 = vpop.eup %8721 }
0x2438   :  { %v6507_v27 = vmul.f32 %v8722_v4, %v6499_v61 }
0x243a   :  { %v6512_v30 = vmul.f32 %v6926_v50, %v6507_v27 }
0x243c   :  { %v6517_v55 = vadd.f32 %v6927_v44, %v6512_v30 }
0x243e   :  { %7935 = vmatmul.mubr.msk.f32.vlgmr.msra.gmra.mrb[146].mxu0 %vm74_vm0, %v6517_v55 }
0x2511   :  { %v6602_v35 = vpop.f32.mrb[146].mxu0 }
0x2512   :  { %v6603_v17 = vadd.f32 %v6928_v13, %v6602_v35  ;;  %v7936_v31 = vpop.f32.mrb[147].mxu0 }
0x2514   :  { %6607 = vst.msk [vmem:[#allocation2] sm:$0x3] %vm6606_vm8, %v6603_v17 }
0x2515   :  { %8734 = shalt.err (!%p8731_p4)
}
0x2516   :  { %s8735_s10 = scalar_lea.hbm %s10902_s16, 32 }
0x2517   :  { %p8736_p5 = scmp.ne.s32.totalorder %s10902_s16, %s8735_s10  ;;  %p8739_p6 = scmp.lt.u32.totalorder %s8735_s10, %s10902_s16 }
0x2519   :  { %p8741_p7 = pnand %p8739_p6, %p8736_p5 }
0x251b   :  { %8744 = shalt.err (!%p8741_p7)
}
0x251c   :  { %6617 = dma.vmem_to_hbm [thread:$0]  %s6615_s5, 32, %s10902_s16, [#allocation3]  }
0x251d   :  { %8745 = dma.done.wait [#allocation3], 32  }
0x251e   :  { %8746 = vsyncadd [#allocation3], 4294967264 }
0x251f   :  { %6621 = vsyncpa [#allocation3], 1 }

</bundles_post_ra>
